<compile_context>
chip_gen: v7x
topology: tpu7x:2x2x1
jax: 0.10.0
libtpu: 0.0.40
codegen_flags: <defaults>
</compile_context>

<pallas_src>
import functools

import numpy as np
import jax
import jax.numpy as jnp
from jax import lax
from jax.experimental import pallas as pl
from jax.experimental.pallas import tpu as pltpu

SR = 44100
N_WT = 20
WT_LEN = 512


def _wavetable_synth_kernel(pitch_ref, amp_ref, att_ref, wt_ref, tri_ref,
                            out_ref, carry_ref, *, sr):
    # pitch_ref/amp_ref/out_ref: (1, TILE_T)   att_ref: (W, TILE_T)
    # wt_ref: (W, L) processed wavetables      tri_ref: (TILE_T, TILE_T) 0/1 prefix matrix
    # carry_ref: (1, 1) VMEM scratch carried along the sequential time axis.
    ti = pl.program_id(1)
    tile_t = pitch_ref.shape[-1]
    L = wt_ref.shape[1]
    l_f = float(L)
    inv_l = 1.0 / l_f

    inc = pitch_ref[...] * (l_f / float(sr))              # (1, TILE_T) phase increments

    @pl.when(ti == 0)
    def _init():
        # Fold the reference's "- increment[:, 0]" into the carry: no extra scratch,
        # no per-tile subtraction.
        carry_ref[...] = -inc[:, 0:1]

    carry_in = carry_ref[...]                             # (1, 1)

    # Within-tile inclusive prefix sum on the (otherwise idle) MXU.  Split increments
    # into a bf16-exact high part + small residual so the scan is f32-accurate
    # regardless of how the MXU handles f32 matmuls.
    tri = tri_ref[...]
    inc_hi = inc.astype(jnp.bfloat16).astype(jnp.float32)
    inc_lo = inc - inc_hi
    csum = (jnp.dot(inc_hi, tri, preferred_element_type=jnp.float32)
            + jnp.dot(inc_lo, tri, preferred_element_type=jnp.float32)
            + carry_in)                                   # (1, TILE_T) == cumsum - inc0

    # Carry the running (phase - inc0) to the next tile, reduced mod L to bound drift.
    nxt = carry_in + jnp.sum(inc, axis=1, keepdims=True)
    carry_ref[...] = nxt - jnp.floor(nxt * inv_l) * l_f

    index = csum - jnp.floor(csum * inv_l) * l_f          # floor-mod into [0, L)
    index = jnp.where(index >= l_f, index - l_f, index)   # guard rounding up to exactly L

    il_f = jnp.floor(index)
    alpha = index - il_f                                  # (1, TILE_T) in [0, 1)
    il = il_f.astype(jnp.int32)
    ih = il + 1
    ih = jnp.where(ih == L, 0, ih)                        # cyclic wrap == ceil(index) % L

    # Fused interpolation weights: one matrix + one matmul replaces the two one-hot
    # gathers and the lerp.  Lane-dense: time on lanes, table position on sublanes.
    # (When alpha == 0, il == ih and the first branch correctly assigns weight 1.)
    l_iota = lax.broadcasted_iota(jnp.int32, (L, tile_t), 0)
    p = jnp.where(l_iota == il, 1.0 - alpha,
                  jnp.where(l_iota == ih, alpha, 0.0))    # (L, TILE_T) f32

    g = jnp.dot(wt_ref[...], p, preferred_element_type=jnp.float32)  # (W, TILE_T)

    mixed = jnp.sum(g * att_ref[...], axis=0, keepdims=True)         # (1, TILE_T)
    out_ref[...] = mixed * amp_ref[...]


def _round_up(x, m):
    return ((x + m - 1) // m) * m


def wavetable_synth(pitch, amplitude, attention, wavetables, *, tile_t=512, sr=SR):
    """pitch, amplitude: (B, T, 1); attention: (B, T, W); wavetables: (W, L) -> (B, T, 1)"""
    B, T, _ = pitch.shape
    W, L = wavetables.shape

    tile_t = min(_round_up(tile_t, 128), _round_up(T, 128))
    n_t = -(-T // tile_t)
    t_pad = n_t * tile_t

    p = pitch[..., 0].astype(jnp.float32).reshape(B, 1, T)
    a = amplitude[..., 0].astype(jnp.float32).reshape(B, 1, T)
    att = jnp.transpose(attention.astype(jnp.float32), (0, 2, 1))      # (B, W, T) lane-dense

    pad = t_pad - T
    if pad:
        p = jnp.pad(p, ((0, 0), (0, 0), (0, pad)))
        a = jnp.pad(a, ((0, 0), (0, 0), (0, pad)))
        att = jnp.pad(att, ((0, 0), (0, 0), (0, pad)))

    # Hoisted constant preprocessing (done once, outside the grid):
    #   tanh on learnable tables (idx >= 4) and the 0/1 within-tile prefix-sum matrix.
    wt_idx = jnp.arange(W, dtype=jnp.int32)[:, None]
    wt_proc = jnp.where(wt_idx < 4, wavetables, jnp.tanh(wavetables)).astype(jnp.float32)
    tri = jnp.triu(jnp.ones((tile_t, tile_t), jnp.float32))            # tri[s, t] = 1 iff s <= t

    out = pl.pallas_call(
        functools.partial(_wavetable_synth_kernel, sr=sr),
        out_shape=jax.ShapeDtypeStruct((B, 1, t_pad), jnp.float32),
        grid_spec=pltpu.PrefetchScalarGridSpec(
            num_scalar_prefetch=0,
            grid=(B, n_t),
            in_specs=[
                pl.BlockSpec((None, 1, tile_t), lambda b, t: (b, 0, t)),   # pitch
                pl.BlockSpec((None, 1, tile_t), lambda b, t: (b, 0, t)),   # amplitude
                pl.BlockSpec((None, W, tile_t), lambda b, t: (b, 0, t)),   # attention (W, T)
                pl.BlockSpec((W, L), lambda b, t: (0, 0)),                 # wavetables (resident)
                pl.BlockSpec((tile_t, tile_t), lambda b, t: (0, 0)),       # prefix matrix (resident)
            ],
            out_specs=pl.BlockSpec((None, 1, tile_t), lambda b, t: (b, 0, t)),
            scratch_shapes=[
                pltpu.VMEM((1, 1), jnp.float32),   # running phase carry (kept mod L, inc0 folded in)
            ],
        ),
        compiler_params=pltpu.CompilerParams(
            dimension_semantics=("parallel", "arbitrary")),
    )(p, a, att, wt_proc, tri)

    return out[:, 0, :T][..., None]


# ---------------- deterministic parameter init (mirrors __init__) ----------------

def generate_wavetable(length, f, cycle=1, phase=0.0):
    i = np.arange(length, dtype=np.float32)
    return f(cycle * 2.0 * np.pi * i / length + 2.0 * phase * np.pi).astype(np.float32)


def init_wavetables(key, n_wavetables=N_WT, wavetable_len=WT_LEN):
    wts = []
    phases = [0.17, 0.42, 0.73, 0.91]  # deterministic stand-ins for random.uniform(0, 1)
    for idx in range(n_wavetables):
        if idx < 4:
            wt = generate_wavetable(wavetable_len, np.sin, cycle=idx + 1, phase=phases[idx])
        else:
            key, sub = jax.random.split(key)
            wt = np.asarray(jax.random.normal(sub, (wavetable_len,)), dtype=np.float32) * 0.01
        # torch: wt = cat([wt[:-1], wt[0]]) -> last sample equals first (cyclic)
        wt = np.concatenate([wt[:-1], wt[:1]])
        wts.append(wt)
    return jnp.asarray(np.stack(wts, axis=0))  # (W, L)


# ---------------- pure-JAX reference (mirrors PyTorch semantics) ----------------

def reference_forward(pitch, amplitude, attention, wavetables):
    freq = pitch[..., 0]
    L = wavetables.shape[1]
    inc = freq / SR * L
    index = jnp.cumsum(inc, axis=-1) - inc[:, 0:1]
    index = index % L
    il = jnp.floor(index).astype(jnp.int32)
    ih = jnp.ceil(index).astype(jnp.int32) % L
    alpha = index - jnp.floor(index)
    outs = []
    for w in range(wavetables.shape[0]):
        wt = wavetables[w]
        if w >= 4:
            wt = jnp.tanh(wt)
        outs.append(wt[il] + alpha * (wt[ih] - wt[il]))
    ow = jnp.stack(outs, axis=2) * attention
    return jnp.sum(ow, axis=2)[..., None] * amplitude


if __name__ == "__main__":
    key = jax.random.PRNGKey(0)
    k_wt, k_pitch, k_amp, k_att = jax.random.split(key, 4)

    B, T = 2, 1000
    wavetables = init_wavetables(k_wt)                                        # (20, 512)
    pitch = jax.random.uniform(k_pitch, (B, T, 1), minval=100.0, maxval=400.0)
    amplitude = jax.random.uniform(k_amp, (B, T, 1), minval=0.0, maxval=1.0)
    attention = jax.nn.softmax(jax.random.normal(k_att, (B, T, N_WT)), axis=-1)

    out = wavetable_synth(pitch, amplitude, attention, wavetables)
    out = jax.block_until_ready(out)

    ref = reference_forward(pitch, amplitude, attention, wavetables)
    assert out.shape == (B, T, 1), out.shape
    np.testing.assert_allclose(np.asarray(out), np.asarray(ref), rtol=1e-4, atol=3e-3)

    print("KERNEL_OK")
</pallas_src>

<mosaic_0001>
module attributes {stable_mosaic.version = 11 : i64} {
  func.func @_wavetable_synth_kernel(%arg0: i32, %arg1: i32, %arg2: memref<1x1x512xf32, #tpu.memory_space<vmem>>, %arg3: memref<1x1x512xf32, #tpu.memory_space<vmem>>, %arg4: memref<1x20x512xf32, #tpu.memory_space<vmem>>, %arg5: memref<20x512xf32, #tpu.memory_space<vmem>>, %arg6: memref<512x512xf32, #tpu.memory_space<vmem>>, %arg7: memref<1x1x512xf32, #tpu.memory_space<vmem>>, %arg8: memref<1x1xf32, #tpu.memory_space<vmem>>) attributes {dimension_semantics = [#tpu.dimension_semantics<parallel>, #tpu.dimension_semantics<arbitrary>], iteration_bounds = array<i64: 2, 2>, scalar_prefetch = 0 : i64, scratch_operands = 1 : i64, tpu.core_type = #tpu.core_type<tc>, window_params = [{transform_indices = @transform_0, window_bounds = array<i64: 1, 1, 512>}, {transform_indices = @transform_1, window_bounds = array<i64: 1, 1, 512>}, {transform_indices = @transform_2, window_bounds = array<i64: 1, 20, 512>}, {pipeline_mode = #tpu.pipeline_mode<synchronous>, transform_indices = @transform_3, window_bounds = array<i64: 20, 512>}, {pipeline_mode = #tpu.pipeline_mode<synchronous>, transform_indices = @transform_4, window_bounds = array<i64: 512, 512>}, {transform_indices = @transform_5, window_bounds = array<i64: 1, 1, 512>}]} {
    %c0 = arith.constant 0 : index
    %c0_0 = arith.constant 0 : index
    %c0_1 = arith.constant 0 : index
    %0 = vector.load %arg2[%c0, %c0_0, %c0_1] : memref<1x1x512xf32, #tpu.memory_space<vmem>>, vector<1x1x512xf32>
    %1 = vector.shape_cast %0 : vector<1x1x512xf32> to vector<1x512xf32>
    %cst = arith.constant 0.0116099771 : f32
    %2 = vector.broadcast %cst : f32 to vector<1x512xf32>
    %3 = arith.mulf %1, %2 : vector<1x512xf32>
    %c0_i32 = arith.constant 0 : i32
    %4 = arith.cmpi eq, %arg1, %c0_i32 : i32
    %5 = arith.extui %4 : i1 to i32
    %c0_i32_2 = arith.constant 0 : i32
    %6 = arith.cmpi ne, %5, %c0_i32_2 : i32
    scf.if %6 {
      %74 = vector.extract_strided_slice %3 {offsets = [0, 0], sizes = [1, 1], strides = [1, 1]} : vector<1x512xf32> to vector<1x1xf32>
      %cst_34 = arith.constant 0.000000e+00 : f32
      %75 = vector.broadcast %cst_34 : f32 to vector<1x1xf32>
      %76 = arith.subf %75, %74 : vector<1x1xf32>
      %c0_35 = arith.constant 0 : index
      %c0_36 = arith.constant 0 : index
      %77 = vector.load %arg8[%c0_35, %c0_36] : memref<1x1xf32, #tpu.memory_space<vmem>>, vector<1x1xf32>
      tpu.vector_store %arg8[%c0_35, %c0_36], %76 {strides = array<i32>} : memref<1x1xf32, #tpu.memory_space<vmem>>, vector<1x1xf32>,
    } else {
    }
    %c0_3 = arith.constant 0 : index
    %c0_4 = arith.constant 0 : index
    %7 = vector.load %arg8[%c0_3, %c0_4] : memref<1x1xf32, #tpu.memory_space<vmem>>, vector<1x1xf32>
    %c0_5 = arith.constant 0 : index
    %c0_6 = arith.constant 0 : index
    %8 = vector.load %arg6[%c0_5, %c0_6] : memref<512x512xf32, #tpu.memory_space<vmem>>, vector<512x512xf32>
    %9 = arith.truncf %3 : vector<1x512xf32> to vector<1x512xbf16>
    %10 = arith.extf %9 : vector<1x512xbf16> to vector<1x512xf32>
    %11 = arith.subf %3, %10 : vector<1x512xf32>
    %cst_7 = arith.constant dense<0.000000e+00> : vector<1x512xf32>
    %12 = tpu.matmul %10, %8, %cst_7 {dimension_numbers = #tpu.dot_dimension_numbers<[1], [0], [0], [1], [0, 0, 1, 1], [], []>} : vector<1x512xf32>, vector<512x512xf32>, vector<1x512xf32> -> vector<1x512xf32>
    %cst_8 = arith.constant dense<0.000000e+00> : vector<1x512xf32>
    %13 = tpu.matmul %11, %8, %cst_8 {dimension_numbers = #tpu.dot_dimension_numbers<[1], [0], [0], [1], [0, 0, 1, 1], [], []>} : vector<1x512xf32>, vector<512x512xf32>, vector<1x512xf32> -> vector<1x512xf32>
    %14 = arith.addf %12, %13 : vector<1x512xf32>
    %15 = vector.broadcast %7 : vector<1x1xf32> to vector<1x512xf32>
    %16 = arith.addf %14, %15 : vector<1x512xf32>
    %cst_9 = arith.constant dense<0.000000e+00> : vector<1xf32>
    %17 = vector.multi_reduction <add>, %3, %cst_9 [1] : vector<1x512xf32> to vector<1xf32>
    %18 = vector.shape_cast %17 : vector<1xf32> to vector<1x1xf32>
    %19 = arith.addf %7, %18 : vector<1x1xf32>
    %cst_10 = arith.constant 0.001953125 : f32
    %20 = vector.broadcast %cst_10 : f32 to vector<1x1xf32>
    %21 = arith.mulf %19, %20 : vector<1x1xf32>
    %22 = math.floor %21 : vector<1x1xf32>
    %cst_11 = arith.constant 5.120000e+02 : f32
    %23 = vector.broadcast %cst_11 : f32 to vector<1x1xf32>
    %24 = arith.mulf %22, %23 : vector<1x1xf32>
    %25 = arith.subf %19, %24 : vector<1x1xf32>
    %c0_12 = arith.constant 0 : index
    %c0_13 = arith.constant 0 : index
    %26 = vector.load %arg8[%c0_12, %c0_13] : memref<1x1xf32, #tpu.memory_space<vmem>>, vector<1x1xf32>
    tpu.vector_store %arg8[%c0_12, %c0_13], %25 {strides = array<i32>} : memref<1x1xf32, #tpu.memory_space<vmem>>, vector<1x1xf32>,
    %cst_14 = arith.constant 0.001953125 : f32
    %27 = vector.broadcast %cst_14 : f32 to vector<1x512xf32>
    %28 = arith.mulf %16, %27 : vector<1x512xf32>
    %29 = math.floor %28 : vector<1x512xf32>
    %cst_15 = arith.constant 5.120000e+02 : f32
    %30 = vector.broadcast %cst_15 : f32 to vector<1x512xf32>
    %31 = arith.mulf %29, %30 : vector<1x512xf32>
    %32 = arith.subf %16, %31 : vector<1x512xf32>
    %cst_16 = arith.constant 5.120000e+02 : f32
    %33 = vector.broadcast %cst_16 : f32 to vector<1x512xf32>
    %34 = arith.cmpf oge, %32, %33 : vector<1x512xf32>
    %cst_17 = arith.constant 5.120000e+02 : f32
    %35 = vector.broadcast %cst_17 : f32 to vector<1x512xf32>
    %36 = arith.subf %32, %35 : vector<1x512xf32>
    %37 = arith.select %34, %36, %32 : vector<1x512xi1>, vector<1x512xf32>
    %38 = math.floor %37 : vector<1x512xf32>
    %39 = arith.subf %37, %38 : vector<1x512xf32>
    %40 = arith.fptosi %38 : vector<1x512xf32> to vector<1x512xi32>
    %c1_i32 = arith.constant 1 : i32
    %41 = vector.broadcast %c1_i32 : i32 to vector<1x512xi32>
    %42 = arith.addi %40, %41 : vector<1x512xi32>
    %c512_i32 = arith.constant 512 : i32
    %43 = vector.broadcast %c512_i32 : i32 to vector<1x512xi32>
    %44 = arith.cmpi eq, %42, %43 : vector<1x512xi32>
    %c0_i32_18 = arith.constant 0 : i32
    %45 = vector.broadcast %c0_i32_18 : i32 to vector<1x512xi32>
    %46 = arith.select %44, %45, %42 : vector<1x512xi1>, vector<1x512xi32>
    %47 = tpu.iota {dimensions = array<i32: 0>} : vector<512x512xi32>
    %48 = vector.broadcast %40 : vector<1x512xi32> to vector<512x512xi32>
    %49 = arith.cmpi eq, %47, %48 : vector<512x512xi32>
    %cst_19 = arith.constant 1.000000e+00 : f32
    %50 = vector.broadcast %cst_19 : f32 to vector<1x512xf32>
    %51 = arith.subf %50, %39 : vector<1x512xf32>
    %52 = vector.broadcast %46 : vector<1x512xi32> to vector<512x512xi32>
    %53 = arith.cmpi eq, %47, %52 : vector<512x512xi32>
    %cst_20 = arith.constant 0.000000e+00 : f32
    %54 = vector.shape_cast %39 : vector<1x512xf32> to vector<1x512xf32>
    %55 = vector.broadcast %54 : vector<1x512xf32> to vector<512x512xf32>
    %56 = vector.broadcast %cst_20 : f32 to vector<512x512xf32>
    %57 = arith.select %53, %55, %56 : vector<512x512xi1>, vector<512x512xf32>
    %58 = vector.shape_cast %51 : vector<1x512xf32> to vector<1x512xf32>
    %59 = vector.broadcast %58 : vector<1x512xf32> to vector<512x512xf32>
    %60 = arith.select %49, %59, %57 : vector<512x512xi1>, vector<512x512xf32>
    %c0_21 = arith.constant 0 : index
    %c0_22 = arith.constant 0 : index
    %61 = vector.load %arg5[%c0_21, %c0_22] : memref<20x512xf32, #tpu.memory_space<vmem>>, vector<20x512xf32>
    %cst_23 = arith.constant dense<0.000000e+00> : vector<20x512xf32>
    %62 = tpu.matmul %61, %60, %cst_23 {dimension_numbers = #tpu.dot_dimension_numbers<[1], [0], [0], [1], [0, 0, 1, 1], [], []>} : vector<20x512xf32>, vector<512x512xf32>, vector<20x512xf32> -> vector<20x512xf32>
    %c0_24 = arith.constant 0 : index
    %c0_25 = arith.constant 0 : index
    %c0_26 = arith.constant 0 : index
    %63 = vector.load %arg4[%c0_24, %c0_25, %c0_26] : memref<1x20x512xf32, #tpu.memory_space<vmem>>, vector<1x20x512xf32>
    %64 = vector.shape_cast %63 : vector<1x20x512xf32> to vector<20x512xf32>
    %65 = arith.mulf %62, %64 : vector<20x512xf32>
    %cst_27 = arith.constant dense<0.000000e+00> : vector<512xf32>
    %66 = vector.multi_reduction <add>, %65, %cst_27 [0] : vector<20x512xf32> to vector<512xf32>
    %67 = vector.shape_cast %66 : vector<512xf32> to vector<1x512xf32>
    %c0_28 = arith.constant 0 : index
    %c0_29 = arith.constant 0 : index
    %c0_30 = arith.constant 0 : index
    %68 = vector.load %arg3[%c0_28, %c0_29, %c0_30] : memref<1x1x512xf32, #tpu.memory_space<vmem>>, vector<1x1x512xf32>
    %69 = vector.shape_cast %68 : vector<1x1x512xf32> to vector<1x512xf32>
    %70 = arith.mulf %67, %69 : vector<1x512xf32>
    %c0_31 = arith.constant 0 : index
    %c0_32 = arith.constant 0 : index
    %c0_33 = arith.constant 0 : index
    %71 = vector.load %arg7[%c0_31, %c0_32, %c0_33] : memref<1x1x512xf32, #tpu.memory_space<vmem>>, vector<1x1x512xf32>
    %72 = vector.shape_cast %71 : vector<1x1x512xf32> to vector<1x512xf32>
    %73 = vector.shape_cast %70 : vector<1x512xf32> to vector<1x1x512xf32>
    tpu.vector_store %arg7[%c0_31, %c0_32, %c0_33], %73 {strides = array<i32>} : memref<1x1x512xf32, #tpu.memory_space<vmem>>, vector<1x1x512xf32>,
    return
  }
  func.func @transform_0(%arg0: i32, %arg1: i32) -> (i32, i32, i32) {
    %c0_i32 = arith.constant 0 : i32
    %c0_i32_0 = arith.constant 0 : i32
    return %arg0, %c0_i32, %arg1 : i32, i32, i32
  }
  func.func @transform_1(%arg0: i32, %arg1: i32) -> (i32, i32, i32) {
    %c0_i32 = arith.constant 0 : i32
    %c0_i32_0 = arith.constant 0 : i32
    return %arg0, %c0_i32, %arg1 : i32, i32, i32
  }
  func.func @transform_2(%arg0: i32, %arg1: i32) -> (i32, i32, i32) {
    %c0_i32 = arith.constant 0 : i32
    %c0_i32_0 = arith.constant 0 : i32
    return %arg0, %c0_i32, %arg1 : i32, i32, i32
  }
  func.func @transform_3(%arg0: i32, %arg1: i32) -> (i32, i32) {
    %c0_i32 = arith.constant 0 : i32
    %c0_i32_0 = arith.constant 0 : i32
    %c0_i32_1 = arith.constant 0 : i32
    return %c0_i32, %c0_i32_0 : i32, i32
  }
  func.func @transform_4(%arg0: i32, %arg1: i32) -> (i32, i32) {
    %c0_i32 = arith.constant 0 : i32
    %c0_i32_0 = arith.constant 0 : i32
    %c0_i32_1 = arith.constant 0 : i32
    return %c0_i32, %c0_i32_0 : i32, i32
  }
  func.func @transform_5(%arg0: i32, %arg1: i32) -> (i32, i32, i32) {
    %c0_i32 = arith.constant 0 : i32
    %c0_i32_0 = arith.constant 0 : i32
    return %arg0, %c0_i32, %arg1 : i32, i32, i32
  }
}

</mosaic_0001>

<bundles_post_ra>
// kernel: tpu_custom_call.1
= control target key start
LH: loop header
LB: loop body
LE: loop exit
PB: predicated region body
PF: predicated region fallthrough
CT: control target
= control target key end

     0   :  { %10 = vsyncpa [#allocation5], 0  ;;  %s6646_s0 = inlined_call_operand.vmem [shape: f32[2,1,1024], index: 0, kind: input, shape index: {}]   ;;  %s6647_s1 = inlined_call_operand.vmem [shape: f32[2,1,1024], index: 1, kind: input, shape index: {}]   ;;  %s6648_s2 = inlined_call_operand.vmem [shape: f32[2,20,1024], index: 2, kind: input, shape index: {}]   ;;  %s6649_s3 = inlined_call_operand.vmem [shape: f32[20,512], index: 3, kind: input, shape index: {}]   ;;  %s6650_s4 = inlined_call_operand.hbm [shape: f32[512,512], index: 4, kind: input, shape index: {}]   ;;  %s6651_s5 = inlined_call_operand.hbm [shape: f32[2,1,1024], index: 5, kind: output, shape index: {}]  }
   0x1   :  { %11 = vsyncpa [#allocation6], 0 }
   0x2   :  { %13 = vsyncpa [#allocation6 + $0x1], 0  ;;  %s4205_s18 = smov 0   ;;  %s4207_s19 = smov 0  }
   0x3   :  { %s4209_s20 = smov 0   ;;  %s4211_s21 = smov 0  }
   0x4   :  { %s4213_s22 = smov 0   ;;  %s4215_s23 = smov 0  }
   0x5   :  { %s4217_s24 = smov 0   ;;  %s4219_s25 = smov 0  }
   0x6 LB: > { %s3125_s26 = sadd.s32 4294967295, %s4167_s25   ;;  %s3126_s27 = sadd.s32 4294967294, %s4167_s25   ;;  %s4167_s25 = sphi %s4219_s25, %s19_s25   ;;  %s4163_s24 = sphi %s4217_s24, %s6959_s24   ;;  %s4159_s23 = sphi %s4215_s23, %s6958_s23   ;;  %s4155_s22 = sphi %s4213_s22, %s6957_s22   ;;  %s4151_s21 = sphi %s4211_s21, %s6956_s21   ;;  %s4147_s20 = sphi %s4209_s20, %s6955_s20   ;;  %s4143_s19 = sphi %s4207_s19, %s6954_s19   ;;  %s4139_s18 = sphi %s4205_s18, %s6953_s18  }
   0x7   : > { %s28_s28 = sadd.s32 1, %s4159_s23  ;;  %s31_s29 = sadd.s32 1, %s4163_s24 }
   0x8   : > { %p29_p0 = scmp.ge.s32.totalorder %s28_s28, 2  ;;  %s96_s30 = sadd.s32 1, %s4147_s20 }
   0x9   : > { %p103_p1 = scmp.ne.s32.totalorder %s4147_s20, %s4143_s19  ;;  %p104_p2 = scmp.eq.s32.totalorder %s4167_s25, 0 }
   0xa   : > { %s6961_s28 = smov (%p29_p0, %s28_s28), 0  ;;  %s6963_s29 = smov (!%p29_p0, %s31_s29), %s4163_s24 }
   0xb   : > { %6755 = sst [smem:[#allocation10_spill]] %s6961_s28  ;;  %s92_s6 = ssub.s32 %s4159_s23, %s6961_s28 }
   0xc   : > { %p4258_p3 = por %p104_p2, %p103_p1  ;;  %p33_p4 = scmp.ge.s32.totalorder %s6963_s29, 2 }
   0xd   : > { %p177_p5 = scmp.eq.s32.totalorder %s3125_s26, 3  ;;  %p182_p6 = scmp.ne.s32.totalorder %s4143_s19, %s4139_s18 }
   0xe   : > { %s6756_s7 = scalar_select %p4258_p3, 1, 0 }
   0xf   : > { %p183_p7 = scmp.eq.s32.totalorder %s3126_s27, 3  ;;  %s6965_s29 = smov (%p33_p4, %s6963_s29), 0 }
  0x10   : > { %6757 = sst [smem:[#allocation11_spill]] %s6965_s29  ;;  %p4266_p8 = por %p177_p5, %p103_p1 }
  0x11   : > { %p4270_p9 = por %p183_p7, %p182_p6  ;;  %s91_s10 = ssub.s32 %s4163_s24, %s6965_s29 }
  0x12   : > { %s6758_s8 = scalar_select %p4266_p8, 1, 0 }
  0x13   : > { %s6759_s9 = scalar_select %p4270_p9, 1, 0 }
  0x14   : > { %p3127_p10 = scmp.ge.s32.totalorder %s4167_s25, 1  ;;  %s93_s11 = sor.u32 %s92_s6, %s91_s10 }
  0x15   : > { %6760 = sst [smem:[#allocation12_spill]] %s6759_s9  ;;  %p190_p11 = scmp.lt.s32.totalorder %s4167_s25, 5 }
  0x16   : > { %p94_p12 = scmp.eq.s32.totalorder %s93_s11, 0  ;;  %p4282_p0 = scmp.eq.s32.totalorder %s3125_s26, 0 }
  0x17   : > { %p4278_p13 = pnand %p3127_p10, %p190_p11  ;;  %s4169_s15 = smov [#allocation4]  }
  0x18   : > { %s6762_s13 = scalar_select %p4282_p0, 1, 0 }
  0x19   : > { %s6761_s12 = scalar_select %p4278_p13, 1, 0 }
  0x1a   : > { %s4287_s14 = scalar_select %p94_p12, %s4147_s20, %s96_s30  }
  0x1b   : > { %p3959_p1 = pneg %p4278_p13  ;;  %s205_s16 = sshll.u32 %s4169_s15, 4  ;;  %s206_s16 = int_to_ptr.vmem [resolvable:$true] %s205_s16 }
  0x1c   : > { %6763 = sst [smem:[#allocation13_spill]] %s4287_s14  ;;  %s4041_s26 = scalar_lea.hbm %s6650_s4, 32768 }
  0x1d   : > { %p4293_p2 = pnand %p4282_p0, %p3959_p1  ;;  %p4042_p4 = scmp.ne.s32.totalorder %s6650_s4, %s4041_s26 }
  0x1e   : > { %p4048_p10 = scmp.lt.u32.totalorder %s4041_s26, %s6650_s4 }
  0x1f   : > { %p4043_p5 = pneg %p4293_p2 }
  0x21   : > { %p4044_p6 = pnand %p4043_p5, %p4042_p4 }
  0x23   : > { %p4045_p7 = pneg %p4044_p6 }
  0x25   : > { %p4050_p11 = pnand %p4048_p10, %p4045_p7 }
  0x27   : > { %4053 = shalt.err (!%p4050_p11)
}
  0x28   : > { %s4054_s29 = scalar_lea.vmem %s206_s16, 32768  ;;  %p4062_p8 = scmp.lt.s32.totalorder %s206_s16, %s206_s16 }
  0x29   : > { %p4055_p12 = scmp.ne.s32.totalorder %s206_s16, %s4054_s29  ;;  %p4063_p0 = scmp.lt.s32.totalorder %s4054_s29, %s4054_s29 }
  0x2b   : > { %p4057_p1 = pnand %p4055_p12, %p4043_p5  ;;  %p4064_p13 = por %p4063_p0, %p4062_p8 }
  0x2d   : > { %p4058_p9 = pneg %p4057_p1 }
  0x2f   : > { %p4065_p3 = pnand %p4064_p13, %p4058_p9 }
  0x31   : > { %4068 = shalt.err (!%p4065_p3)
}
  0x32   : > { %s4170_s27 = smov 512   ;;  %s4171_s6 = smov 32  }
  0x33   : > { %3962 = dma.hbm_to_vmem [thread:$0]  (!%p4293_p2), %s6650_s4, 32768, %s206_s16, [#allocation5], %s4170_s27, %s4170_s27, %s4171_s6  }
  0x34   : > { %p3129_p4 = scmp.ge.s32.totalorder %s4167_s25, 4 }
  0x35   : > { %p6765_p6 = scmp.ne.s32.totalorder (!%p3129_p4), %s6756_s7, 0 }
  0x36   : > { %215 = sbr.rel (%p3129_p4) target bundleno = 75 (0x4b), region = 24 }
  0x3d   : > { %242 = sbr.rel (!%p6765_p6) target bundleno = 75 (0x4b), region = 36  ;;  %s244_s29 = sand.u32 (%p6765_p6), 1, %s4147_s20  }
  0x3e   : > { %s3942_s26 = smul.u32 (%p6765_p6), 96, %s244_s29  ;;  %s3130_s30 = sshll.u32 (%p6765_p6), %s4159_s23, 2 }
  0x3f   : > { %s3943_s15 = smul.u32 (%p6765_p6), 24, %s4163_s24 }
  0x40   : > { %s246_s16 = scalar_lea.vmem (%p6765_p6), [#allocation3], %s3942_s26 }
  0x41   : > { %s249_s28 = sadd.s32 (%p6765_p6), %s3943_s15, %s3130_s30 }
  0x42   : > { %s3131_s14 = sshll.u32 (%p6765_p6), %s249_s28, 3 }
  0x43   : > { %s251_s10 = scalar_lea.vmem (%p6765_p6), %s6648_s2, %s3131_s14 }
  0x44   : > { %v264_v0 = vld [vmem:[%s251_s10] sm:$0xff]  ;;  %v266_v1 = vld [vmem:[%s251_s10 + $0x8] sm:$0xff]  ;;  %v268_v2 = vld [vmem:[%s251_s10 + $0x10] sm:$0xff] }
  0x45   : > { %265 = vst [vmem:[%s246_s16] sm:$0xff] %v264_v0  ;;  %267 = vst [vmem:[%s246_s16 + $0x8] sm:$0xff] %v266_v1  ;;  %v270_v3 = vld [vmem:[%s251_s10 + $0x18] sm:$0xff]  ;;  %v272_v4 = vld [vmem:[%s251_s10 + $0x40] sm:$0xff] }
  0x46   : > { %269 = vst [vmem:[%s246_s16 + $0x10] sm:$0xff] %v268_v2  ;;  %v274_v5 = vld [vmem:[%s251_s10 + $0x48] sm:$0xff]  ;;  %271 = vst [vmem:[%s246_s16 + $0x18] sm:$0xff] %v270_v3  ;;  %v276_v6 = vld [vmem:[%s251_s10 + $0x50] sm:$0xff] }
  0x47   : > { %273 = vst [vmem:[%s246_s16 + $0x20] sm:$0xff] %v272_v4  ;;  %275 = vst [vmem:[%s246_s16 + $0x28] sm:$0xff] %v274_v5  ;;  %v278_v7 = vld [vmem:[%s251_s10 + $0x58] sm:$0xff]  ;;  %v280_v8 = vld [vmem:[%s251_s10 + $0x80] sm:$0xff] }
  0x48   : > { %277 = vst [vmem:[%s246_s16 + $0x30] sm:$0xff] %v276_v6  ;;  %279 = vst [vmem:[%s246_s16 + $0x38] sm:$0xff] %v278_v7  ;;  %v282_v9 = vld [vmem:[%s251_s10 + $0x88] sm:$0xff]  ;;  %v284_v10 = vld [vmem:[%s251_s10 + $0x90] sm:$0xff] }
  0x49   : > { %281 = vst [vmem:[%s246_s16 + $0x40] sm:$0xff] %v280_v8  ;;  %v286_v11 = vld [vmem:[%s251_s10 + $0x98] sm:$0xff]  ;;  %283 = vst [vmem:[%s246_s16 + $0x48] sm:$0xff] %v282_v9 }
  0x4a   : > { %285 = vst [vmem:[%s246_s16 + $0x50] sm:$0xff] %v284_v10  ;;  %287 = vst [vmem:[%s246_s16 + $0x58] sm:$0xff] %v286_v11 }
  0x4b PF: > { %p6766_p3 = scmp.ne.s32.totalorder %s6761_s12, 0 }
  0x4d   : > { %296 = sbr.rel (%p6766_p3) target bundleno = 1166 (0x48e), region = 59 }
  0x54   : > { %s4325_s28 = sand.u32 1, %s4143_s19   ;;  %p6767_p8 = scmp.ne.s32.totalorder %s6762_s13, 0 }
  0x55   : > { %s3944_s7 = smul.u32 96, %s4325_s28 }
  0x57   : > { %s4328_s9 = scalar_lea.vmem [#allocation3], %s3944_s7 }
  0x58   : > { %4130 = dma.done.wait (%p6767_p8), [#allocation5], 32768  }
  0x59   : > { %4132 = vsyncadd (%p6767_p8), [#allocation5], 4294934528  ;;  %s4335_s14 = sshll.u32 %s4151_s21, 2  ;;  %p347_p9 = scmp.lt.s32.totalorder %s4155_s22, 1 }
  0x5a   : > { %p349_p13 = scmp.lt.s32.totalorder %s4335_s14, 7  ;;  %s3134_s12 = sshll.u32 %s4325_s28, 2 }
  0x5b   : > { %s348_s27 = scalar_select %p347_p9, %s4155_s22, 1 }
  0x5c   : > { %s350_s6 = scalar_select %p349_p13, %s4335_s14, 7 }
  0x5d   : > { %s3136_s11 = sshll.u32 %s348_s27, 3  ;;  %s4354_s16 = scalar_lea.vmem [#allocation7], %s3134_s12 }
  0x5e   : > { %s4342_s29 = sadd.s32 %s3136_s11, %s350_s6  ;;  %p3139_p0 = scmp.ne.s32.totalorder %s4151_s21, 0 }
  0x5f   : > { %s353_s30 = scalar_lea.vmem %s6646_s0, %s4342_s29  ;;  %s362_s10 = scalar_lea.vmem %s6647_s1, %s4342_s29  ;;  %vm373_vm0 = vcmask (!%p3139_p0), 0  }
  0x60   : > { %v366_v12 = vld [vmem:[%s353_s30] sm:$0xf]  ;;  %371 = sbr.rel (%p3139_p0) target bundleno = 103 (0x67), region = 71 }
  0x61   : > { %v4352_v13 = vmul.f32 0.011609977, %v366_v12 }
  0x63   : > { %v372_v14 = vsub.f32 (!%p3139_p0), 0.0, %v4352_v13 }
  0x65   : > { %374 = vst.msk [vmem:[#allocation2] sm:$0x1] (!%p3139_p0), %vm373_vm0, %v372_v14 }
  0x67 PF: > { %v377_v15 = vld [vmem:[#allocation4 + $0x8] sm:$0xff]  ;;  %v379_v17 = vld [vmem:[#allocation4 + $0x18] sm:$0xff]  ;;  %v6659_v18 = vlaneseq  ;;  %v376_v21 = vld [vmem:[#allocation4] sm:$0xff]  ;;  %v4172_v29 = vmov 1966171168   ;;  %s3146_s29 = sshll.u32 %s4155_s22, 3 }
  0x68   : > { %v381_v16 = vld [vmem:[#allocation4 + $0x28] sm:$0xff]  ;;  %v383_v20 = vld [vmem:[#allocation4 + $0x38] sm:$0xff]  ;;  %v380_v22 = vld [vmem:[#allocation4 + $0x20] sm:$0xff]  ;;  %v4367_v30 = vunpack.c.l.s4 %v4172_v29  ;;  %s3001_s6 = sshll.u32 %s4354_s16, 4  ;;  %p6947_p5 = scmp.ne.s32.totalorder %s6758_s8, 0  ;;  %s6593_s6 = int_to_ptr.vmem [resolvable:$true] %s3001_s6 }
  0x69   : > { %v4358_v19 = vpack.c.bf16 %v381_v16, %v377_v15  ;;  %v4360_v23 = vpack.c.bf16 %v383_v20, %v379_v17  ;;  %v4362_v24 = vpack.c.bf16 %v380_v22, %v376_v21  ;;  %v378_v25 = vld [vmem:[#allocation4 + $0x10] sm:$0xff]  ;;  %v385_v27 = vld [vmem:[#allocation4 + $0x48] sm:$0xff]  ;;  %v4365_v28 = vshrl.u32 %v6659_v18, 7  ;;  %v387_v33 = vld [vmem:[#allocation4 + $0x58] sm:$0xff]  ;;  %s4069_s13 = scalar_lea.vmem %s6593_s6, 64  ;;  %s4174_s30 = smov [#allocation7]  }
  0x6a   : > { %v382_v26 = vld [vmem:[#allocation4 + $0x30] sm:$0xff]  ;;  %v389_v32 = vld [vmem:[#allocation4 + $0x68] sm:$0xff]  ;;  %v391_v34 = vld [vmem:[#allocation4 + $0x78] sm:$0xff]  ;;  %v669_v54 = vunpack.c.0.s8 %v4367_v30  ;;  %p4070_p2 = scmp.ne.s32.totalorder %s6593_s6, %s4069_s13  ;;  %s4073_s15 = sshll.u32 %s4174_s30, 4  ;;  %s4074_s15 = int_to_ptr.vmem [resolvable:$false] %s4073_s15 }
  0x6b   : > { %6768 = vst [vmem:[#allocation14_spill] sm:$0xff] %v4365_v28  ;;  %3151 = vmatprep.subr.bf16.mxu0 %v4358_v19  ;;  %v4370_v31 = vpack.c.bf16 %v382_v26, %v378_v25  ;;  %3279 = vmatprep.subr.bf16.mxu1 %v4360_v23  ;;  %v4374_v35 = vpack.c.bf16 %v389_v32, %v385_v27  ;;  %v384_v37 = vld [vmem:[#allocation4 + $0x40] sm:$0xff]  ;;  %v386_v39 = vld [vmem:[#allocation4 + $0x50] sm:$0xff]  ;;  %v4379_v40 = vsub.s32 0, %v4365_v28  ;;  %v4382_v41 = vsub.s32 1, %v4365_v28  ;;  %v393_v44 = vld [vmem:[#allocation4 + $0x88] sm:$0xff]  ;;  %p4076_p11 = scmp.lt.s32.totalorder %s6593_s6, %s4074_s15 }
  0x6c   : > { %3153 = vmatpush1.bf16.msra.mxu0 %v4362_v24  ;;  %v4376_v36 = vpack.c.bf16 %v391_v34, %v387_v33  ;;  %v388_v38 = vld [vmem:[#allocation4 + $0x60] sm:$0xff]  ;;  %v390_v43 = vld [vmem:[#allocation4 + $0x70] sm:$0xff]  ;;  %v397_v45 = vld [vmem:[#allocation4 + $0xa8] sm:$0xff]  ;;  %v4388_v46 = vsub.s32 2, %v4365_v28  ;;  %v4391_v47 = vsub.s32 3, %v4365_v28  ;;  %v4445_v26 = vsub.s32 %v669_v54, %v4365_v28  ;;  %p4071_p7 = pnand %p4070_p2, %p6947_p5  ;;  %s4075_s17 = scalar_lea.vmem %s4074_s15, 128 }
  0x6d   : > { %6769 = vst [vmem:[#allocation15_spill] sm:$0xff] %v4379_v40  ;;  %6770 = vst [vmem:[#allocation16_spill] sm:$0xff] %v4382_v41  ;;  %3281 = vmatpush1.bf16.msra.mxu1 %v4370_v31  ;;  %v4385_v42 = vpack.c.bf16 %v388_v38, %v384_v37  ;;  %3155 = vmatprep.subr.bf16.mxu0 %v4374_v35  ;;  %v4395_v48 = vpack.c.bf16 %v390_v43, %v386_v39  ;;  %v395_v50 = vld [vmem:[#allocation4 + $0x98] sm:$0xff]  ;;  %v392_v52 = vld [vmem:[#allocation4 + $0x80] sm:$0xff]  ;;  %p4077_p12 = scmp.lt.s32.totalorder %s4075_s17, %s4069_s13 }
  0x6e   : > { %6771 = vst [vmem:[#allocation17_spill] sm:$0xff] %v4391_v47  ;;  %3283 = vmatprep.subr.bf16.mxu1 %v4376_v36  ;;  %v4397_v49 = vpack.c.bf16 %v397_v45, %v393_v44  ;;  %v399_v51 = vld [vmem:[#allocation4 + $0xb8] sm:$0xff]  ;;  %v4401_v53 = vrot.slane %v4352_v13, %v4379_v40  ;;  %v396_v56 = vld [vmem:[#allocation4 + $0xa0] sm:$0xff]  ;;  %v394_v57 = vld [vmem:[#allocation4 + $0x90] sm:$0xff]  ;;  %v4408_v59 = vrot.slane %v4352_v13, %v4382_v41  ;;  %p4072_p10 = pneg %p4071_p7 }
  0x6f   : > { %v4404_v55 = vpack.c.bf16 %v399_v51, %v395_v50  ;;  %v398_v58 = vld [vmem:[#allocation4 + $0xb0] sm:$0xff]  ;;  %v4412_v60 = vrot.slane %v4352_v13, %v4388_v46  ;;  %v4416_v61 = vrot.slane %v4352_v13, %v4391_v47  ;;  %v4419_v62 = vpack.c.bf16 %v396_v56, %v392_v52  ;;  %v401_v0 = vld [vmem:[#allocation4 + $0xc8] sm:$0xff]  ;;  %v403_v2 = vld [vmem:[#allocation4 + $0xd8] sm:$0xff]  ;;  %6778 = vst [vmem:[#allocation24_spill] sm:$0xff] %v4445_v26  ;;  %p4078_p1 = por %p4077_p12, %p4076_p11 }
  0x70   : > { %6772 = vst [vmem:[#allocation18_spill] sm:$0xff] %v4401_v53  ;;  %6773 = vst [vmem:[#allocation19_spill] sm:$0xff] %v4408_v59  ;;  %3157 = vmatpush1.bf16.msra.mxu0 %v4385_v42  ;;  %v4421_v63 = vpack.c.bf16 %v398_v58, %v394_v57  ;;  %v405_v1 = vld [vmem:[#allocation4 + $0xe8] sm:$0xff]  ;;  %v653_v3 = vpack.c.bf16 %v4401_v53, %v4401_v53  ;;  %v407_v5 = vld [vmem:[#allocation4 + $0xf8] sm:$0xff]  ;;  %v654_v8 = vpack.c.bf16 %v4408_v59, %v4408_v59 }
  0x71   : > { %6774 = vst [vmem:[#allocation20_spill] sm:$0xff] %v4412_v60  ;;  %6775 = vst [vmem:[#allocation21_spill] sm:$0xff] %v4416_v61  ;;  %3285 = vmatpush1.bf16.msra.mxu1 %v4395_v48  ;;  %3159 = vmatprep.subr.bf16.mxu0 %v4397_v49  ;;  %v4427_v4 = vpack.c.bf16 %v405_v1, %v401_v0  ;;  %v400_v6 = vld [vmem:[#allocation4 + $0xc0] sm:$0xff]  ;;  %v655_v9 = vpack.c.bf16 %v4412_v60, %v4412_v60  ;;  %v402_v11 = vld [vmem:[#allocation4 + $0xd0] sm:$0xff]  ;;  %p4079_p4 = pnand %p4078_p1, %p4072_p10 }
  0x72   : > { %v404_v7 = vld [vmem:[#allocation4 + $0xe0] sm:$0xff]  ;;  %3287 = vmatprep.subr.bf16.mxu1 %v4404_v55  ;;  %v4434_v10 = vpack.c.bf16 %v407_v5, %v403_v2  ;;  %v406_v12 = vld [vmem:[#allocation4 + $0xf0] sm:$0xff]  ;;  %v409_v14 = vld [vmem:[#allocation4 + $0x108] sm:$0xff]  ;;  %v656_v15 = vpack.c.bf16 %v4416_v61, %v4416_v61  ;;  %v4438_v16 = vunpack.c.l.bf16 %v653_v3  ;;  %v4440_v22 = vunpack.c.l.bf16 %v654_v8 }
  0x73   : > { %v413_v17 = vld [vmem:[#allocation4 + $0x128] sm:$0xff]  ;;  %v411_v20 = vld [vmem:[#allocation4 + $0x118] sm:$0xff]  ;;  %v4442_v25 = vunpack.c.l.bf16 %v655_v9  ;;  %v4448_v27 = vpack.c.bf16 %v404_v7, %v400_v6  ;;  %v4454_v30 = vpack.c.bf16 %v406_v12, %v402_v11  ;;  %v408_v33 = vld [vmem:[#allocation4 + $0x100] sm:$0xff] }
  0x74   : > { %6776 = vst [vmem:[#allocation22_spill] sm:$0xff] %v4438_v16  ;;  %v415_v21 = vld [vmem:[#allocation4 + $0x138] sm:$0xff]  ;;  %3161 = vmatpush1.bf16.msra.mxu0 %v4419_v62  ;;  %v4450_v29 = vunpack.c.l.bf16 %v656_v15  ;;  %v4456_v32 = vpack.c.bf16 %v413_v17, %v409_v14  ;;  %v412_v34 = vld [vmem:[#allocation4 + $0x120] sm:$0xff]  ;;  %v410_v37 = vld [vmem:[#allocation4 + $0x110] sm:$0xff]  ;;  %v665_v38 = vcombine.low %v4438_v16, %v4440_v22 }
  0x75   : > { %6777 = vst [vmem:[#allocation23_spill] sm:$0xff] %v4442_v25  ;;  %3289 = vmatpush1.bf16.msra.mxu1 %v4421_v63  ;;  %3163 = vmatprep.subr.bf16.mxu0 %v4427_v4  ;;  %v4461_v39 = vpack.c.bf16 %v415_v21, %v411_v20  ;;  %v414_v43 = vld [vmem:[#allocation4 + $0x130] sm:$0xff]  ;;  %v417_v44 = vld [vmem:[#allocation4 + $0x148] sm:$0xff]  ;;  %v419_v51 = vld [vmem:[#allocation4 + $0x158] sm:$0xff]  ;;  %v4467_v56 = vpack.c.bf16 %v412_v34, %v408_v33 }
  0x76   : > { %6779 = vst [vmem:[#allocation25_spill] sm:$0xff] %v4450_v29  ;;  %3291 = vmatprep.subr.bf16.mxu1 %v4434_v10  ;;  %v421_v45 = vld [vmem:[#allocation4 + $0x168] sm:$0xff]  ;;  %v666_v50 = vcombine.low %v4442_v25, %v4450_v29  ;;  %v423_v52 = vld [vmem:[#allocation4 + $0x178] sm:$0xff]  ;;  %v673_v54 = vrot.slane %v665_v38, %v4445_v26  ;;  %v4472_v58 = vpack.c.bf16 %v414_v43, %v410_v37  ;;  %v416_v1 = vld [vmem:[#allocation4 + $0x140] sm:$0xff] }
  0x77   : > { %v4474_v0 = vpack.c.bf16 %v421_v45, %v417_v44  ;;  %v420_v2 = vld [vmem:[#allocation4 + $0x160] sm:$0xff]  ;;  %v418_v3 = vld [vmem:[#allocation4 + $0x150] sm:$0xff]  ;;  %v4477_v5 = vpack.c.bf16 %v423_v52, %v419_v51  ;;  %v425_v7 = vld [vmem:[#allocation4 + $0x188] sm:$0xff] }
  0x78   : > { %3165 = vmatpush1.bf16.msra.mxu0 %v4448_v27  ;;  %v680_v57 = vrot.slane %v666_v50, %v4445_v26  ;;  %v422_v6 = vld [vmem:[#allocation4 + $0x170] sm:$0xff]  ;;  %v429_v8 = vld [vmem:[#allocation4 + $0x1a8] sm:$0xff]  ;;  %v427_v11 = vld [vmem:[#allocation4 + $0x198] sm:$0xff]  ;;  %v4480_v14 = vpack.c.bf16 %v420_v2, %v416_v1 }
  0x79   : > { %3293 = vmatpush1.bf16.msra.mxu1 %v4454_v30  ;;  %3167 = vmatprep.subr.bf16.mxu0 %v4456_v32  ;;  %v431_v12 = vld [vmem:[#allocation4 + $0x1b8] sm:$0xff]  ;;  %v4485_v17 = vpack.c.bf16 %v422_v6, %v418_v3  ;;  %v4487_v20 = vpack.c.bf16 %v429_v8, %v425_v7  ;;  %v424_v21 = vld [vmem:[#allocation4 + $0x180] sm:$0xff]  ;;  %v426_v34 = vld [vmem:[#allocation4 + $0x190] sm:$0xff] }
  0x7a   : > { %3295 = vmatprep.subr.bf16.mxu1 %v4461_v39  ;;  %v681_v9 = vcombine.low %v673_v54, %v680_v57  ;;  %v428_v33 = vld [vmem:[#allocation4 + $0x1a0] sm:$0xff]  ;;  %v4490_v37 = vpack.c.bf16 %v431_v12, %v427_v11  ;;  %v430_v38 = vld [vmem:[#allocation4 + $0x1b0] sm:$0xff]  ;;  %v433_v43 = vld [vmem:[#allocation4 + $0x1c8] sm:$0xff] }
  0x7b   : > { %v437_v44 = vld [vmem:[#allocation4 + $0x1e8] sm:$0xff]  ;;  %v435_v50 = vld [vmem:[#allocation4 + $0x1d8] sm:$0xff]  ;;  %v4496_v52 = vpack.c.bf16 %v428_v33, %v424_v21  ;;  %v4502_v57 = vpack.c.bf16 %v430_v38, %v426_v34  ;;  %v432_v2 = vld [vmem:[#allocation4 + $0x1c0] sm:$0xff] }
  0x7c   : > { %3169 = vmatpush1.bf16.msra.mxu0 %v4467_v56  ;;  %v688_v15 = vrot.slane %v681_v9, %v4445_v26  ;;  %v439_v51 = vld [vmem:[#allocation4 + $0x1f8] sm:$0xff]  ;;  %v4504_v1 = vpack.c.bf16 %v437_v44, %v433_v43  ;;  %v434_v3 = vld [vmem:[#allocation4 + $0x1d0] sm:$0xff]  ;;  %v441_v8 = vld [vmem:[#allocation4 + $0x208] sm:$0xff] }
  0x7d   : > { %3297 = vmatpush1.bf16.msra.mxu1 %v4472_v58  ;;  %3171 = vmatprep.subr.bf16.mxu0 %v4474_v0  ;;  %v4507_v6 = vpack.c.bf16 %v439_v51, %v435_v50  ;;  %v438_v7 = vld [vmem:[#allocation4 + $0x1f0] sm:$0xff]  ;;  %v445_v9 = vld [vmem:[#allocation4 + $0x228] sm:$0xff]  ;;  %v443_v11 = vld [vmem:[#allocation4 + $0x218] sm:$0xff] }
  0x7e   : > { %3299 = vmatprep.subr.bf16.mxu1 %v4477_v5  ;;  %v4493_v45 = vsub.f32 %v4352_v13, %v688_v15  ;;  %v436_v13 = vld [vmem:[#allocation4 + $0x1e0] sm:$0xff]  ;;  %v447_v12 = vld [vmem:[#allocation4 + $0x238] sm:$0xff]  ;;  %v4514_v21 = vpack.c.bf16 %v438_v7, %v434_v3  ;;  %v4516_v33 = vpack.c.bf16 %v445_v9, %v441_v8  ;;  %v442_v43 = vld [vmem:[#allocation4 + $0x210] sm:$0xff] }
  0x7f   : > { %v4510_v15 = vpack.c.bf16 %v436_v13, %v432_v2  ;;  %v440_v34 = vld [vmem:[#allocation4 + $0x200] sm:$0xff]  ;;  %v4519_v44 = vpack.c.bf16 %v447_v12, %v443_v11  ;;  %v446_v50 = vld [vmem:[#allocation4 + $0x230] sm:$0xff]  ;;  %v449_v51 = vld [vmem:[#allocation4 + $0x248] sm:$0xff] }
  0x80   : > { %3173 = vmatpush1.bf16.msra.mxu0 %v4480_v14  ;;  %v699_v54 = vrot.slane %v4493_v45, %v4382_v41  ;;  %v444_v38 = vld [vmem:[#allocation4 + $0x220] sm:$0xff]  ;;  %v451_v2 = vld [vmem:[#allocation4 + $0x258] sm:$0xff]  ;;  %v4526_v3 = vpack.c.bf16 %v446_v50, %v442_v43  ;;  %v450_v11 = vld [vmem:[#allocation4 + $0x250] sm:$0xff] }
  0x81   : > { %3301 = vmatpush1.bf16.msra.mxu1 %v4485_v17  ;;  %3175 = vmatprep.subr.bf16.mxu0 %v4487_v20  ;;  %v455_v13 = vld [vmem:[#allocation4 + $0x278] sm:$0xff]  ;;  %v4522_v18 = vpack.c.bf16 %v444_v38, %v440_v34  ;;  %v448_v8 = vld [vmem:[#allocation4 + $0x240] sm:$0xff]  ;;  %v454_v26 = vld [vmem:[#allocation4 + $0x270] sm:$0xff] }
  0x82   : > { %3303 = vmatprep.subr.bf16.mxu1 %v4490_v37  ;;  %776 = vmatprep.mubr.f32.mxu0 %v699_v54  ;;  %v452_v9 = vld [vmem:[#allocation4 + $0x260] sm:$0xff]  ;;  %v4531_v12 = vpack.c.bf16 %v455_v13, %v451_v2  ;;  %v457_v41 = vld [vmem:[#allocation4 + $0x288] sm:$0xff]  ;;  %v459_v34 = vld [vmem:[#allocation4 + $0x298] sm:$0xff]  ;;  %v4538_v43 = vpack.c.bf16 %v454_v26, %v450_v11 }
  0x83   : > { %918 = vmatprep.mubr.f32.mxu1 %v699_v54  ;;  %v453_v54 = vld [vmem:[#allocation4 + $0x268] sm:$0xff]  ;;  %v463_v38 = vld [vmem:[#allocation4 + $0x2b8] sm:$0xff]  ;;  %v4534_v60 = vpack.c.bf16 %v452_v9, %v448_v8  ;;  %v458_v2 = vld [vmem:[#allocation4 + $0x290] sm:$0xff] }
  0x84   : > { %3177 = vmatpush1.bf16.msra.mxu0 %v4496_v52  ;;  %v4528_v7 = vpack.c.bf16 %v453_v54, %v449_v51  ;;  %v461_v61 = vld [vmem:[#allocation4 + $0x2a8] sm:$0xff]  ;;  %6781 = vst [vmem:[#allocation27_spill] sm:$0xff] %v4538_v43  ;;  %v456_v51 = vld [vmem:[#allocation4 + $0x280] sm:$0xff]  ;;  %v4543_v13 = vpack.c.bf16 %v463_v38, %v459_v34  ;;  %v462_v59 = vld [vmem:[#allocation4 + $0x2b0] sm:$0xff] }
  0x85   : > { %3305 = vmatpush1.bf16.msra.mxu1 %v4502_v57  ;;  %3179 = vmatprep.subr.bf16.mxu0 %v4504_v1  ;;  %6780 = vst [vmem:[#allocation26_spill] sm:$0xff] %v4534_v60  ;;  %v4540_v50 = vpack.c.bf16 %v461_v61, %v457_v41  ;;  %v460_v54 = vld [vmem:[#allocation4 + $0x2a0] sm:$0xff]  ;;  %v465_v53 = vld [vmem:[#allocation4 + $0x2c8] sm:$0xff]  ;;  %v467_v8 = vld [vmem:[#allocation4 + $0x2d8] sm:$0xff]  ;;  %v4550_v41 = vpack.c.bf16 %v462_v59, %v458_v2 }
  0x86   : > { %3307 = vmatprep.subr.bf16.mxu1 %v4507_v6  ;;  %6783 = vst [vmem:[#allocation29_spill] sm:$0xff] %v4543_v13  ;;  %v469_v28 = vld [vmem:[#allocation4 + $0x2e8] sm:$0xff]  ;;  %v471_v9 = vld [vmem:[#allocation4 + $0x2f8] sm:$0xff]  ;;  %v4546_v25 = vpack.c.bf16 %v460_v54, %v456_v51  ;;  %v464_v26 = vld [vmem:[#allocation4 + $0x2c0] sm:$0xff] }
  0x87   : > { %6782 = vst [vmem:[#allocation28_spill] sm:$0xff] %v4540_v50  ;;  %6785 = vst [vmem:[#allocation31_spill] sm:$0xff] %v4550_v41  ;;  %v4552_v61 = vpack.c.bf16 %v469_v28, %v465_v53  ;;  %v468_v11 = vld [vmem:[#allocation4 + $0x2e0] sm:$0xff]  ;;  %v466_v34 = vld [vmem:[#allocation4 + $0x2d0] sm:$0xff]  ;;  %v4555_v38 = vpack.c.bf16 %v471_v9, %v467_v8 }
  0x88   : > { %3181 = vmatpush1.bf16.msra.mxu0 %v4510_v15  ;;  %6784 = vst [vmem:[#allocation30_spill] sm:$0xff] %v4546_v25  ;;  %v470_v29 = vld [vmem:[#allocation4 + $0x2f0] sm:$0xff]  ;;  %v473_v16 = vld [vmem:[#allocation4 + $0x308] sm:$0xff]  ;;  %v475_v51 = vld [vmem:[#allocation4 + $0x318] sm:$0xff] }
  0x89   : > { %3309 = vmatpush1.bf16.msra.mxu1 %v4514_v21  ;;  %3183 = vmatprep.subr.bf16.mxu0 %v4516_v33  ;;  %6786 = vst [vmem:[#allocation32_spill] sm:$0xff] %v4552_v61  ;;  %6787 = vst [vmem:[#allocation33_spill] sm:$0xff] %v4555_v38  ;;  %v479_v54 = vld [vmem:[#allocation4 + $0x338] sm:$0xff]  ;;  %v4562_v28 = vpack.c.bf16 %v470_v29, %v466_v34  ;;  %v472_v59 = vld [vmem:[#allocation4 + $0x300] sm:$0xff] }
  0x8a   : > { %3311 = vmatprep.subr.bf16.mxu1 %v4519_v44  ;;  %v476_v2 = vld [vmem:[#allocation4 + $0x320] sm:$0xff]  ;;  %v474_v8 = vld [vmem:[#allocation4 + $0x310] sm:$0xff]  ;;  %v4567_v9 = vpack.c.bf16 %v479_v54, %v475_v51 }
  0x8b   : > { %6789 = vst [vmem:[#allocation35_spill] sm:$0xff] %v4562_v28  ;;  %v480_v29 = vld [vmem:[#allocation4 + $0x340] sm:$0xff]  ;;  %v482_v51 = vld [vmem:[#allocation4 + $0x350] sm:$0xff] }
  0x8c   : > { %3185 = vmatpush1.bf16.msra.mxu0 %v4522_v18  ;;  %6791 = vst [vmem:[#allocation37_spill] sm:$0xff] %v4567_v9  ;;  %v484_v34 = vld [vmem:[#allocation4 + $0x360] sm:$0xff] }
  0x8d   : > { %3313 = vmatpush1.bf16.msra.mxu1 %v4526_v3  ;;  %3187 = vmatprep.subr.bf16.mxu0 %v4528_v7 }
  0x8e   : > { %3315 = vmatprep.subr.bf16.mxu1 %v4531_v12 }
  0x90   : > { %3189 = vmatpush1.bf16.msra.mxu0 %v4534_v60  ;;  %v477_v60 = vld [vmem:[#allocation4 + $0x328] sm:$0xff] }
  0x91   : > { %3317 = vmatpush1.bf16.msra.mxu1 %v4538_v43  ;;  %3191 = vmatprep.subr.bf16.mxu0 %v4540_v50  ;;  %v4558_v43 = vpack.c.bf16 %v468_v11, %v464_v26  ;;  %v4564_v53 = vpack.c.bf16 %v477_v60, %v473_v16  ;;  %v481_v50 = vld [vmem:[#allocation4 + $0x348] sm:$0xff]  ;;  %v483_v26 = vld [vmem:[#allocation4 + $0x358] sm:$0xff] }
  0x92   : > { %3319 = vmatprep.subr.bf16.mxu1 %v4543_v13  ;;  %v478_v13 = vld [vmem:[#allocation4 + $0x330] sm:$0xff]  ;;  %v487_v11 = vld [vmem:[#allocation4 + $0x378] sm:$0xff] }
  0x93   : > { %6788 = vst [vmem:[#allocation34_spill] sm:$0xff] %v4558_v43  ;;  %6790 = vst [vmem:[#allocation36_spill] sm:$0xff] %v4564_v53  ;;  %v4574_v60 = vpack.c.bf16 %v478_v13, %v474_v8  ;;  %v4579_v54 = vpack.c.bf16 %v487_v11, %v483_v26  ;;  %v488_v13 = vld [vmem:[#allocation4 + $0x380] sm:$0xff]  ;;  %v490_v26 = vld [vmem:[#allocation4 + $0x390] sm:$0xff] }
  0x94   : > { %3193 = vmatpush1.bf16.msra.mxu0 %v4546_v25  ;;  %v485_v25 = vld [vmem:[#allocation4 + $0x368] sm:$0xff]  ;;  %v492_v8 = vld [vmem:[#allocation4 + $0x3a0] sm:$0xff] }
  0x95   : > { %3321 = vmatpush1.bf16.msra.mxu1 %v4550_v41  ;;  %3195 = vmatprep.subr.bf16.mxu0 %v4552_v61  ;;  %v4570_v41 = vpack.c.bf16 %v476_v2, %v472_v59  ;;  %6793 = vst [vmem:[#allocation39_spill] sm:$0xff] %v4574_v60  ;;  %v4576_v16 = vpack.c.bf16 %v485_v25, %v481_v50  ;;  %6795 = vst [vmem:[#allocation41_spill] sm:$0xff] %v4579_v54  ;;  %v489_v61 = vld [vmem:[#allocation4 + $0x388] sm:$0xff]  ;;  %v491_v59 = vld [vmem:[#allocation4 + $0x398] sm:$0xff] }
  0x96   : > { %3323 = vmatprep.subr.bf16.mxu1 %v4555_v38  ;;  %v486_v38 = vld [vmem:[#allocation4 + $0x370] sm:$0xff]  ;;  %v495_v2 = vld [vmem:[#allocation4 + $0x3b8] sm:$0xff] }
  0x97   : > { %6792 = vst [vmem:[#allocation38_spill] sm:$0xff] %v4570_v41  ;;  %6794 = vst [vmem:[#allocation40_spill] sm:$0xff] %v4576_v16  ;;  %v4586_v25 = vpack.c.bf16 %v486_v38, %v482_v51  ;;  %v4591_v11 = vpack.c.bf16 %v495_v2, %v491_v59  ;;  %v496_v38 = vld [vmem:[#allocation4 + $0x3c0] sm:$0xff]  ;;  %v498_v59 = vld [vmem:[#allocation4 + $0x3d0] sm:$0xff] }
  0x98   : > { %3197 = vmatpush1.bf16.msra.mxu0 %v4558_v43  ;;  %v493_v43 = vld [vmem:[#allocation4 + $0x3a8] sm:$0xff]  ;;  %v500_v51 = vld [vmem:[#allocation4 + $0x3e0] sm:$0xff] }
  0x99   : > { %3325 = vmatpush1.bf16.msra.mxu1 %v4562_v28  ;;  %3199 = vmatprep.subr.bf16.mxu0 %v4564_v53  ;;  %v4582_v28 = vpack.c.bf16 %v484_v34, %v480_v29  ;;  %6797 = vst [vmem:[#allocation43_spill] sm:$0xff] %v4586_v25  ;;  %v4588_v50 = vpack.c.bf16 %v493_v43, %v489_v61  ;;  %6799 = vst [vmem:[#allocation45_spill] sm:$0xff] %v4591_v11  ;;  %v497_v53 = vld [vmem:[#allocation4 + $0x3c8] sm:$0xff]  ;;  %v499_v29 = vld [vmem:[#allocation4 + $0x3d8] sm:$0xff] }
  0x9a   : > { %3327 = vmatprep.subr.bf16.mxu1 %v4567_v9  ;;  %v494_v9 = vld [vmem:[#allocation4 + $0x3b0] sm:$0xff]  ;;  %v503_v34 = vld [vmem:[#allocation4 + $0x3f8] sm:$0xff] }
  0x9b   : > { %6796 = vst [vmem:[#allocation42_spill] sm:$0xff] %v4582_v28  ;;  %6798 = vst [vmem:[#allocation44_spill] sm:$0xff] %v4588_v50  ;;  %v4598_v43 = vpack.c.bf16 %v494_v9, %v490_v26  ;;  %v4603_v2 = vpack.c.bf16 %v503_v34, %v499_v29  ;;  %v504_v9 = vld [vmem:[#allocation4 + $0x400] sm:$0xff]  ;;  %v506_v29 = vld [vmem:[#allocation4 + $0x410] sm:$0xff] }
  0x9c   : > { %3201 = vmatpush1.bf16.msra.mxu0 %v4570_v41  ;;  %v501_v41 = vld [vmem:[#allocation4 + $0x3e8] sm:$0xff]  ;;  %v508_v26 = vld [vmem:[#allocation4 + $0x420] sm:$0xff] }
  0x9d   : > { %3329 = vmatpush1.bf16.msra.mxu1 %v4574_v60  ;;  %3203 = vmatprep.subr.bf16.mxu0 %v4576_v16  ;;  %v4594_v60 = vpack.c.bf16 %v492_v8, %v488_v13  ;;  %6801 = vst [vmem:[#allocation47_spill] sm:$0xff] %v4598_v43  ;;  %v4600_v61 = vpack.c.bf16 %v501_v41, %v497_v53  ;;  %6803 = vst [vmem:[#allocation49_spill] sm:$0xff] %v4603_v2  ;;  %v505_v16 = vld [vmem:[#allocation4 + $0x408] sm:$0xff]  ;;  %v507_v13 = vld [vmem:[#allocation4 + $0x418] sm:$0xff] }
  0x9e   : > { %3331 = vmatprep.subr.bf16.mxu1 %v4579_v54  ;;  %v502_v54 = vld [vmem:[#allocation4 + $0x3f0] sm:$0xff]  ;;  %v511_v8 = vld [vmem:[#allocation4 + $0x438] sm:$0xff] }
  0x9f   : > { %6800 = vst [vmem:[#allocation46_spill] sm:$0xff] %v4594_v60  ;;  %6802 = vst [vmem:[#allocation48_spill] sm:$0xff] %v4600_v61  ;;  %v4610_v41 = vpack.c.bf16 %v502_v54, %v498_v59  ;;  %v4615_v34 = vpack.c.bf16 %v511_v8, %v507_v13  ;;  %v4620_v54 = vpack.c.bf16 %v508_v26, %v504_v9  ;;  %v512_v59 = vld [vmem:[#allocation4 + $0x440] sm:$0xff]  ;;  %v514_v8 = vld [vmem:[#allocation4 + $0x450] sm:$0xff] }
  0xa0   : > { %3205 = vmatpush1.bf16.msra.mxu0 %v4582_v28  ;;  %v509_v28 = vld [vmem:[#allocation4 + $0x428] sm:$0xff]  ;;  %v516_v13 = vld [vmem:[#allocation4 + $0x460] sm:$0xff]  ;;  %v707_v9 = vrot.slane %v4493_v45, %v4391_v47  ;;  %v523_v26 = vld [vmem:[#allocation4 + $0x498] sm:$0xff] }
  0xa1   : > { %3333 = vmatpush1.bf16.msra.mxu1 %v4586_v25  ;;  %3207 = vmatprep.subr.bf16.mxu0 %v4588_v50  ;;  %v4606_v25 = vpack.c.bf16 %v500_v51, %v496_v38  ;;  %v4612_v53 = vpack.c.bf16 %v509_v28, %v505_v16  ;;  %6806 = vst [vmem:[#allocation52_spill] sm:$0xff] %v4615_v34  ;;  %v513_v50 = vld [vmem:[#allocation4 + $0x448] sm:$0xff]  ;;  %v515_v51 = vld [vmem:[#allocation4 + $0x458] sm:$0xff]  ;;  %6807 = vst [vmem:[#allocation53_spill] sm:$0xff] %v4620_v54 }
  0xa2   : > { %3335 = vmatprep.subr.bf16.mxu1 %v4591_v11  ;;  %v510_v11 = vld [vmem:[#allocation4 + $0x430] sm:$0xff]  ;;  %v695_v38 = vrot.slane %v4493_v45, %v4379_v40 }
  0xa3   : > { %6804 = vst [vmem:[#allocation50_spill] sm:$0xff] %v4606_v25  ;;  %6805 = vst [vmem:[#allocation51_spill] sm:$0xff] %v4612_v53  ;;  %v4624_v28 = vpack.c.bf16 %v510_v11, %v506_v29  ;;  %v524_v29 = vld [vmem:[#allocation4 + $0x4a0] sm:$0xff] }
  0xa4   : > { %3209 = vmatpush1.bf16.msra.mxu0 %v4594_v60  ;;  %v517_v60 = vld [vmem:[#allocation4 + $0x468] sm:$0xff] }
  0xa5   : > { %3337 = vmatpush1.bf16.msra.mxu1 %v4598_v43  ;;  %3211 = vmatprep.subr.bf16.mxu0 %v4600_v61  ;;  %v519_v43 = vld [vmem:[#allocation4 + $0x478] sm:$0xff]  ;;  %v4626_v16 = vpack.c.bf16 %v517_v60, %v513_v50  ;;  %v521_v61 = vld [vmem:[#allocation4 + $0x488] sm:$0xff]  ;;  %v4634_v60 = vpack.c.bf16 %v516_v13, %v512_v59 }
  0xa6   : > { %3339 = vmatprep.subr.bf16.mxu1 %v4603_v2  ;;  %v4629_v40 = vpack.c.bf16 %v519_v43, %v515_v51  ;;  %v518_v2 = vld [vmem:[#allocation4 + $0x470] sm:$0xff]  ;;  %v520_v43 = vld [vmem:[#allocation4 + $0x480] sm:$0xff]  ;;  %v531_v59 = vld [vmem:[#allocation4 + $0x4d8] sm:$0xff] }
  0xa7   : > { %6808 = vst [vmem:[#allocation54_spill] sm:$0xff] %v4626_v16  ;;  %6810 = vst [vmem:[#allocation56_spill] sm:$0xff] %v4634_v60  ;;  %v4638_v50 = vpack.c.bf16 %v518_v2, %v514_v8  ;;  %v522_v51 = vld [vmem:[#allocation4 + $0x490] sm:$0xff]  ;;  %v535_v13 = vld [vmem:[#allocation4 + $0x4f8] sm:$0xff]  ;;  %v4646_v2 = vpack.c.bf16 %v524_v29, %v520_v43 }
  0xa8   : > { %3213 = vmatpush1.bf16.msra.mxu0 %v4606_v25  ;;  %6809 = vst [vmem:[#allocation55_spill] sm:$0xff] %v4629_v40  ;;  %v525_v25 = vld [vmem:[#allocation4 + $0x4a8] sm:$0xff]  ;;  %v532_v8 = vld [vmem:[#allocation4 + $0x4e0] sm:$0xff]  ;;  %v539_v43 = vld [vmem:[#allocation4 + $0x518] sm:$0xff] }
  0xa9   : > { %3341 = vmatpush1.bf16.msra.mxu1 %v4610_v41  ;;  %3215 = vmatprep.subr.bf16.mxu0 %v4612_v53  ;;  %v527_v53 = vld [vmem:[#allocation4 + $0x4b8] sm:$0xff]  ;;  %6811 = vst [vmem:[#allocation57_spill] sm:$0xff] %v4638_v50  ;;  %v4640_v11 = vpack.c.bf16 %v525_v25, %v521_v61  ;;  %6814 = vst [vmem:[#allocation60_spill] sm:$0xff] %v4646_v2 }
  0xaa   : > { %3343 = vmatprep.subr.bf16.mxu1 %v4615_v34  ;;  %v4643_v47 = vpack.c.bf16 %v527_v53, %v523_v26  ;;  %v526_v34 = vld [vmem:[#allocation4 + $0x4b0] sm:$0xff]  ;;  %v528_v53 = vld [vmem:[#allocation4 + $0x4c0] sm:$0xff]  ;;  %v543_v29 = vld [vmem:[#allocation4 + $0x538] sm:$0xff] }
  0xab   : > { %777 = vmatmul.mubr.f32.vlgmr.msra.gmra.mrb[0].mxu0 %v695_v38  ;;  %6812 = vst [vmem:[#allocation58_spill] sm:$0xff] %v4640_v11  ;;  %v4650_v25 = vpack.c.bf16 %v526_v34, %v522_v51  ;;  %v530_v26 = vld [vmem:[#allocation4 + $0x4d0] sm:$0xff]  ;;  %v536_v51 = vld [vmem:[#allocation4 + $0x500] sm:$0xff] }
  0xac   : > { %3217 = vmatpush1.bf16.msra.mxu0 %v4620_v54  ;;  %919 = vmatmul.mubr.f32.vlgmr.msra.gmra.mrb[0].mxu1 %v695_v38  ;;  %6813 = vst [vmem:[#allocation59_spill] sm:$0xff] %v4643_v47  ;;  %v529_v54 = vld [vmem:[#allocation4 + $0x4c8] sm:$0xff] }
  0xad   : > { %3345 = vmatpush1.bf16.msra.mxu1 %v4624_v28  ;;  %3219 = vmatprep.subr.bf16.mxu0 %v4626_v16  ;;  %v533_v38 = vld [vmem:[#allocation4 + $0x4e8] sm:$0xff]  ;;  %6815 = vst [vmem:[#allocation61_spill] sm:$0xff] %v4650_v25 }
  0xae   : > { %3347 = vmatprep.subr.bf16.mxu1 %v4629_v40  ;;  %847 = vmatprep.mubr.f32.mxu0 %v707_v9  ;;  %v4652_v61 = vpack.c.bf16 %v533_v38, %v529_v54  ;;  %v4655_v40 = vpack.c.bf16 %v535_v13, %v531_v59  ;;  %v537_v16 = vld [vmem:[#allocation4 + $0x508] sm:$0xff]  ;;  %v540_v38 = vld [vmem:[#allocation4 + $0x520] sm:$0xff]  ;;  %v538_v59 = vld [vmem:[#allocation4 + $0x510] sm:$0xff]  ;;  %v4667_v13 = vpack.c.bf16 %v543_v29, %v539_v43 }
  0xaf   : > { %989 = vmatprep.mubr.f32.mxu1 %v707_v9  ;;  %v534_v9 = vld [vmem:[#allocation4 + $0x4f0] sm:$0xff] }
  0xb0   : > { %3221 = vmatpush1.bf16.msra.mxu0 %v4634_v60  ;;  %6816 = vst [vmem:[#allocation62_spill] sm:$0xff] %v4652_v61  ;;  %6817 = vst [vmem:[#allocation63_spill] sm:$0xff] %v4655_v40  ;;  %v541_v60 = vld [vmem:[#allocation4 + $0x528] sm:$0xff]  ;;  %v4662_v34 = vpack.c.bf16 %v534_v9, %v530_v26  ;;  %v544_v26 = vld [vmem:[#allocation4 + $0x540] sm:$0xff] }
  0xb1   : > { %3349 = vmatpush1.bf16.msra.mxu1 %v4638_v50  ;;  %3223 = vmatprep.subr.bf16.mxu0 %v4640_v11  ;;  %v4658_v50 = vpack.c.bf16 %v532_v8, %v528_v53  ;;  %v4664_v54 = vpack.c.bf16 %v541_v60, %v537_v16  ;;  %6821 = vst [vmem:[#allocation67_spill] sm:$0xff] %v4667_v13  ;;  %v545_v11 = vld [vmem:[#allocation4 + $0x548] sm:$0xff]  ;;  %v547_v53 = vld [vmem:[#allocation4 + $0x558] sm:$0xff]  ;;  %v548_v9 = vld [vmem:[#allocation4 + $0x560] sm:$0xff] }
  0xb2   : > { %3351 = vmatprep.subr.bf16.mxu1 %v4643_v47  ;;  %6819 = vst [vmem:[#allocation65_spill] sm:$0xff] %v4662_v34  ;;  %v542_v47 = vld [vmem:[#allocation4 + $0x530] sm:$0xff]  ;;  %v551_v8 = vld [vmem:[#allocation4 + $0x578] sm:$0xff] }
  0xb3   : > { %6818 = vst [vmem:[#allocation64_spill] sm:$0xff] %v4658_v50  ;;  %6820 = vst [vmem:[#allocation66_spill] sm:$0xff] %v4664_v54  ;;  %v4674_v16 = vpack.c.bf16 %v542_v47, %v538_v59  ;;  %v546_v43 = vld [vmem:[#allocation4 + $0x550] sm:$0xff]  ;;  %v4679_v29 = vpack.c.bf16 %v551_v8, %v547_v53  ;;  %v556_v59 = vld [vmem:[#allocation4 + $0x5a0] sm:$0xff] }
  0xb4   : > { %3225 = vmatpush1.bf16.msra.mxu0 %v4646_v2  ;;  %v549_v2 = vld [vmem:[#allocation4 + $0x568] sm:$0xff]  ;;  %v554_v53 = vld [vmem:[#allocation4 + $0x590] sm:$0xff] }
  0xb5   : > { %3353 = vmatpush1.bf16.msra.mxu1 %v4650_v25  ;;  %3227 = vmatprep.subr.bf16.mxu0 %v4652_v61  ;;  %v4670_v25 = vpack.c.bf16 %v540_v38, %v536_v51  ;;  %6823 = vst [vmem:[#allocation69_spill] sm:$0xff] %v4674_v16  ;;  %v4676_v60 = vpack.c.bf16 %v549_v2, %v545_v11  ;;  %6825 = vst [vmem:[#allocation71_spill] sm:$0xff] %v4679_v29  ;;  %v553_v61 = vld [vmem:[#allocation4 + $0x588] sm:$0xff]  ;;  %v555_v51 = vld [vmem:[#allocation4 + $0x598] sm:$0xff] }
  0xb6   : > { %3355 = vmatprep.subr.bf16.mxu1 %v4655_v40  ;;  %v550_v40 = vld [vmem:[#allocation4 + $0x570] sm:$0xff]  ;;  %v559_v38 = vld [vmem:[#allocation4 + $0x5b8] sm:$0xff]  ;;  %v552_v2 = vld [vmem:[#allocation4 + $0x580] sm:$0xff] }
  0xb7   : > { %6822 = vst [vmem:[#allocation68_spill] sm:$0xff] %v4670_v25  ;;  %6824 = vst [vmem:[#allocation70_spill] sm:$0xff] %v4676_v60  ;;  %v4686_v47 = vpack.c.bf16 %v550_v40, %v546_v43  ;;  %v4691_v8 = vpack.c.bf16 %v559_v38, %v555_v51  ;;  %v564_v43 = vld [vmem:[#allocation4 + $0x5e0] sm:$0xff]  ;;  %v562_v51 = vld [vmem:[#allocation4 + $0x5d0] sm:$0xff] }
  0xb8   : > { %3229 = vmatpush1.bf16.msra.mxu0 %v4658_v50  ;;  %v557_v50 = vld [vmem:[#allocation4 + $0x5a8] sm:$0xff] }
  0xb9   : > { %3357 = vmatpush1.bf16.msra.mxu1 %v4662_v34  ;;  %3231 = vmatprep.subr.bf16.mxu0 %v4664_v54  ;;  %v4682_v34 = vpack.c.bf16 %v548_v9, %v544_v26  ;;  %6827 = vst [vmem:[#allocation73_spill] sm:$0xff] %v4686_v47  ;;  %v4688_v11 = vpack.c.bf16 %v557_v50, %v553_v61  ;;  %6829 = vst [vmem:[#allocation75_spill] sm:$0xff] %v4691_v8  ;;  %v561_v54 = vld [vmem:[#allocation4 + $0x5c8] sm:$0xff]  ;;  %v563_v26 = vld [vmem:[#allocation4 + $0x5d8] sm:$0xff] }
  0xba   : > { %3359 = vmatprep.subr.bf16.mxu1 %v4667_v13  ;;  %v558_v13 = vld [vmem:[#allocation4 + $0x5b0] sm:$0xff]  ;;  %v567_v9 = vld [vmem:[#allocation4 + $0x5f8] sm:$0xff]  ;;  %v560_v61 = vld [vmem:[#allocation4 + $0x5c0] sm:$0xff] }
  0xbb   : > { %6826 = vst [vmem:[#allocation72_spill] sm:$0xff] %v4682_v34  ;;  %6828 = vst [vmem:[#allocation74_spill] sm:$0xff] %v4688_v11  ;;  %v4698_v40 = vpack.c.bf16 %v558_v13, %v554_v53  ;;  %v4703_v38 = vpack.c.bf16 %v567_v9, %v563_v26  ;;  %v568_v13 = vld [vmem:[#allocation4 + $0x600] sm:$0xff]  ;;  %v570_v26 = vld [vmem:[#allocation4 + $0x610] sm:$0xff] }
  0xbc   : > { %3233 = vmatpush1.bf16.msra.mxu0 %v4670_v25  ;;  %v565_v25 = vld [vmem:[#allocation4 + $0x5e8] sm:$0xff]  ;;  %v572_v53 = vld [vmem:[#allocation4 + $0x620] sm:$0xff] }
  0xbd   : > { %3361 = vmatpush1.bf16.msra.mxu1 %v4674_v16  ;;  %3235 = vmatprep.subr.bf16.mxu0 %v4676_v60  ;;  %v4694_v16 = vpack.c.bf16 %v556_v59, %v552_v2  ;;  %6831 = vst [vmem:[#allocation77_spill] sm:$0xff] %v4698_v40  ;;  %v4700_v50 = vpack.c.bf16 %v565_v25, %v561_v54  ;;  %6833 = vst [vmem:[#allocation79_spill] sm:$0xff] %v4703_v38  ;;  %v569_v60 = vld [vmem:[#allocation4 + $0x608] sm:$0xff]  ;;  %v571_v2 = vld [vmem:[#allocation4 + $0x618] sm:$0xff] }
  0xbe   : > { %3363 = vmatprep.subr.bf16.mxu1 %v4679_v29  ;;  %v566_v29 = vld [vmem:[#allocation4 + $0x5f0] sm:$0xff]  ;;  %v575_v59 = vld [vmem:[#allocation4 + $0x638] sm:$0xff] }
  0xbf   : > { %6830 = vst [vmem:[#allocation76_spill] sm:$0xff] %v4694_v16  ;;  %6832 = vst [vmem:[#allocation78_spill] sm:$0xff] %v4700_v50  ;;  %v4710_v25 = vpack.c.bf16 %v566_v29, %v562_v51  ;;  %v4715_v9 = vpack.c.bf16 %v575_v59, %v571_v2  ;;  %v576_v29 = vld [vmem:[#allocation4 + $0x640] sm:$0xff]  ;;  %v578_v2 = vld [vmem:[#allocation4 + $0x650] sm:$0xff] }
  0xc0   : > { %3237 = vmatpush1.bf16.msra.mxu0 %v4682_v34  ;;  %v573_v34 = vld [vmem:[#allocation4 + $0x628] sm:$0xff]  ;;  %v580_v51 = vld [vmem:[#allocation4 + $0x660] sm:$0xff] }
  0xc1   : > { %3365 = vmatpush1.bf16.msra.mxu1 %v4686_v47  ;;  %3239 = vmatprep.subr.bf16.mxu0 %v4688_v11  ;;  %v4706_v47 = vpack.c.bf16 %v564_v43, %v560_v61  ;;  %6835 = vst [vmem:[#allocation81_spill] sm:$0xff] %v4710_v25  ;;  %v4712_v54 = vpack.c.bf16 %v573_v34, %v569_v60  ;;  %6837 = vst [vmem:[#allocation83_spill] sm:$0xff] %v4715_v9  ;;  %v577_v11 = vld [vmem:[#allocation4 + $0x648] sm:$0xff]  ;;  %v579_v61 = vld [vmem:[#allocation4 + $0x658] sm:$0xff] }
  0xc2   : > { %3367 = vmatprep.subr.bf16.mxu1 %v4691_v8  ;;  %v574_v8 = vld [vmem:[#allocation4 + $0x630] sm:$0xff]  ;;  %v583_v43 = vld [vmem:[#allocation4 + $0x678] sm:$0xff] }
  0xc3   : > { %6834 = vst [vmem:[#allocation80_spill] sm:$0xff] %v4706_v47  ;;  %6836 = vst [vmem:[#allocation82_spill] sm:$0xff] %v4712_v54  ;;  %v4722_v34 = vpack.c.bf16 %v574_v8, %v570_v26  ;;  %v4727_v59 = vpack.c.bf16 %v583_v43, %v579_v61  ;;  %v584_v8 = vld [vmem:[#allocation4 + $0x680] sm:$0xff]  ;;  %v586_v61 = vld [vmem:[#allocation4 + $0x690] sm:$0xff] }
  0xc4   : > { %3241 = vmatpush1.bf16.msra.mxu0 %v4694_v16  ;;  %v581_v16 = vld [vmem:[#allocation4 + $0x668] sm:$0xff]  ;;  %v588_v26 = vld [vmem:[#allocation4 + $0x6a0] sm:$0xff] }
  0xc5   : > { %3369 = vmatpush1.bf16.msra.mxu1 %v4698_v40  ;;  %3243 = vmatprep.subr.bf16.mxu0 %v4700_v50  ;;  %v4718_v40 = vpack.c.bf16 %v572_v53, %v568_v13  ;;  %6839 = vst [vmem:[#allocation85_spill] sm:$0xff] %v4722_v34  ;;  %v4724_v60 = vpack.c.bf16 %v581_v16, %v577_v11  ;;  %6841 = vst [vmem:[#allocation87_spill] sm:$0xff] %v4727_v59  ;;  %v585_v50 = vld [vmem:[#allocation4 + $0x688] sm:$0xff]  ;;  %v587_v13 = vld [vmem:[#allocation4 + $0x698] sm:$0xff] }
  0xc6   : > { %3371 = vmatprep.subr.bf16.mxu1 %v4703_v38  ;;  %v582_v38 = vld [vmem:[#allocation4 + $0x670] sm:$0xff]  ;;  %v591_v53 = vld [vmem:[#allocation4 + $0x6b8] sm:$0xff] }
  0xc7   : > { %6838 = vst [vmem:[#allocation84_spill] sm:$0xff] %v4718_v40  ;;  %6840 = vst [vmem:[#allocation86_spill] sm:$0xff] %v4724_v60  ;;  %v4734_v16 = vpack.c.bf16 %v582_v38, %v578_v2  ;;  %v4739_v43 = vpack.c.bf16 %v591_v53, %v587_v13  ;;  %v592_v38 = vld [vmem:[#allocation4 + $0x6c0] sm:$0xff]  ;;  %v594_v13 = vld [vmem:[#allocation4 + $0x6d0] sm:$0xff] }
  0xc8   : > { %3245 = vmatpush1.bf16.msra.mxu0 %v4706_v47  ;;  %v589_v47 = vld [vmem:[#allocation4 + $0x6a8] sm:$0xff]  ;;  %v596_v2 = vld [vmem:[#allocation4 + $0x6e0] sm:$0xff] }
  0xc9   : > { %3373 = vmatpush1.bf16.msra.mxu1 %v4710_v25  ;;  %3247 = vmatprep.subr.bf16.mxu0 %v4712_v54  ;;  %v4730_v25 = vpack.c.bf16 %v580_v51, %v576_v29  ;;  %6843 = vst [vmem:[#allocation89_spill] sm:$0xff] %v4734_v16  ;;  %v4736_v11 = vpack.c.bf16 %v589_v47, %v585_v50  ;;  %6845 = vst [vmem:[#allocation91_spill] sm:$0xff] %v4739_v43  ;;  %v593_v54 = vld [vmem:[#allocation4 + $0x6c8] sm:$0xff]  ;;  %v595_v29 = vld [vmem:[#allocation4 + $0x6d8] sm:$0xff] }
  0xca   : > { %3375 = vmatprep.subr.bf16.mxu1 %v4715_v9  ;;  %v590_v9 = vld [vmem:[#allocation4 + $0x6b0] sm:$0xff]  ;;  %v599_v51 = vld [vmem:[#allocation4 + $0x6f8] sm:$0xff] }
  0xcb   : > { %6842 = vst [vmem:[#allocation88_spill] sm:$0xff] %v4730_v25  ;;  %6844 = vst [vmem:[#allocation90_spill] sm:$0xff] %v4736_v11  ;;  %v4746_v47 = vpack.c.bf16 %v590_v9, %v586_v61  ;;  %v4751_v53 = vpack.c.bf16 %v599_v51, %v595_v29  ;;  %v600_v9 = vld [vmem:[#allocation4 + $0x700] sm:$0xff]  ;;  %v602_v29 = vld [vmem:[#allocation4 + $0x710] sm:$0xff] }
  0xcc   : > { %3249 = vmatpush1.bf16.msra.mxu0 %v4718_v40  ;;  %v597_v40 = vld [vmem:[#allocation4 + $0x6e8] sm:$0xff]  ;;  %v604_v61 = vld [vmem:[#allocation4 + $0x720] sm:$0xff] }
  0xcd   : > { %3377 = vmatpush1.bf16.msra.mxu1 %v4722_v34  ;;  %3251 = vmatprep.subr.bf16.mxu0 %v4724_v60  ;;  %v4742_v34 = vpack.c.bf16 %v588_v26, %v584_v8  ;;  %6847 = vst [vmem:[#allocation93_spill] sm:$0xff] %v4746_v47  ;;  %v4748_v50 = vpack.c.bf16 %v597_v40, %v593_v54  ;;  %6849 = vst [vmem:[#allocation95_spill] sm:$0xff] %v4751_v53  ;;  %v601_v60 = vld [vmem:[#allocation4 + $0x708] sm:$0xff]  ;;  %v603_v8 = vld [vmem:[#allocation4 + $0x718] sm:$0xff] }
  0xce   : > { %3379 = vmatprep.subr.bf16.mxu1 %v4727_v59  ;;  %v598_v59 = vld [vmem:[#allocation4 + $0x6f0] sm:$0xff]  ;;  %v607_v26 = vld [vmem:[#allocation4 + $0x738] sm:$0xff] }
  0xcf   : > { %6846 = vst [vmem:[#allocation92_spill] sm:$0xff] %v4742_v34  ;;  %6848 = vst [vmem:[#allocation94_spill] sm:$0xff] %v4748_v50  ;;  %v4758_v40 = vpack.c.bf16 %v598_v59, %v594_v13  ;;  %v4763_v51 = vpack.c.bf16 %v607_v26, %v603_v8  ;;  %v608_v59 = vld [vmem:[#allocation4 + $0x740] sm:$0xff]  ;;  %v610_v8 = vld [vmem:[#allocation4 + $0x750] sm:$0xff] }
  0xd0   : > { %3253 = vmatpush1.bf16.msra.mxu0 %v4730_v25  ;;  %v605_v25 = vld [vmem:[#allocation4 + $0x728] sm:$0xff]  ;;  %v612_v13 = vld [vmem:[#allocation4 + $0x760] sm:$0xff] }
  0xd1   : > { %3381 = vmatpush1.bf16.msra.mxu1 %v4734_v16  ;;  %3255 = vmatprep.subr.bf16.mxu0 %v4736_v11  ;;  %v4754_v16 = vpack.c.bf16 %v596_v2, %v592_v38  ;;  %6851 = vst [vmem:[#allocation97_spill] sm:$0xff] %v4758_v40  ;;  %v4760_v54 = vpack.c.bf16 %v605_v25, %v601_v60  ;;  %6853 = vst [vmem:[#allocation99_spill] sm:$0xff] %v4763_v51  ;;  %v609_v11 = vld [vmem:[#allocation4 + $0x748] sm:$0xff]  ;;  %v611_v38 = vld [vmem:[#allocation4 + $0x758] sm:$0xff] }
  0xd2   : > { %3383 = vmatprep.subr.bf16.mxu1 %v4739_v43  ;;  %v606_v43 = vld [vmem:[#allocation4 + $0x730] sm:$0xff]  ;;  %v615_v2 = vld [vmem:[#allocation4 + $0x778] sm:$0xff] }
  0xd3   : > { %6850 = vst [vmem:[#allocation96_spill] sm:$0xff] %v4754_v16  ;;  %6852 = vst [vmem:[#allocation98_spill] sm:$0xff] %v4760_v54  ;;  %v4770_v25 = vpack.c.bf16 %v606_v43, %v602_v29  ;;  %v4775_v26 = vpack.c.bf16 %v615_v2, %v611_v38  ;;  %v616_v43 = vld [vmem:[#allocation4 + $0x780] sm:$0xff]  ;;  %v618_v38 = vld [vmem:[#allocation4 + $0x790] sm:$0xff] }
  0xd4   : > { %3257 = vmatpush1.bf16.msra.mxu0 %v4742_v34  ;;  %v613_v34 = vld [vmem:[#allocation4 + $0x768] sm:$0xff]  ;;  %v620_v29 = vld [vmem:[#allocation4 + $0x7a0] sm:$0xff] }
  0xd5   : > { %3385 = vmatpush1.bf16.msra.mxu1 %v4746_v47  ;;  %3259 = vmatprep.subr.bf16.mxu0 %v4748_v50  ;;  %v4766_v47 = vpack.c.bf16 %v604_v61, %v600_v9  ;;  %6855 = vst [vmem:[#allocation101_spill] sm:$0xff] %v4770_v25  ;;  %v4772_v60 = vpack.c.bf16 %v613_v34, %v609_v11  ;;  %6856 = vst [vmem:[#allocation102_spill] sm:$0xff] %v4775_v26  ;;  %v617_v50 = vld [vmem:[#allocation4 + $0x788] sm:$0xff]  ;;  %v619_v9 = vld [vmem:[#allocation4 + $0x798] sm:$0xff] }
  0xd6   : > { %3387 = vmatprep.subr.bf16.mxu1 %v4751_v53  ;;  %v614_v53 = vld [vmem:[#allocation4 + $0x770] sm:$0xff]  ;;  %v623_v61 = vld [vmem:[#allocation4 + $0x7b8] sm:$0xff] }
  0xd7   : > { %6854 = vst [vmem:[#allocation100_spill] sm:$0xff] %v4766_v47  ;;  %v4782_v34 = vpack.c.bf16 %v614_v53, %v610_v8  ;;  %v4787_v2 = vpack.c.bf16 %v623_v61, %v619_v9  ;;  %v624_v53 = vld [vmem:[#allocation4 + $0x7c0] sm:$0xff]  ;;  %v626_v61 = vld [vmem:[#allocation4 + $0x7d0] sm:$0xff] }
  0xd8   : > { %3261 = vmatpush1.bf16.msra.mxu0 %v4754_v16  ;;  %v621_v16 = vld [vmem:[#allocation4 + $0x7a8] sm:$0xff]  ;;  %v628_v8 = vld [vmem:[#allocation4 + $0x7e0] sm:$0xff] }
  0xd9   : > { %3389 = vmatpush1.bf16.msra.mxu1 %v4758_v40  ;;  %3263 = vmatprep.subr.bf16.mxu0 %v4760_v54  ;;  %v4778_v40 = vpack.c.bf16 %v612_v13, %v608_v59  ;;  %v4784_v11 = vpack.c.bf16 %v621_v16, %v617_v50  ;;  %v625_v54 = vld [vmem:[#allocation4 + $0x7c8] sm:$0xff]  ;;  %v627_v59 = vld [vmem:[#allocation4 + $0x7d8] sm:$0xff] }
  0xda   : > { %3391 = vmatprep.subr.bf16.mxu1 %v4763_v51  ;;  %v622_v51 = vld [vmem:[#allocation4 + $0x7b0] sm:$0xff]  ;;  %v631_v13 = vld [vmem:[#allocation4 + $0x7f8] sm:$0xff] }
  0xdb   : > { %v4794_v16 = vpack.c.bf16 %v622_v51, %v618_v38  ;;  %v4799_v9 = vpack.c.bf16 %v631_v13, %v627_v59  ;;  %v6900_v38 = vld [vmem:[#allocation67_spill] sm:$0xff]  ;;  %v6901_v59 = vld [vmem:[#allocation68_spill] sm:$0xff]  ;;  %v6902_v13 = vld [vmem:[#allocation69_spill] sm:$0xff] }
  0xdc   : > { %3265 = vmatpush1.bf16.msra.mxu0 %v4766_v47  ;;  %v629_v47 = vld [vmem:[#allocation4 + $0x7e8] sm:$0xff] }
  0xdd   : > { %3393 = vmatpush1.bf16.msra.mxu1 %v4770_v25  ;;  %3267 = vmatprep.subr.bf16.mxu0 %v4772_v60  ;;  %v4790_v25 = vpack.c.bf16 %v620_v29, %v616_v43  ;;  %v4796_v50 = vpack.c.bf16 %v629_v47, %v625_v54  ;;  %v4802_v43 = vpack.c.bf16 %v628_v8, %v624_v53  ;;  %v375_v54 = vld [vmem:[#allocation2] sm:$0x1]  ;;  %v6899_v29 = vld [vmem:[#allocation66_spill] sm:$0xff]  ;;  %v6904_v8 = vld [vmem:[#allocation71_spill] sm:$0xff] }
  0xde   : > { %3395 = vmatprep.subr.bf16.mxu1 %v4775_v26  ;;  %v630_v26 = vld [vmem:[#allocation4 + $0x7f0] sm:$0xff]  ;;  %v703_v47 = vrot.slane %v4493_v45, %v4388_v46  ;;  %v4173_v45 = vmov 0   ;;  %v6903_v53 = vld [vmem:[#allocation70_spill] sm:$0xff] }
  0xdf   : > { %v4806_v51 = vpack.c.bf16 %v630_v26, %v626_v61  ;;  %4039 = vset.pattern.permute.xlu0 %v4173_v45  ;;  %v6898_v26 = vld [vmem:[#allocation65_spill] sm:$0xff]  ;;  %v6905_v61 = vld [vmem:[#allocation72_spill] sm:$0xff]  ;;  %v6908_v45 = vld [vmem:[#allocation75_spill] sm:$0xff] }
  0xe0   : > { %3269 = vmatpush1.bf16.msra.mxu0 %v4778_v40  ;;  %1282 = vperm.xlu0 %4039, %v375_v54   ;;  %v6907_v54 = vld [vmem:[#allocation74_spill] sm:$0xff] }
  0xe1   : > { %3397 = vmatpush1.bf16.msra.mxu1 %v4782_v34  ;;  %3271 = vmatprep.subr.bf16.mxu0 %v4784_v11 }
  0xe2   : > { %3399 = vmatprep.subr.bf16.mxu1 %v4787_v2 }
  0xe4   : > { %3273 = vmatpush1.bf16.msra.mxu0 %v4790_v25 }
  0xe5   : > { %3401 = vmatpush1.bf16.msra.mxu1 %v4794_v16  ;;  %3275 = vmatprep.subr.bf16.mxu0 %v4796_v50 }
  0xe6   : > { %3403 = vmatprep.subr.bf16.mxu1 %v4799_v9 }
  0xe8   : > { %3277 = vmatpush1.bf16.msra.mxu0 %v4802_v43 }
  0xe9   : > { %3405 = vmatpush1.bf16.msra.mxu1 %v4806_v51  ;;  %3407 = vmatprep.subr.bf16.mxu0 %v4358_v19  ;;  %v6857_v19 = vld [vmem:[#allocation26_spill] sm:$0xff] }
  0xea   : > { %3535 = vmatprep.subr.bf16.mxu1 %v4360_v23  ;;  %v6858_v23 = vld [vmem:[#allocation27_spill] sm:$0xff] }
  0xeb   : > { %848 = vmatmul.mubr.f32.vlgmr.msra.gmra.mrb[0].mxu0 %v703_v47 }
  0xec   : > { %990 = vmatmul.mubr.f32.vlgmr.msra.gmra.mrb[0].mxu1 %v703_v47  ;;  %3409 = vmatpush1.bf16.msra.mxu0 %v4362_v24  ;;  %v6859_v24 = vld [vmem:[#allocation28_spill] sm:$0xff]  ;;  %v6906_v47 = vld [vmem:[#allocation73_spill] sm:$0xff] }
  0xed   : > { %3537 = vmatpush1.bf16.msra.mxu1 %v4370_v31  ;;  %3411 = vmatprep.subr.bf16.mxu0 %v4374_v35  ;;  %v6860_v31 = vld [vmem:[#allocation29_spill] sm:$0xff]  ;;  %v6861_v35 = vld [vmem:[#allocation30_spill] sm:$0xff] }
  0xee   : > { %3539 = vmatprep.subr.bf16.mxu1 %v4376_v36  ;;  %1060 = vmatprep.mubr.f32.mxu0 %v4440_v22  ;;  %v6862_v36 = vld [vmem:[#allocation31_spill] sm:$0xff] }
  0xef   : > { %1202 = vmatprep.mubr.f32.mxu1 %v4440_v22  ;;  %v6872_v22 = vld [vmem:[#allocation41_spill] sm:$0xff] }
  0xf0   : > { %3413 = vmatpush1.bf16.msra.mxu0 %v4385_v42  ;;  %v6863_v42 = vld [vmem:[#allocation32_spill] sm:$0xff] }
  0xf1   : > { %3541 = vmatpush1.bf16.msra.mxu1 %v4395_v48  ;;  %3415 = vmatprep.subr.bf16.mxu0 %v4397_v49  ;;  %v6865_v48 = vld [vmem:[#allocation34_spill] sm:$0xff]  ;;  %v6866_v49 = vld [vmem:[#allocation35_spill] sm:$0xff] }
  0xf2   : > { %3543 = vmatprep.subr.bf16.mxu1 %v4404_v55  ;;  %v6867_v55 = vld [vmem:[#allocation36_spill] sm:$0xff] }
  0xf4   : > { %3417 = vmatpush1.bf16.msra.mxu0 %v4419_v62  ;;  %v6868_v62 = vld [vmem:[#allocation37_spill] sm:$0xff] }
  0xf5   : > { %3545 = vmatpush1.bf16.msra.mxu1 %v4421_v63  ;;  %3419 = vmatprep.subr.bf16.mxu0 %v4427_v4  ;;  %v6869_v63 = vld [vmem:[#allocation38_spill] sm:$0xff]  ;;  %v6870_v4 = vld [vmem:[#allocation39_spill] sm:$0xff] }
  0xf6   : > { %3547 = vmatprep.subr.bf16.mxu1 %v4434_v10  ;;  %v6871_v10 = vld [vmem:[#allocation40_spill] sm:$0xff] }
  0xf8   : > { %3421 = vmatpush1.bf16.msra.mxu0 %v4448_v27  ;;  %v6873_v27 = vld [vmem:[#allocation42_spill] sm:$0xff] }
  0xf9   : > { %3549 = vmatpush1.bf16.msra.mxu1 %v4454_v30  ;;  %3423 = vmatprep.subr.bf16.mxu0 %v4456_v32  ;;  %v6874_v30 = vld [vmem:[#allocation43_spill] sm:$0xff]  ;;  %v6875_v32 = vld [vmem:[#allocation44_spill] sm:$0xff] }
  0xfa   : > { %3551 = vmatprep.subr.bf16.mxu1 %v4461_v39  ;;  %v6876_v39 = vld [vmem:[#allocation45_spill] sm:$0xff] }
  0xfc   : > { %3425 = vmatpush1.bf16.msra.mxu0 %v4467_v56  ;;  %v6877_v56 = vld [vmem:[#allocation46_spill] sm:$0xff] }
  0xfd   : > { %3553 = vmatpush1.bf16.msra.mxu1 %v4472_v58  ;;  %3427 = vmatprep.subr.bf16.mxu0 %v4474_v0  ;;  %v6878_v58 = vld [vmem:[#allocation47_spill] sm:$0xff]  ;;  %v6879_v0 = vld [vmem:[#allocation48_spill] sm:$0xff] }
  0xfe   : > { %3555 = vmatprep.subr.bf16.mxu1 %v4477_v5  ;;  %v6880_v5 = vld [vmem:[#allocation49_spill] sm:$0xff] }
 0x100   : > { %3429 = vmatpush1.bf16.msra.mxu0 %v4480_v14  ;;  %v6881_v14 = vld [vmem:[#allocation50_spill] sm:$0xff] }
 0x101   : > { %3557 = vmatpush1.bf16.msra.mxu1 %v4485_v17  ;;  %3431 = vmatprep.subr.bf16.mxu0 %v4487_v20  ;;  %v6882_v17 = vld [vmem:[#allocation51_spill] sm:$0xff]  ;;  %v6883_v20 = vld [vmem:[#allocation52_spill] sm:$0xff] }
 0x102   : > { %3559 = vmatprep.subr.bf16.mxu1 %v4490_v37  ;;  %v6884_v37 = vld [vmem:[#allocation22_spill] sm:$0xff] }
 0x104   : > { %3433 = vmatpush1.bf16.msra.mxu0 %v4496_v52  ;;  %v6885_v52 = vld [vmem:[#allocation53_spill] sm:$0xff] }
 0x105   : > { %3561 = vmatpush1.bf16.msra.mxu1 %v4502_v57  ;;  %3435 = vmatprep.subr.bf16.mxu0 %v4504_v1  ;;  %v6886_v57 = vld [vmem:[#allocation54_spill] sm:$0xff]  ;;  %v6887_v1 = vld [vmem:[#allocation55_spill] sm:$0xff] }
 0x106   : > { %3563 = vmatprep.subr.bf16.mxu1 %v4507_v6  ;;  %v6888_v6 = vld [vmem:[#allocation25_spill] sm:$0xff] }
 0x108   : > { %3437 = vmatpush1.bf16.msra.mxu0 %v4510_v15  ;;  %v6889_v15 = vld [vmem:[#allocation56_spill] sm:$0xff] }
 0x109   : > { %3565 = vmatpush1.bf16.msra.mxu1 %v4514_v21  ;;  %3439 = vmatprep.subr.bf16.mxu0 %v4516_v33  ;;  %v6890_v21 = vld [vmem:[#allocation57_spill] sm:$0xff]  ;;  %v6891_v33 = vld [vmem:[#allocation58_spill] sm:$0xff] }
 0x10a   : > { %3567 = vmatprep.subr.bf16.mxu1 %v4519_v44  ;;  %v6892_v44 = vld [vmem:[#allocation59_spill] sm:$0xff] }
 0x10c   : > { %3441 = vmatpush1.bf16.msra.mxu0 %v4522_v18  ;;  %v6864_v18 = vld [vmem:[#allocation33_spill] sm:$0xff] }
 0x10d   : > { %3569 = vmatpush1.bf16.msra.mxu1 %v4526_v3  ;;  %3443 = vmatprep.subr.bf16.mxu0 %v4528_v7  ;;  %v6893_v3 = vld [vmem:[#allocation60_spill] sm:$0xff]  ;;  %v6894_v7 = vld [vmem:[#allocation61_spill] sm:$0xff] }
 0x10e   : > { %3571 = vmatprep.subr.bf16.mxu1 %v4531_v12  ;;  %v6895_v12 = vld [vmem:[#allocation62_spill] sm:$0xff] }
 0x110   : > { %3445 = vmatpush1.bf16.msra.mxu0 %v6857_v19  ;;  %v6909_v19 = vld [vmem:[#allocation76_spill] sm:$0xff] }
 0x111   : > { %3573 = vmatpush1.bf16.msra.mxu1 %v6858_v23  ;;  %3447 = vmatprep.subr.bf16.mxu0 %v6859_v24  ;;  %v6910_v23 = vld [vmem:[#allocation77_spill] sm:$0xff]  ;;  %v6911_v24 = vld [vmem:[#allocation78_spill] sm:$0xff] }
 0x112   : > { %3575 = vmatprep.subr.bf16.mxu1 %v6860_v31  ;;  %v6912_v31 = vld [vmem:[#allocation79_spill] sm:$0xff] }
 0x114   : > { %3449 = vmatpush1.bf16.msra.mxu0 %v6861_v35  ;;  %v6913_v35 = vld [vmem:[#allocation80_spill] sm:$0xff] }
 0x115   : > { %3577 = vmatpush1.bf16.msra.mxu1 %v6862_v36  ;;  %3451 = vmatprep.subr.bf16.mxu0 %v6863_v42  ;;  %v6914_v36 = vld [vmem:[#allocation81_spill] sm:$0xff]  ;;  %v6915_v42 = vld [vmem:[#allocation82_spill] sm:$0xff] }
 0x116   : > { %3579 = vmatprep.subr.bf16.mxu1 %v6864_v18  ;;  %v6916_v18 = vld [vmem:[#allocation83_spill] sm:$0xff] }
 0x118   : > { %3453 = vmatpush1.bf16.msra.mxu0 %v6865_v48  ;;  %v6917_v48 = vld [vmem:[#allocation84_spill] sm:$0xff] }
 0x119   : > { %3581 = vmatpush1.bf16.msra.mxu1 %v6866_v49  ;;  %3455 = vmatprep.subr.bf16.mxu0 %v6867_v55  ;;  %v6918_v49 = vld [vmem:[#allocation85_spill] sm:$0xff]  ;;  %v6919_v55 = vld [vmem:[#allocation86_spill] sm:$0xff] }
 0x11a   : > { %3583 = vmatprep.subr.bf16.mxu1 %v6868_v62  ;;  %v6920_v62 = vld [vmem:[#allocation87_spill] sm:$0xff] }
 0x11c   : > { %3457 = vmatpush1.bf16.msra.mxu0 %v6869_v63  ;;  %v6921_v63 = vld [vmem:[#allocation88_spill] sm:$0xff] }
 0x11d   : > { %3585 = vmatpush1.bf16.msra.mxu1 %v6870_v4  ;;  %3459 = vmatprep.subr.bf16.mxu0 %v6871_v10  ;;  %v6922_v4 = vld [vmem:[#allocation89_spill] sm:$0xff]  ;;  %v6923_v10 = vld [vmem:[#allocation90_spill] sm:$0xff] }
 0x11e   : > { %3587 = vmatprep.subr.bf16.mxu1 %v6872_v22  ;;  %v6924_v22 = vld [vmem:[#allocation91_spill] sm:$0xff] }
 0x120   : > { %3461 = vmatpush1.bf16.msra.mxu0 %v6873_v27  ;;  %v6925_v27 = vld [vmem:[#allocation92_spill] sm:$0xff] }
 0x121   : > { %3589 = vmatpush1.bf16.msra.mxu1 %v6874_v30  ;;  %3463 = vmatprep.subr.bf16.mxu0 %v6875_v32  ;;  %v6926_v30 = vld [vmem:[#allocation93_spill] sm:$0xff]  ;;  %v6927_v32 = vld [vmem:[#allocation94_spill] sm:$0xff] }
 0x122   : > { %3591 = vmatprep.subr.bf16.mxu1 %v6876_v39  ;;  %v6928_v39 = vld [vmem:[#allocation95_spill] sm:$0xff] }
 0x124   : > { %3465 = vmatpush1.bf16.msra.mxu0 %v6877_v56  ;;  %v6929_v56 = vld [vmem:[#allocation96_spill] sm:$0xff] }
 0x125   : > { %3593 = vmatpush1.bf16.msra.mxu1 %v6878_v58  ;;  %3467 = vmatprep.subr.bf16.mxu0 %v6879_v0  ;;  %v6930_v58 = vld [vmem:[#allocation97_spill] sm:$0xff]  ;;  %v6931_v0 = vld [vmem:[#allocation98_spill] sm:$0xff] }
 0x126   : > { %3595 = vmatprep.subr.bf16.mxu1 %v6880_v5  ;;  %v6932_v5 = vld [vmem:[#allocation99_spill] sm:$0xff] }
 0x128   : > { %3469 = vmatpush1.bf16.msra.mxu0 %v6881_v14  ;;  %v6933_v14 = vld [vmem:[#allocation100_spill] sm:$0xff] }
 0x129   : > { %3597 = vmatpush1.bf16.msra.mxu1 %v4610_v41  ;;  %3471 = vmatprep.subr.bf16.mxu0 %v6882_v17  ;;  %v6896_v41 = vld [vmem:[#allocation63_spill] sm:$0xff]  ;;  %v6934_v17 = vld [vmem:[#allocation101_spill] sm:$0xff] }
 0x12a   : > { %3599 = vmatprep.subr.bf16.mxu1 %v6883_v20  ;;  %v6935_v20 = vld [vmem:[#allocation102_spill] sm:$0xff] }
 0x12b   : > { %1061 = vmatmul.mubr.f32.vlgmr.msra.gmra.mrb[0].mxu0 %v6884_v37 }
 0x12c   : > { %3473 = vmatpush1.bf16.msra.mxu0 %v6885_v52  ;;  %1203 = vmatmul.mubr.f32.vlgmr.msra.gmra.mrb[0].mxu1 %v6884_v37  ;;  %v6938_v37 = vld [vmem:[#allocation14_spill] sm:$0xff] }
 0x12d   : > { %3601 = vmatpush1.bf16.msra.mxu1 %v4624_v28  ;;  %3475 = vmatprep.subr.bf16.mxu0 %v6886_v57  ;;  %v6897_v28 = vld [vmem:[#allocation64_spill] sm:$0xff] }
 0x12e   : > { %3603 = vmatprep.subr.bf16.mxu1 %v6887_v1  ;;  %1131 = vmatprep.mubr.f32.mxu0 %v6888_v6 }
 0x12f   : > { %1273 = vmatprep.mubr.f32.mxu1 %v6888_v6 }
 0x130   : > { %3477 = vmatpush1.bf16.msra.mxu0 %v6889_v15  ;;  %v4963_v15 = vadd.s32 40, %v6938_v37 }
 0x131   : > { %3605 = vmatpush1.bf16.msra.mxu1 %v6890_v21  ;;  %3479 = vmatprep.subr.bf16.mxu0 %v6891_v33  ;;  %v4966_v21 = vadd.s32 48, %v6938_v37 }
 0x132   : > { %3607 = vmatprep.subr.bf16.mxu1 %v6892_v44 }
 0x134   : > { %3481 = vmatpush1.bf16.msra.mxu0 %v6893_v3  ;;  %v4969_v3 = vadd.s32 56, %v6938_v37 }
 0x135   : > { %3609 = vmatpush1.bf16.msra.mxu1 %v6894_v7  ;;  %3483 = vmatprep.subr.bf16.mxu0 %v6895_v12  ;;  %v4972_v7 = vadd.s32 64, %v6938_v37 }
 0x136   : > { %3611 = vmatprep.subr.bf16.mxu1 %v6896_v41 }
 0x138   : > { %3485 = vmatpush1.bf16.msra.mxu0 %v6897_v28  ;;  %v4975_v28 = vadd.s32 72, %v6938_v37 }
 0x139   : > { %3613 = vmatpush1.bf16.msra.mxu1 %v6898_v26  ;;  %3487 = vmatprep.subr.bf16.mxu0 %v6899_v29  ;;  %v4978_v26 = vadd.s32 80, %v6938_v37 }
 0x13a   : > { %3615 = vmatprep.subr.bf16.mxu1 %v6900_v38 }
 0x13c   : > { %3489 = vmatpush1.bf16.msra.mxu0 %v6901_v59  ;;  %v4981_v59 = vadd.s32 88, %v6938_v37 }
 0x13d   : > { %3617 = vmatpush1.bf16.msra.mxu1 %v6902_v13  ;;  %3491 = vmatprep.subr.bf16.mxu0 %v6903_v53  ;;  %v4984_v13 = vadd.s32 96, %v6938_v37 }
 0x13e   : > { %3619 = vmatprep.subr.bf16.mxu1 %v6904_v8 }
 0x140   : > { %3493 = vmatpush1.bf16.msra.mxu0 %v6905_v61  ;;  %v4987_v61 = vadd.s32 104, %v6938_v37 }
 0x141   : > { %3621 = vmatpush1.bf16.msra.mxu1 %v6906_v47  ;;  %3495 = vmatprep.subr.bf16.mxu0 %v6907_v54  ;;  %v4990_v47 = vadd.s32 112, %v6938_v37 }
 0x142   : > { %3623 = vmatprep.subr.bf16.mxu1 %v6908_v45 }
 0x144   : > { %3497 = vmatpush1.bf16.msra.mxu0 %v6909_v19  ;;  %v4993_v19 = vadd.s32 120, %v6938_v37 }
 0x145   : > { %3625 = vmatpush1.bf16.msra.mxu1 %v6910_v23  ;;  %3499 = vmatprep.subr.bf16.mxu0 %v6911_v24  ;;  %v4996_v23 = vadd.s32 128, %v6938_v37 }
 0x146   : > { %3627 = vmatprep.subr.bf16.mxu1 %v6912_v31 }
 0x148   : > { %3501 = vmatpush1.bf16.msra.mxu0 %v6913_v35  ;;  %v4999_v35 = vadd.s32 136, %v6938_v37 }
 0x149   : > { %3629 = vmatpush1.bf16.msra.mxu1 %v6914_v36  ;;  %3503 = vmatprep.subr.bf16.mxu0 %v6915_v42  ;;  %v5002_v36 = vadd.s32 144, %v6938_v37 }
 0x14a   : > { %3631 = vmatprep.subr.bf16.mxu1 %v6916_v18 }
 0x14c   : > { %3505 = vmatpush1.bf16.msra.mxu0 %v6917_v48  ;;  %v5005_v48 = vadd.s32 152, %v6938_v37 }
 0x14d   : > { %3633 = vmatpush1.bf16.msra.mxu1 %v6918_v49  ;;  %3507 = vmatprep.subr.bf16.mxu0 %v6919_v55  ;;  %v5008_v49 = vadd.s32 160, %v6938_v37 }
 0x14e   : > { %3635 = vmatprep.subr.bf16.mxu1 %v6920_v62 }
 0x150   : > { %3509 = vmatpush1.bf16.msra.mxu0 %v6921_v63  ;;  %v5011_v63 = vadd.s32 168, %v6938_v37 }
 0x151   : > { %3637 = vmatpush1.bf16.msra.mxu1 %v6922_v4  ;;  %3511 = vmatprep.subr.bf16.mxu0 %v6923_v10  ;;  %v5014_v4 = vadd.s32 176, %v6938_v37 }
 0x152   : > { %3639 = vmatprep.subr.bf16.mxu1 %v6924_v22 }
 0x154   : > { %3513 = vmatpush1.bf16.msra.mxu0 %v6925_v27  ;;  %v5017_v27 = vadd.s32 184, %v6938_v37 }
 0x155   : > { %3641 = vmatpush1.bf16.msra.mxu1 %v6926_v30  ;;  %3515 = vmatprep.subr.bf16.mxu0 %v6927_v32 }
 0x156   : > { %3643 = vmatprep.subr.bf16.mxu1 %v6928_v39 }
 0x158   : > { %3517 = vmatpush1.bf16.msra.mxu0 %v6929_v56 }
 0x159   : > { %3645 = vmatpush1.bf16.msra.mxu1 %v6930_v58  ;;  %3519 = vmatprep.subr.bf16.mxu0 %v6931_v0  ;;  %v5020_v58 = vadd.s32 192, %v6938_v37 }
 0x15a   : > { %3647 = vmatprep.subr.bf16.mxu1 %v6932_v5 }
 0x15c   : > { %3521 = vmatpush1.bf16.msra.mxu0 %v6933_v14 }
 0x15d   : > { %3649 = vmatpush1.bf16.msra.mxu1 %v6934_v17  ;;  %3523 = vmatprep.subr.bf16.mxu0 %v4772_v60  ;;  %v6936_v60 = vld [vmem:[#allocation23_spill] sm:$0xff]  ;;  %v5023_v17 = vadd.s32 200, %v6938_v37 }
 0x15e   : > { %3651 = vmatprep.subr.bf16.mxu1 %v6935_v20 }
 0x160   : > { %3525 = vmatpush1.bf16.msra.mxu0 %v4778_v40  ;;  %v1283_v40 = vpop.permute.xlu0 %1282 }
 0x161   : > { %3653 = vmatpush1.bf16.msra.mxu1 %v4782_v34  ;;  %3527 = vmatprep.subr.bf16.mxu0 %v4784_v11  ;;  %v6937_v34 = vld [vmem:[#allocation15_spill] sm:$0xff] }
 0x162   : > { %3655 = vmatprep.subr.bf16.mxu1 %v4787_v2  ;;  %v1288_v11 = vrot.slane %v1283_v40, %v6937_v34 }
 0x164   : > { %3529 = vmatpush1.bf16.msra.mxu0 %v4790_v25  ;;  %v4951_v25 = vadd.s32 8, %v6938_v37 }
 0x165   : > { %3657 = vmatpush1.bf16.msra.mxu1 %v4794_v16  ;;  %3531 = vmatprep.subr.bf16.mxu0 %v4796_v50 }
 0x166   : > { %3659 = vmatprep.subr.bf16.mxu1 %v4799_v9  ;;  %v4954_v9 = vadd.s32 16, %v6938_v37 }
 0x168   : > { %3533 = vmatpush1.bf16.msra.mxu0 %v4802_v43  ;;  %v4957_v43 = vadd.s32 24, %v6938_v37 }
 0x169   : > { %3661 = vmatpush1.bf16.msra.mxu1 %v4806_v51  ;;  %v4960_v51 = vadd.s32 32, %v6938_v37 }
 0x16b   : > { %1132 = vmatmul.mubr.f32.vlgmr.msra.gmra.mrb[0].mxu0 %v6936_v60 }
 0x16c   : > { %1274 = vmatmul.mubr.f32.vlgmr.msra.gmra.mrb[0].mxu1 %v6936_v60 }
 0x23e   : > { %v1133_v2 = vpop.f32.mrb[0].mxu0 }
 0x23f   : > { %v1289_v16 = vadd.f32 %v1288_v11, %v1133_v2  ;;  %v1275_v52 = vpop.f32.mrb[0].mxu1  ;;  %v1135_v50 = vpop.f32.mrb[1].mxu0 }
 0x240   : > { %v1291_v57 = vadd.f32 %v1288_v11, %v1275_v52  ;;  %v1290_v1 = vadd.f32 %v1288_v11, %v1135_v50  ;;  %v1277_v6 = vpop.f32.mrb[1].mxu1  ;;  %v5029_v50 = vadd.s32 216, %v6938_v37 }
 0x241   : > { %v1310_v33 = vmul.f32 0.001953125, %v1289_v16  ;;  %v1292_v44 = vadd.f32 %v1288_v11, %v1277_v6  ;;  %v5026_v11 = vadd.s32 208, %v6938_v37 }
 0x242   : > { %v1312_v12 = vmul.f32 0.001953125, %v1291_v57  ;;  %v1311_v41 = vmul.f32 0.001953125, %v1290_v1 }
 0x243   : > { %v1314_v29 = vfloor.f32 %v1310_v33  ;;  %v1313_v38 = vmul.f32 0.001953125, %v1292_v44 }
 0x244   : > { %v1316_v53 = vfloor.f32 %v1312_v12  ;;  %v1315_v8 = vfloor.f32 %v1311_v41 }
 0x245   : > { %v1318_v54 = vmul.f32 512.0, %v1314_v29  ;;  %v1317_v45 = vfloor.f32 %v1313_v38 }
 0x246   : > { %v1320_v24 = vmul.f32 512.0, %v1316_v53  ;;  %v1319_v31 = vmul.f32 512.0, %v1315_v8 }
 0x247   : > { %v1322_v42 = vsub.f32 %v1289_v16, %v1318_v54  ;;  %v1321_v18 = vmul.f32 512.0, %v1317_v45 }
 0x248   : > { %v1324_v55 = vsub.f32 %v1291_v57, %v1320_v24  ;;  %v1323_v62 = vsub.f32 %v1290_v1, %v1319_v31 }
 0x249   : > { %vm1326_vm1 = vcmp.ge.f32.partialorder %v1322_v42, 512.0  ;;  %v3140_v10 = vadd.f32 -512.0, %v1322_v42  ;;  %v1325_v22 = vsub.f32 %v1292_v44, %v1321_v18 }
 0x24a   : > { %vm1328_vm2 = vcmp.ge.f32.partialorder %v1324_v55, 512.0  ;;  %v3142_v30 = vadd.f32 -512.0, %v1324_v55  ;;  %vm1327_vm3 = vcmp.ge.f32.partialorder %v1323_v62, 512.0  ;;  %v3141_v32 = vadd.f32 -512.0, %v1323_v62 }
 0x24b   : > { %v1334_v39 = vsel %vm1326_vm1, %v3140_v10, %v1322_v42  ;;  %vm1329_vm4 = vcmp.ge.f32.partialorder %v1325_v22, 512.0  ;;  %v3143_v56 = vadd.f32 -512.0, %v1325_v22 }
 0x24c   : > { %v1338_v0 = vfloor.f32 %v1334_v39  ;;  %v1336_v5 = vsel %vm1328_vm2, %v3142_v30, %v1324_v55  ;;  %v1335_v14 = vsel %vm1327_vm3, %v3141_v32, %v1323_v62 }
 0x24d   : > { %v1340_v20 = vfloor.f32 %v1336_v5  ;;  %v1339_v60 = vfloor.f32 %v1335_v14  ;;  %v1337_v40 = vsel %vm1329_vm4, %v3143_v56, %v1325_v22 }
 0x24e   : > { %v1342_v2 = vsub.f32 %v1334_v39, %v1338_v0  ;;  %v3945_v16 = vtrunc.f32 %v1338_v0  ;;  %v1341_v52 = vfloor.f32 %v1337_v40 }
 0x24f   : > { %v1344_v57 = vsub.f32 %v1336_v5, %v1340_v20  ;;  %v3949_v1 = vtrunc.f32 %v1340_v20  ;;  %v1343_v6 = vsub.f32 %v1335_v14, %v1339_v60  ;;  %v3947_v33 = vtrunc.f32 %v1339_v60 }
 0x250   : > { %v3946_v44 = vcvt.f32.s32 %v3945_v16  ;;  %v1699_v12 = vsub.f32 1.0, %v1342_v2  ;;  %v5032_v41 = vrot.slane %v1342_v2, %v6937_v34  ;;  %v1345_v29 = vsub.f32 %v1337_v40, %v1341_v52 }
 0x251   : > { %v3950_v38 = vcvt.f32.s32 %v3949_v1  ;;  %v1701_v53 = vsub.f32 1.0, %v1344_v57  ;;  %v5035_v8 = vrot.slane %v1344_v57, %v6937_v34  ;;  %v3948_v54 = vcvt.f32.s32 %v3947_v33 }
 0x252   : > { %v1350_v45 = vadd.s32 1, %v3946_v44  ;;  %v5038_v24 = vrot.slane %v3946_v44, %v6937_v34  ;;  %v5041_v31 = vrot.slane %v1699_v12, %v6937_v34  ;;  %v1700_v42 = vsub.f32 1.0, %v1343_v6 }
 0x253   : > { %v1352_v18 = vadd.s32 1, %v3950_v38  ;;  %v5044_v55 = vrot.slane %v3950_v38, %v6937_v34  ;;  %v5047_v62 = vrot.slane %v1701_v53, %v6937_v34  ;;  %v1351_v10 = vadd.s32 1, %v3948_v54 }
 0x254   : > { %vm1354_vm5 = vcmp.eq.s32.totalorder %v1350_v45, 512  ;;  %v5050_v22 = vrot.slane %v3948_v54, %v6937_v34  ;;  %v5053_v30 = vrot.slane %v1343_v6, %v6937_v34  ;;  %v5056_v32 = vrot.slane %v1700_v42, %v6937_v34 }
 0x255   : > { %v1358_v39 = vsel %vm1354_vm5, 0, %v1350_v45  ;;  %vm1356_vm6 = vcmp.eq.s32.totalorder %v1352_v18, 512  ;;  %vm1355_vm7 = vcmp.eq.s32.totalorder %v1351_v10, 512  ;;  %v3951_v56 = vtrunc.f32 %v1341_v52 }
 0x256   : > { %v5059_v0 = vrot.slane %v1358_v39, %v6937_v34  ;;  %v1360_v5 = vsel %vm1356_vm6, 0, %v1352_v18  ;;  %v1359_v14 = vsel %vm1355_vm7, 0, %v1351_v10  ;;  %v1702_v20 = vsub.f32 1.0, %v1345_v29 }
 0x257   : > { %v5062_v60 = vrot.slane %v1360_v5, %v6937_v34  ;;  %v5065_v40 = vrot.slane %v1359_v14, %v6937_v34  ;;  %v3952_v2 = vcvt.f32.s32 %v3951_v56  ;;  %v5068_v16 = vrot.slane %v1345_v29, %v6937_v34 }
 0x258   : > { %v5071_v57 = vrot.slane %v1702_v20, %v6937_v34  ;;  %vm1444_vm8 = vcmp.eq.s32.totalorder %v6938_v37, %v5050_v22  ;;  %vm1448_vm9 = vcmp.eq.s32.totalorder %v4951_v25, %v5050_v22  ;;  %vm1443_vm10 = vcmp.eq.s32.totalorder %v6938_v37, %v5038_v24 }
 0x259   : > { %v1353_v52 = vadd.s32 1, %v3952_v2  ;;  %v5080_v1 = vrot.slane %v3952_v2, %v6937_v34  ;;  %vm1720_vm11 = vcmp.eq.s32.totalorder %v6938_v37, %v5065_v40  ;;  %vm1724_vm12 = vcmp.eq.s32.totalorder %v4951_v25, %v5065_v40 }
 0x25a   : > { %v1992_v6 = vsel %vm1720_vm11, %v5053_v30, 0.0  ;;  %v1996_v33 = vsel %vm1724_vm12, %v5053_v30, 0.0  ;;  %vm1447_vm13 = vcmp.eq.s32.totalorder %v4951_v25, %v5038_v24  ;;  %vm1719_vm14 = vcmp.eq.s32.totalorder %v6938_v37, %v5059_v0 }
 0x25b   : > { %vm1357_vm15 = vcmp.eq.s32.totalorder %v1353_v52, 512  ;;  %v2264_v44 = vsel %vm1444_vm8, %v5056_v32, %v1992_v6  ;;  %v2268_v12 = vsel %vm1448_vm9, %v5056_v32, %v1996_v33  ;;  %vm1446_vm0 = vcmp.eq.s32.totalorder %v6938_v37, %v5080_v1 }
 0x25c   : > { %v1361_v29 = vsel %vm1357_vm15, 0, %v1353_v52  ;;  %v3662_v38 = vpack.c.bf16 %v2268_v12, %v2264_v44  ;;  %vm1450_vm1 = vcmp.eq.s32.totalorder %v4951_v25, %v5080_v1  ;;  %vm1723_vm2 = vcmp.eq.s32.totalorder %v4951_v25, %v5059_v0 }
 0x25d   : > { %v5101_v53 = vrot.slane %v1361_v29, %v6937_v34  ;;  %v1991_v54 = vsel %vm1719_vm14, %v5032_v41, 0.0  ;;  %v1995_v45 = vsel %vm1723_vm2, %v5032_v41, 0.0  ;;  %vm1445_vm3 = vcmp.eq.s32.totalorder %v6938_v37, %v5044_v55 }
 0x25e   : > { %3663 = vmatprep.subr.bf16.mxu0 %v3662_v38  ;;  %v2263_v42 = vsel %vm1443_vm10, %v5041_v31, %v1991_v54  ;;  %v2267_v18 = vsel %vm1447_vm13, %v5041_v31, %v1995_v45  ;;  %vm1449_vm4 = vcmp.eq.s32.totalorder %v4951_v25, %v5044_v55  ;;  %vm1721_vm5 = vcmp.eq.s32.totalorder %v6938_v37, %v5062_v60 }
 0x25f   : > { %vm1722_vm6 = vcmp.eq.s32.totalorder %v6938_v37, %v5101_v53  ;;  %vm1726_vm7 = vcmp.eq.s32.totalorder %v4951_v25, %v5101_v53  ;;  %v3664_v10 = vpack.c.bf16 %v2267_v18, %v2263_v42  ;;  %vm1725_vm8 = vcmp.eq.s32.totalorder %v4951_v25, %v5062_v60 }
 0x260   : > { %v1994_v39 = vsel %vm1722_vm6, %v5068_v16, 0.0  ;;  %v1998_v56 = vsel %vm1726_vm7, %v5068_v16, 0.0  ;;  %v1993_v5 = vsel %vm1721_vm5, %v5035_v8, 0.0  ;;  %v1997_v14 = vsel %vm1725_vm8, %v5035_v8, 0.0 }
 0x261   : > { %v2266_v20 = vsel %vm1446_vm0, %v5071_v57, %v1994_v39  ;;  %v2270_v2 = vsel %vm1450_vm1, %v5071_v57, %v1998_v56  ;;  %3665 = vmatpush1.bf16.msra.mxu0 %v3664_v10  ;;  %v2265_v52 = vsel %vm1445_vm3, %v5047_v62, %v1993_v5  ;;  %v2269_v6 = vsel %vm1449_vm4, %v5047_v62, %v1997_v14 }
 0x262   : > { %v3790_v33 = vpack.c.bf16 %v2270_v2, %v2266_v20  ;;  %v3792_v44 = vpack.c.bf16 %v2269_v6, %v2265_v52  ;;  %vm1452_vm9 = vcmp.eq.s32.totalorder %v4954_v9, %v5050_v22  ;;  %vm1456_vm10 = vcmp.eq.s32.totalorder %v4957_v43, %v5050_v22 }
 0x263   : > { %vm1728_vm11 = vcmp.eq.s32.totalorder %v4954_v9, %v5065_v40  ;;  %vm1732_vm12 = vcmp.eq.s32.totalorder %v4957_v43, %v5065_v40  ;;  %vm1454_vm13 = vcmp.eq.s32.totalorder %v4954_v9, %v5080_v1  ;;  %vm1458_vm14 = vcmp.eq.s32.totalorder %v4957_v43, %v5080_v1 }
 0x264   : > { %3791 = vmatprep.subr.bf16.mxu1 %v3790_v33  ;;  %v2000_v25 = vsel %vm1728_vm11, %v5053_v30, 0.0  ;;  %v2004_v12 = vsel %vm1732_vm12, %v5053_v30, 0.0  ;;  %vm1730_vm15 = vcmp.eq.s32.totalorder %v4954_v9, %v5101_v53  ;;  %vm1734_vm0 = vcmp.eq.s32.totalorder %v4957_v43, %v5101_v53 }
 0x265   : > { %3793 = vmatpush1.bf16.msra.mxu1 %v3792_v44  ;;  %v2272_v29 = vsel %vm1452_vm9, %v5056_v32, %v2000_v25  ;;  %v2276_v38 = vsel %vm1456_vm10, %v5056_v32, %v2004_v12  ;;  %v2002_v54 = vsel %vm1730_vm15, %v5068_v16, 0.0  ;;  %v2006_v45 = vsel %vm1734_vm0, %v5068_v16, 0.0 }
 0x266   : > { %v3666_v42 = vpack.c.bf16 %v2276_v38, %v2272_v29  ;;  %v2274_v18 = vsel %vm1454_vm13, %v5071_v57, %v2002_v54  ;;  %v2278_v10 = vsel %vm1458_vm14, %v5071_v57, %v2006_v45  ;;  %vm1451_vm1 = vcmp.eq.s32.totalorder %v4954_v9, %v5038_v24 }
 0x267   : > { %v3794_v39 = vpack.c.bf16 %v2278_v10, %v2274_v18  ;;  %vm1455_vm2 = vcmp.eq.s32.totalorder %v4957_v43, %v5038_v24  ;;  %vm1727_vm3 = vcmp.eq.s32.totalorder %v4954_v9, %v5059_v0  ;;  %vm1731_vm4 = vcmp.eq.s32.totalorder %v4957_v43, %v5059_v0 }
 0x268   : > { %3667 = vmatprep.subr.bf16.mxu0 %v3666_v42  ;;  %v1999_v56 = vsel %vm1727_vm3, %v5032_v41, 0.0  ;;  %v2003_v5 = vsel %vm1731_vm4, %v5032_v41, 0.0  ;;  %vm1453_vm5 = vcmp.eq.s32.totalorder %v4954_v9, %v5044_v55  ;;  %vm1457_vm6 = vcmp.eq.s32.totalorder %v4957_v43, %v5044_v55 }
 0x269   : > { %3795 = vmatprep.subr.bf16.mxu1 %v3794_v39  ;;  %v2271_v14 = vsel %vm1451_vm1, %v5041_v31, %v1999_v56  ;;  %v2275_v20 = vsel %vm1455_vm2, %v5041_v31, %v2003_v5  ;;  %vm1729_vm7 = vcmp.eq.s32.totalorder %v4954_v9, %v5062_v60  ;;  %vm1733_vm8 = vcmp.eq.s32.totalorder %v4957_v43, %v5062_v60 }
 0x26a   : > { %v3668_v2 = vpack.c.bf16 %v2275_v20, %v2271_v14  ;;  %v2001_v52 = vsel %vm1729_vm7, %v5035_v8, 0.0  ;;  %v2005_v6 = vsel %vm1733_vm8, %v5035_v8, 0.0  ;;  %vm1460_vm9 = vcmp.eq.s32.totalorder %v4960_v51, %v5050_v22  ;;  %v2520_v20 = vld [vmem:[%s6649_s3 + $0x8] sm:$0xff] }
 0x26b   : > { %v2273_v33 = vsel %vm1453_vm5, %v5047_v62, %v2001_v52  ;;  %v2277_v44 = vsel %vm1457_vm6, %v5047_v62, %v2005_v6  ;;  %vm1464_vm10 = vcmp.eq.s32.totalorder %v4963_v15, %v5050_v22  ;;  %vm1736_vm11 = vcmp.eq.s32.totalorder %v4960_v51, %v5065_v40  ;;  %2595 = vmatprep.mubr.f32.mxu0 %v2520_v20 }
 0x26c   : > { %3669 = vmatpush1.bf16.msra.mxu0 %v3668_v2  ;;  %v3796_v9 = vpack.c.bf16 %v2277_v44, %v2273_v33  ;;  %vm1740_vm12 = vcmp.eq.s32.totalorder %v4963_v15, %v5065_v40  ;;  %v2008_v43 = vsel %vm1736_vm11, %v5053_v30, 0.0  ;;  %vm1462_vm13 = vcmp.eq.s32.totalorder %v4960_v51, %v5080_v1  ;;  %2761 = vmatprep.mubr.f32.mxu1 %v2520_v20 }
 0x26d   : > { %v2012_v25 = vsel %vm1740_vm12, %v5053_v30, 0.0  ;;  %v2280_v12 = vsel %vm1460_vm9, %v5056_v32, %v2008_v43  ;;  %vm1466_vm14 = vcmp.eq.s32.totalorder %v4963_v15, %v5080_v1  ;;  %vm1738_vm15 = vcmp.eq.s32.totalorder %v4960_v51, %v5101_v53 }
 0x26e   : > { %3797 = vmatpush1.bf16.msra.mxu1 %v3796_v9  ;;  %v2284_v29 = vsel %vm1464_vm10, %v5056_v32, %v2012_v25  ;;  %vm1742_vm0 = vcmp.eq.s32.totalorder %v4963_v15, %v5101_v53  ;;  %v2010_v38 = vsel %vm1738_vm15, %v5068_v16, 0.0  ;;  %vm1459_vm1 = vcmp.eq.s32.totalorder %v4960_v51, %v5038_v24 }
 0x26f   : > { %v3670_v54 = vpack.c.bf16 %v2284_v29, %v2280_v12  ;;  %v2014_v45 = vsel %vm1742_vm0, %v5068_v16, 0.0  ;;  %v2282_v42 = vsel %vm1462_vm13, %v5071_v57, %v2010_v38  ;;  %vm1463_vm2 = vcmp.eq.s32.totalorder %v4963_v15, %v5038_v24 }
 0x270   : > { %v2286_v18 = vsel %vm1466_vm14, %v5071_v57, %v2014_v45  ;;  %vm1735_vm3 = vcmp.eq.s32.totalorder %v4960_v51, %v5059_v0  ;;  %vm1739_vm4 = vcmp.eq.s32.totalorder %v4963_v15, %v5059_v0  ;;  %vm1461_vm5 = vcmp.eq.s32.totalorder %v4960_v51, %v5044_v55 }
 0x271   : > { %3671 = vmatprep.subr.bf16.mxu0 %v3670_v54  ;;  %v3798_v10 = vpack.c.bf16 %v2286_v18, %v2282_v42  ;;  %v2007_v39 = vsel %vm1735_vm3, %v5032_v41, 0.0  ;;  %v2011_v56 = vsel %vm1739_vm4, %v5032_v41, 0.0  ;;  %vm1465_vm6 = vcmp.eq.s32.totalorder %v4963_v15, %v5044_v55 }
 0x272   : > { %v2279_v5 = vsel %vm1459_vm1, %v5041_v31, %v2007_v39  ;;  %v2283_v14 = vsel %vm1463_vm2, %v5041_v31, %v2011_v56  ;;  %vm1737_vm7 = vcmp.eq.s32.totalorder %v4960_v51, %v5062_v60  ;;  %vm1741_vm8 = vcmp.eq.s32.totalorder %v4963_v15, %v5062_v60 }
 0x273   : > { %3799 = vmatprep.subr.bf16.mxu1 %v3798_v10  ;;  %v3672_v2 = vpack.c.bf16 %v2283_v14, %v2279_v5  ;;  %v2009_v52 = vsel %vm1737_vm7, %v5035_v8, 0.0  ;;  %v2013_v6 = vsel %vm1741_vm8, %v5035_v8, 0.0  ;;  %vm1468_vm9 = vcmp.eq.s32.totalorder %v4966_v21, %v5050_v22 }
 0x274   : > { %v2281_v33 = vsel %vm1461_vm5, %v5047_v62, %v2009_v52  ;;  %v2285_v15 = vsel %vm1465_vm6, %v5047_v62, %v2013_v6  ;;  %vm1472_vm10 = vcmp.eq.s32.totalorder %v4969_v3, %v5050_v22  ;;  %vm1744_vm11 = vcmp.eq.s32.totalorder %v4966_v21, %v5065_v40 }
 0x275   : > { %3673 = vmatpush1.bf16.msra.mxu0 %v3672_v2  ;;  %v3800_v44 = vpack.c.bf16 %v2285_v15, %v2281_v33  ;;  %vm1748_vm12 = vcmp.eq.s32.totalorder %v4969_v3, %v5065_v40  ;;  %v2016_v9 = vsel %vm1744_vm11, %v5053_v30, 0.0  ;;  %vm1470_vm13 = vcmp.eq.s32.totalorder %v4966_v21, %v5080_v1 }
 0x276   : > { %v2020_v51 = vsel %vm1748_vm12, %v5053_v30, 0.0  ;;  %v2288_v43 = vsel %vm1468_vm9, %v5056_v32, %v2016_v9  ;;  %vm1474_vm14 = vcmp.eq.s32.totalorder %v4969_v3, %v5080_v1  ;;  %vm1746_vm15 = vcmp.eq.s32.totalorder %v4966_v21, %v5101_v53 }
 0x277   : > { %3801 = vmatpush1.bf16.msra.mxu1 %v3800_v44  ;;  %v2292_v25 = vsel %vm1472_vm10, %v5056_v32, %v2020_v51  ;;  %vm1750_vm0 = vcmp.eq.s32.totalorder %v4969_v3, %v5101_v53  ;;  %v2018_v12 = vsel %vm1746_vm15, %v5068_v16, 0.0  ;;  %vm1467_vm1 = vcmp.eq.s32.totalorder %v4966_v21, %v5038_v24 }
 0x278   : > { %v3674_v29 = vpack.c.bf16 %v2292_v25, %v2288_v43  ;;  %v2022_v38 = vsel %vm1750_vm0, %v5068_v16, 0.0  ;;  %v2290_v54 = vsel %vm1470_vm13, %v5071_v57, %v2018_v12  ;;  %vm1471_vm2 = vcmp.eq.s32.totalorder %v4969_v3, %v5038_v24 }
 0x279   : > { %v2294_v45 = vsel %vm1474_vm14, %v5071_v57, %v2022_v38  ;;  %vm1743_vm3 = vcmp.eq.s32.totalorder %v4966_v21, %v5059_v0  ;;  %vm1747_vm4 = vcmp.eq.s32.totalorder %v4969_v3, %v5059_v0  ;;  %vm1469_vm5 = vcmp.eq.s32.totalorder %v4966_v21, %v5044_v55 }
 0x27a   : > { %3675 = vmatprep.subr.bf16.mxu0 %v3674_v29  ;;  %v3802_v42 = vpack.c.bf16 %v2294_v45, %v2290_v54  ;;  %v2015_v18 = vsel %vm1743_vm3, %v5032_v41, 0.0  ;;  %v2019_v10 = vsel %vm1747_vm4, %v5032_v41, 0.0  ;;  %vm1473_vm6 = vcmp.eq.s32.totalorder %v4969_v3, %v5044_v55 }
 0x27b   : > { %v2287_v39 = vsel %vm1467_vm1, %v5041_v31, %v2015_v18  ;;  %v2291_v56 = vsel %vm1471_vm2, %v5041_v31, %v2019_v10  ;;  %vm1745_vm7 = vcmp.eq.s32.totalorder %v4966_v21, %v5062_v60  ;;  %vm1749_vm8 = vcmp.eq.s32.totalorder %v4969_v3, %v5062_v60 }
 0x27c   : > { %3803 = vmatprep.subr.bf16.mxu1 %v3802_v42  ;;  %v3676_v5 = vpack.c.bf16 %v2291_v56, %v2287_v39  ;;  %v2017_v14 = vsel %vm1745_vm7, %v5035_v8, 0.0  ;;  %v2021_v20 = vsel %vm1749_vm8, %v5035_v8, 0.0  ;;  %vm1476_vm9 = vcmp.eq.s32.totalorder %v4972_v7, %v5050_v22 }
 0x27d   : > { %v2289_v2 = vsel %vm1469_vm5, %v5047_v62, %v2017_v14  ;;  %v2293_v52 = vsel %vm1473_vm6, %v5047_v62, %v2021_v20  ;;  %vm1480_vm10 = vcmp.eq.s32.totalorder %v4975_v28, %v5050_v22  ;;  %vm1752_vm11 = vcmp.eq.s32.totalorder %v4972_v7, %v5065_v40 }
 0x27e   : > { %3677 = vmatpush1.bf16.msra.mxu0 %v3676_v5  ;;  %v3804_v21 = vpack.c.bf16 %v2293_v52, %v2289_v2  ;;  %vm1756_vm12 = vcmp.eq.s32.totalorder %v4975_v28, %v5065_v40  ;;  %v2024_v3 = vsel %vm1752_vm11, %v5053_v30, 0.0  ;;  %vm1478_vm13 = vcmp.eq.s32.totalorder %v4972_v7, %v5080_v1 }
 0x27f   : > { %v2028_v6 = vsel %vm1756_vm12, %v5053_v30, 0.0  ;;  %v2296_v33 = vsel %vm1476_vm9, %v5056_v32, %v2024_v3  ;;  %vm1482_vm14 = vcmp.eq.s32.totalorder %v4975_v28, %v5080_v1  ;;  %vm1754_vm15 = vcmp.eq.s32.totalorder %v4972_v7, %v5101_v53 }
 0x280   : > { %3805 = vmatpush1.bf16.msra.mxu1 %v3804_v21  ;;  %v2300_v15 = vsel %vm1480_vm10, %v5056_v32, %v2028_v6  ;;  %vm1758_vm0 = vcmp.eq.s32.totalorder %v4975_v28, %v5101_v53  ;;  %v2026_v44 = vsel %vm1754_vm15, %v5068_v16, 0.0  ;;  %vm1475_vm1 = vcmp.eq.s32.totalorder %v4972_v7, %v5038_v24 }
 0x281   : > { %v3678_v9 = vpack.c.bf16 %v2300_v15, %v2296_v33  ;;  %v2030_v51 = vsel %vm1758_vm0, %v5068_v16, 0.0  ;;  %v2298_v43 = vsel %vm1478_vm13, %v5071_v57, %v2026_v44  ;;  %vm1479_vm2 = vcmp.eq.s32.totalorder %v4975_v28, %v5038_v24 }
 0x282   : > { %v2302_v25 = vsel %vm1482_vm14, %v5071_v57, %v2030_v51  ;;  %vm1751_vm3 = vcmp.eq.s32.totalorder %v4972_v7, %v5059_v0  ;;  %vm1755_vm4 = vcmp.eq.s32.totalorder %v4975_v28, %v5059_v0  ;;  %vm1477_vm5 = vcmp.eq.s32.totalorder %v4972_v7, %v5044_v55 }
 0x283   : > { %3679 = vmatprep.subr.bf16.mxu0 %v3678_v9  ;;  %v3806_v12 = vpack.c.bf16 %v2302_v25, %v2298_v43  ;;  %v2023_v29 = vsel %vm1751_vm3, %v5032_v41, 0.0  ;;  %v2027_v38 = vsel %vm1755_vm4, %v5032_v41, 0.0  ;;  %vm1481_vm6 = vcmp.eq.s32.totalorder %v4975_v28, %v5044_v55 }
 0x284   : > { %v2295_v54 = vsel %vm1475_vm1, %v5041_v31, %v2023_v29  ;;  %v2299_v45 = vsel %vm1479_vm2, %v5041_v31, %v2027_v38  ;;  %vm1753_vm7 = vcmp.eq.s32.totalorder %v4972_v7, %v5062_v60  ;;  %vm1757_vm8 = vcmp.eq.s32.totalorder %v4975_v28, %v5062_v60 }
 0x285   : > { %3807 = vmatprep.subr.bf16.mxu1 %v3806_v12  ;;  %v3680_v42 = vpack.c.bf16 %v2299_v45, %v2295_v54  ;;  %v2025_v18 = vsel %vm1753_vm7, %v5035_v8, 0.0  ;;  %v2029_v10 = vsel %vm1757_vm8, %v5035_v8, 0.0  ;;  %vm1484_vm9 = vcmp.eq.s32.totalorder %v4978_v26, %v5050_v22 }
 0x286   : > { %v2297_v39 = vsel %vm1477_vm5, %v5047_v62, %v2025_v18  ;;  %v2301_v56 = vsel %vm1481_vm6, %v5047_v62, %v2029_v10  ;;  %vm1488_vm10 = vcmp.eq.s32.totalorder %v4981_v59, %v5050_v22  ;;  %vm1760_vm11 = vcmp.eq.s32.totalorder %v4978_v26, %v5065_v40 }
 0x287   : > { %3681 = vmatpush1.bf16.msra.mxu0 %v3680_v42  ;;  %v3808_v7 = vpack.c.bf16 %v2301_v56, %v2297_v39  ;;  %vm1764_vm12 = vcmp.eq.s32.totalorder %v4981_v59, %v5065_v40  ;;  %v2032_v28 = vsel %vm1760_vm11, %v5053_v30, 0.0  ;;  %vm1486_vm13 = vcmp.eq.s32.totalorder %v4978_v26, %v5080_v1 }
 0x288   : > { %v2036_v5 = vsel %vm1764_vm12, %v5053_v30, 0.0  ;;  %v2304_v14 = vsel %vm1484_vm9, %v5056_v32, %v2032_v28  ;;  %vm1490_vm14 = vcmp.eq.s32.totalorder %v4981_v59, %v5080_v1  ;;  %vm1762_vm15 = vcmp.eq.s32.totalorder %v4978_v26, %v5101_v53 }
 0x289   : > { %3809 = vmatpush1.bf16.msra.mxu1 %v3808_v7  ;;  %v2308_v20 = vsel %vm1488_vm10, %v5056_v32, %v2036_v5  ;;  %vm1766_vm0 = vcmp.eq.s32.totalorder %v4981_v59, %v5101_v53  ;;  %v2034_v2 = vsel %vm1762_vm15, %v5068_v16, 0.0  ;;  %vm1483_vm1 = vcmp.eq.s32.totalorder %v4978_v26, %v5038_v24 }
 0x28a   : > { %v3682_v52 = vpack.c.bf16 %v2308_v20, %v2304_v14  ;;  %v2038_v21 = vsel %vm1766_vm0, %v5068_v16, 0.0  ;;  %v2306_v3 = vsel %vm1486_vm13, %v5071_v57, %v2034_v2  ;;  %vm1487_vm2 = vcmp.eq.s32.totalorder %v4981_v59, %v5038_v24 }
 0x28b   : > { %v2310_v6 = vsel %vm1490_vm14, %v5071_v57, %v2038_v21  ;;  %vm1759_vm3 = vcmp.eq.s32.totalorder %v4978_v26, %v5059_v0  ;;  %vm1763_vm4 = vcmp.eq.s32.totalorder %v4981_v59, %v5059_v0  ;;  %vm1485_vm5 = vcmp.eq.s32.totalorder %v4978_v26, %v5044_v55 }
 0x28c   : > { %3683 = vmatprep.subr.bf16.mxu0 %v3682_v52  ;;  %v3810_v33 = vpack.c.bf16 %v2310_v6, %v2306_v3  ;;  %v2031_v15 = vsel %vm1759_vm3, %v5032_v41, 0.0  ;;  %v2035_v44 = vsel %vm1763_vm4, %v5032_v41, 0.0  ;;  %vm1489_vm6 = vcmp.eq.s32.totalorder %v4981_v59, %v5044_v55 }
 0x28d   : > { %v2303_v9 = vsel %vm1483_vm1, %v5041_v31, %v2031_v15  ;;  %v2307_v51 = vsel %vm1487_vm2, %v5041_v31, %v2035_v44  ;;  %vm1761_vm7 = vcmp.eq.s32.totalorder %v4978_v26, %v5062_v60  ;;  %vm1765_vm8 = vcmp.eq.s32.totalorder %v4981_v59, %v5062_v60 }
 0x28e   : > { %3811 = vmatprep.subr.bf16.mxu1 %v3810_v33  ;;  %v3684_v43 = vpack.c.bf16 %v2307_v51, %v2303_v9  ;;  %v2033_v25 = vsel %vm1761_vm7, %v5035_v8, 0.0  ;;  %v2037_v12 = vsel %vm1765_vm8, %v5035_v8, 0.0  ;;  %vm1492_vm9 = vcmp.eq.s32.totalorder %v4984_v13, %v5050_v22 }
 0x28f   : > { %v2305_v29 = vsel %vm1485_vm5, %v5047_v62, %v2033_v25  ;;  %v2309_v38 = vsel %vm1489_vm6, %v5047_v62, %v2037_v12  ;;  %vm1496_vm10 = vcmp.eq.s32.totalorder %v4987_v61, %v5050_v22  ;;  %vm1768_vm11 = vcmp.eq.s32.totalorder %v4984_v13, %v5065_v40 }
 0x290   : > { %3685 = vmatpush1.bf16.msra.mxu0 %v3684_v43  ;;  %v3812_v26 = vpack.c.bf16 %v2309_v38, %v2305_v29  ;;  %vm1772_vm12 = vcmp.eq.s32.totalorder %v4987_v61, %v5065_v40  ;;  %v2040_v59 = vsel %vm1768_vm11, %v5053_v30, 0.0  ;;  %vm1494_vm13 = vcmp.eq.s32.totalorder %v4984_v13, %v5080_v1 }
 0x291   : > { %v2044_v54 = vsel %vm1772_vm12, %v5053_v30, 0.0  ;;  %v2312_v45 = vsel %vm1492_vm9, %v5056_v32, %v2040_v59  ;;  %vm1498_vm14 = vcmp.eq.s32.totalorder %v4987_v61, %v5080_v1  ;;  %vm1770_vm15 = vcmp.eq.s32.totalorder %v4984_v13, %v5101_v53 }
 0x292   : > { %3813 = vmatpush1.bf16.msra.mxu1 %v3812_v26  ;;  %v2316_v42 = vsel %vm1496_vm10, %v5056_v32, %v2044_v54  ;;  %vm1774_vm0 = vcmp.eq.s32.totalorder %v4987_v61, %v5101_v53  ;;  %v2042_v18 = vsel %vm1770_vm15, %v5068_v16, 0.0  ;;  %vm1491_vm1 = vcmp.eq.s32.totalorder %v4984_v13, %v5038_v24 }
 0x293   : > { %v3686_v10 = vpack.c.bf16 %v2316_v42, %v2312_v45  ;;  %v2046_v39 = vsel %vm1774_vm0, %v5068_v16, 0.0  ;;  %v2314_v56 = vsel %vm1494_vm13, %v5071_v57, %v2042_v18  ;;  %vm1495_vm2 = vcmp.eq.s32.totalorder %v4987_v61, %v5038_v24 }
 0x294   : > { %v2318_v7 = vsel %vm1498_vm14, %v5071_v57, %v2046_v39  ;;  %vm1767_vm3 = vcmp.eq.s32.totalorder %v4984_v13, %v5059_v0  ;;  %vm1771_vm4 = vcmp.eq.s32.totalorder %v4987_v61, %v5059_v0  ;;  %vm1493_vm5 = vcmp.eq.s32.totalorder %v4984_v13, %v5044_v55 }
 0x295   : > { %3687 = vmatprep.subr.bf16.mxu0 %v3686_v10  ;;  %v3814_v28 = vpack.c.bf16 %v2318_v7, %v2314_v56  ;;  %v2039_v5 = vsel %vm1767_vm3, %v5032_v41, 0.0  ;;  %v2043_v14 = vsel %vm1771_vm4, %v5032_v41, 0.0  ;;  %vm1497_vm6 = vcmp.eq.s32.totalorder %v4987_v61, %v5044_v55 }
 0x296   : > { %v2311_v20 = vsel %vm1491_vm1, %v5041_v31, %v2039_v5  ;;  %v2315_v2 = vsel %vm1495_vm2, %v5041_v31, %v2043_v14  ;;  %vm1769_vm7 = vcmp.eq.s32.totalorder %v4984_v13, %v5062_v60  ;;  %vm1773_vm8 = vcmp.eq.s32.totalorder %v4987_v61, %v5062_v60 }
 0x297   : > { %3815 = vmatprep.subr.bf16.mxu1 %v3814_v28  ;;  %v3688_v52 = vpack.c.bf16 %v2315_v2, %v2311_v20  ;;  %v2041_v21 = vsel %vm1769_vm7, %v5035_v8, 0.0  ;;  %v2045_v3 = vsel %vm1773_vm8, %v5035_v8, 0.0  ;;  %vm1500_vm9 = vcmp.eq.s32.totalorder %v4990_v47, %v5050_v22 }
 0x298   : > { %v2313_v6 = vsel %vm1493_vm5, %v5047_v62, %v2041_v21  ;;  %v2317_v33 = vsel %vm1497_vm6, %v5047_v62, %v2045_v3  ;;  %vm1504_vm10 = vcmp.eq.s32.totalorder %v4993_v19, %v5050_v22  ;;  %vm1776_vm11 = vcmp.eq.s32.totalorder %v4990_v47, %v5065_v40 }
 0x299   : > { %3689 = vmatpush1.bf16.msra.mxu0 %v3688_v52  ;;  %v3816_v13 = vpack.c.bf16 %v2317_v33, %v2313_v6  ;;  %vm1780_vm12 = vcmp.eq.s32.totalorder %v4993_v19, %v5065_v40  ;;  %v2048_v61 = vsel %vm1776_vm11, %v5053_v30, 0.0  ;;  %vm1502_vm13 = vcmp.eq.s32.totalorder %v4990_v47, %v5080_v1 }
 0x29a   : > { %v2052_v15 = vsel %vm1780_vm12, %v5053_v30, 0.0  ;;  %v2320_v44 = vsel %vm1500_vm9, %v5056_v32, %v2048_v61  ;;  %vm1506_vm14 = vcmp.eq.s32.totalorder %v4993_v19, %v5080_v1  ;;  %vm1778_vm15 = vcmp.eq.s32.totalorder %v4990_v47, %v5101_v53 }
 0x29b   : > { %3817 = vmatpush1.bf16.msra.mxu1 %v3816_v13  ;;  %v2324_v9 = vsel %vm1504_vm10, %v5056_v32, %v2052_v15  ;;  %vm1782_vm0 = vcmp.eq.s32.totalorder %v4993_v19, %v5101_v53  ;;  %v2050_v51 = vsel %vm1778_vm15, %v5068_v16, 0.0  ;;  %vm1499_vm1 = vcmp.eq.s32.totalorder %v4990_v47, %v5038_v24 }
 0x29c   : > { %v3690_v43 = vpack.c.bf16 %v2324_v9, %v2320_v44  ;;  %v2054_v25 = vsel %vm1782_vm0, %v5068_v16, 0.0  ;;  %v2322_v12 = vsel %vm1502_vm13, %v5071_v57, %v2050_v51  ;;  %vm1503_vm2 = vcmp.eq.s32.totalorder %v4993_v19, %v5038_v24 }
 0x29d   : > { %v2326_v29 = vsel %vm1506_vm14, %v5071_v57, %v2054_v25  ;;  %vm1775_vm3 = vcmp.eq.s32.totalorder %v4990_v47, %v5059_v0  ;;  %vm1779_vm4 = vcmp.eq.s32.totalorder %v4993_v19, %v5059_v0  ;;  %vm1501_vm5 = vcmp.eq.s32.totalorder %v4990_v47, %v5044_v55 }
 0x29e   : > { %3691 = vmatprep.subr.bf16.mxu0 %v3690_v43  ;;  %v3818_v38 = vpack.c.bf16 %v2326_v29, %v2322_v12  ;;  %v2047_v26 = vsel %vm1775_vm3, %v5032_v41, 0.0  ;;  %v2051_v59 = vsel %vm1779_vm4, %v5032_v41, 0.0  ;;  %vm1505_vm6 = vcmp.eq.s32.totalorder %v4993_v19, %v5044_v55 }
 0x29f   : > { %v2319_v54 = vsel %vm1499_vm1, %v5041_v31, %v2047_v26  ;;  %v2323_v45 = vsel %vm1503_vm2, %v5041_v31, %v2051_v59  ;;  %vm1777_vm7 = vcmp.eq.s32.totalorder %v4990_v47, %v5062_v60  ;;  %vm1781_vm8 = vcmp.eq.s32.totalorder %v4993_v19, %v5062_v60 }
 0x2a0   : > { %3819 = vmatprep.subr.bf16.mxu1 %v3818_v38  ;;  %v3692_v42 = vpack.c.bf16 %v2323_v45, %v2319_v54  ;;  %v2049_v18 = vsel %vm1777_vm7, %v5035_v8, 0.0  ;;  %v2053_v10 = vsel %vm1781_vm8, %v5035_v8, 0.0  ;;  %vm1508_vm9 = vcmp.eq.s32.totalorder %v4996_v23, %v5050_v22 }
 0x2a1   : > { %v2321_v39 = vsel %vm1501_vm5, %v5047_v62, %v2049_v18  ;;  %v2325_v56 = vsel %vm1505_vm6, %v5047_v62, %v2053_v10  ;;  %vm1512_vm10 = vcmp.eq.s32.totalorder %v4999_v35, %v5050_v22  ;;  %vm1784_vm11 = vcmp.eq.s32.totalorder %v4996_v23, %v5065_v40 }
 0x2a2   : > { %3693 = vmatpush1.bf16.msra.mxu0 %v3692_v42  ;;  %v3820_v47 = vpack.c.bf16 %v2325_v56, %v2321_v39  ;;  %vm1788_vm12 = vcmp.eq.s32.totalorder %v4999_v35, %v5065_v40  ;;  %v2056_v19 = vsel %vm1784_vm11, %v5053_v30, 0.0  ;;  %vm1510_vm13 = vcmp.eq.s32.totalorder %v4996_v23, %v5080_v1 }
 0x2a3   : > { %v2060_v7 = vsel %vm1788_vm12, %v5053_v30, 0.0  ;;  %v2328_v28 = vsel %vm1508_vm9, %v5056_v32, %v2056_v19  ;;  %vm1514_vm14 = vcmp.eq.s32.totalorder %v4999_v35, %v5080_v1  ;;  %vm1786_vm15 = vcmp.eq.s32.totalorder %v4996_v23, %v5101_v53 }
 0x2a4   : > { %3821 = vmatpush1.bf16.msra.mxu1 %v3820_v47  ;;  %v2332_v5 = vsel %vm1512_vm10, %v5056_v32, %v2060_v7  ;;  %vm1790_vm0 = vcmp.eq.s32.totalorder %v4999_v35, %v5101_v53  ;;  %v2058_v14 = vsel %vm1786_vm15, %v5068_v16, 0.0  ;;  %vm1507_vm1 = vcmp.eq.s32.totalorder %v4996_v23, %v5038_v24 }
 0x2a5   : > { %v3694_v20 = vpack.c.bf16 %v2332_v5, %v2328_v28  ;;  %v2062_v2 = vsel %vm1790_vm0, %v5068_v16, 0.0  ;;  %v2330_v52 = vsel %vm1510_vm13, %v5071_v57, %v2058_v14  ;;  %vm1511_vm2 = vcmp.eq.s32.totalorder %v4999_v35, %v5038_v24 }
 0x2a6   : > { %v2334_v21 = vsel %vm1514_vm14, %v5071_v57, %v2062_v2  ;;  %vm1783_vm3 = vcmp.eq.s32.totalorder %v4996_v23, %v5059_v0  ;;  %vm1787_vm4 = vcmp.eq.s32.totalorder %v4999_v35, %v5059_v0  ;;  %vm1509_vm5 = vcmp.eq.s32.totalorder %v4996_v23, %v5044_v55 }
 0x2a7   : > { %3695 = vmatprep.subr.bf16.mxu0 %v3694_v20  ;;  %v3822_v3 = vpack.c.bf16 %v2334_v21, %v2330_v52  ;;  %v2055_v6 = vsel %vm1783_vm3, %v5032_v41, 0.0  ;;  %v2059_v33 = vsel %vm1787_vm4, %v5032_v41, 0.0  ;;  %vm1513_vm6 = vcmp.eq.s32.totalorder %v4999_v35, %v5044_v55 }
 0x2a8   : > { %v2327_v13 = vsel %vm1507_vm1, %v5041_v31, %v2055_v6  ;;  %v2331_v61 = vsel %vm1511_vm2, %v5041_v31, %v2059_v33  ;;  %vm1785_vm7 = vcmp.eq.s32.totalorder %v4996_v23, %v5062_v60  ;;  %vm1789_vm8 = vcmp.eq.s32.totalorder %v4999_v35, %v5062_v60 }
 0x2a9   : > { %3823 = vmatprep.subr.bf16.mxu1 %v3822_v3  ;;  %v3696_v15 = vpack.c.bf16 %v2331_v61, %v2327_v13  ;;  %v2057_v44 = vsel %vm1785_vm7, %v5035_v8, 0.0  ;;  %v2061_v9 = vsel %vm1789_vm8, %v5035_v8, 0.0  ;;  %vm1516_vm9 = vcmp.eq.s32.totalorder %v5002_v36, %v5050_v22 }
 0x2aa   : > { %v2329_v51 = vsel %vm1509_vm5, %v5047_v62, %v2057_v44  ;;  %v2333_v43 = vsel %vm1513_vm6, %v5047_v62, %v2061_v9  ;;  %vm1520_vm10 = vcmp.eq.s32.totalorder %v5005_v48, %v5050_v22  ;;  %vm1792_vm11 = vcmp.eq.s32.totalorder %v5002_v36, %v5065_v40 }
 0x2ab   : > { %3697 = vmatpush1.bf16.msra.mxu0 %v3696_v15  ;;  %v3824_v23 = vpack.c.bf16 %v2333_v43, %v2329_v51  ;;  %vm1796_vm12 = vcmp.eq.s32.totalorder %v5005_v48, %v5065_v40  ;;  %v2064_v35 = vsel %vm1792_vm11, %v5053_v30, 0.0  ;;  %vm1518_vm13 = vcmp.eq.s32.totalorder %v5002_v36, %v5080_v1 }
 0x2ac   : > { %v2068_v25 = vsel %vm1796_vm12, %v5053_v30, 0.0  ;;  %v2336_v12 = vsel %vm1516_vm9, %v5056_v32, %v2064_v35  ;;  %vm1522_vm14 = vcmp.eq.s32.totalorder %v5005_v48, %v5080_v1  ;;  %vm1794_vm15 = vcmp.eq.s32.totalorder %v5002_v36, %v5101_v53 }
 0x2ad   : > { %3825 = vmatpush1.bf16.msra.mxu1 %v3824_v23  ;;  %v2340_v29 = vsel %vm1520_vm10, %v5056_v32, %v2068_v25  ;;  %vm1798_vm0 = vcmp.eq.s32.totalorder %v5005_v48, %v5101_v53  ;;  %v2066_v38 = vsel %vm1794_vm15, %v5068_v16, 0.0  ;;  %vm1515_vm1 = vcmp.eq.s32.totalorder %v5002_v36, %v5038_v24 }
 0x2ae   : > { %v3698_v26 = vpack.c.bf16 %v2340_v29, %v2336_v12  ;;  %v2070_v59 = vsel %vm1798_vm0, %v5068_v16, 0.0  ;;  %v2338_v54 = vsel %vm1518_vm13, %v5071_v57, %v2066_v38  ;;  %vm1519_vm2 = vcmp.eq.s32.totalorder %v5005_v48, %v5038_v24 }
 0x2af   : > { %v2342_v45 = vsel %vm1522_vm14, %v5071_v57, %v2070_v59  ;;  %vm1791_vm3 = vcmp.eq.s32.totalorder %v5002_v36, %v5059_v0  ;;  %vm1795_vm4 = vcmp.eq.s32.totalorder %v5005_v48, %v5059_v0  ;;  %vm1517_vm5 = vcmp.eq.s32.totalorder %v5002_v36, %v5044_v55 }
 0x2b0   : > { %3699 = vmatprep.subr.bf16.mxu0 %v3698_v26  ;;  %v3826_v42 = vpack.c.bf16 %v2342_v45, %v2338_v54  ;;  %v2063_v18 = vsel %vm1791_vm3, %v5032_v41, 0.0  ;;  %v2067_v10 = vsel %vm1795_vm4, %v5032_v41, 0.0  ;;  %vm1521_vm6 = vcmp.eq.s32.totalorder %v5005_v48, %v5044_v55 }
 0x2b1   : > { %v2335_v39 = vsel %vm1515_vm1, %v5041_v31, %v2063_v18  ;;  %v2339_v56 = vsel %vm1519_vm2, %v5041_v31, %v2067_v10  ;;  %vm1793_vm7 = vcmp.eq.s32.totalorder %v5002_v36, %v5062_v60  ;;  %vm1797_vm8 = vcmp.eq.s32.totalorder %v5005_v48, %v5062_v60 }
 0x2b2   : > { %3827 = vmatprep.subr.bf16.mxu1 %v3826_v42  ;;  %v3700_v47 = vpack.c.bf16 %v2339_v56, %v2335_v39  ;;  %v2065_v19 = vsel %vm1793_vm7, %v5035_v8, 0.0  ;;  %v2069_v7 = vsel %vm1797_vm8, %v5035_v8, 0.0  ;;  %vm1524_vm9 = vcmp.eq.s32.totalorder %v5008_v49, %v5050_v22 }
 0x2b3   : > { %v2337_v28 = vsel %vm1517_vm5, %v5047_v62, %v2065_v19  ;;  %v2341_v5 = vsel %vm1521_vm6, %v5047_v62, %v2069_v7  ;;  %vm1528_vm10 = vcmp.eq.s32.totalorder %v5011_v63, %v5050_v22  ;;  %vm1800_vm11 = vcmp.eq.s32.totalorder %v5008_v49, %v5065_v40 }
 0x2b4   : > { %3701 = vmatpush1.bf16.msra.mxu0 %v3700_v47  ;;  %v3828_v36 = vpack.c.bf16 %v2341_v5, %v2337_v28  ;;  %vm1804_vm12 = vcmp.eq.s32.totalorder %v5011_v63, %v5065_v40  ;;  %v2072_v48 = vsel %vm1800_vm11, %v5053_v30, 0.0  ;;  %vm1526_vm13 = vcmp.eq.s32.totalorder %v5008_v49, %v5080_v1 }
 0x2b5   : > { %v2076_v14 = vsel %vm1804_vm12, %v5053_v30, 0.0  ;;  %v2344_v20 = vsel %vm1524_vm9, %v5056_v32, %v2072_v48  ;;  %vm1530_vm14 = vcmp.eq.s32.totalorder %v5011_v63, %v5080_v1  ;;  %vm1802_vm15 = vcmp.eq.s32.totalorder %v5008_v49, %v5101_v53 }
 0x2b6   : > { %3829 = vmatpush1.bf16.msra.mxu1 %v3828_v36  ;;  %v2348_v2 = vsel %vm1528_vm10, %v5056_v32, %v2076_v14  ;;  %vm1806_vm0 = vcmp.eq.s32.totalorder %v5011_v63, %v5101_v53  ;;  %v2074_v52 = vsel %vm1802_vm15, %v5068_v16, 0.0  ;;  %vm1523_vm1 = vcmp.eq.s32.totalorder %v5008_v49, %v5038_v24 }
 0x2b7   : > { %v3702_v21 = vpack.c.bf16 %v2348_v2, %v2344_v20  ;;  %v2078_v3 = vsel %vm1806_vm0, %v5068_v16, 0.0  ;;  %v2346_v6 = vsel %vm1526_vm13, %v5071_v57, %v2074_v52  ;;  %vm1527_vm2 = vcmp.eq.s32.totalorder %v5011_v63, %v5038_v24 }
 0x2b8   : > { %v2350_v33 = vsel %vm1530_vm14, %v5071_v57, %v2078_v3  ;;  %vm1799_vm3 = vcmp.eq.s32.totalorder %v5008_v49, %v5059_v0  ;;  %vm1803_vm4 = vcmp.eq.s32.totalorder %v5011_v63, %v5059_v0  ;;  %vm1525_vm5 = vcmp.eq.s32.totalorder %v5008_v49, %v5044_v55 }
 0x2b9   : > { %3703 = vmatprep.subr.bf16.mxu0 %v3702_v21  ;;  %v3830_v13 = vpack.c.bf16 %v2350_v33, %v2346_v6  ;;  %v2071_v61 = vsel %vm1799_vm3, %v5032_v41, 0.0  ;;  %v2075_v15 = vsel %vm1803_vm4, %v5032_v41, 0.0  ;;  %vm1529_vm6 = vcmp.eq.s32.totalorder %v5011_v63, %v5044_v55 }
 0x2ba   : > { %v2343_v44 = vsel %vm1523_vm1, %v5041_v31, %v2071_v61  ;;  %v2347_v9 = vsel %vm1527_vm2, %v5041_v31, %v2075_v15  ;;  %vm1801_vm7 = vcmp.eq.s32.totalorder %v5008_v49, %v5062_v60  ;;  %vm1805_vm8 = vcmp.eq.s32.totalorder %v5011_v63, %v5062_v60 }
 0x2bb   : > { %3831 = vmatprep.subr.bf16.mxu1 %v3830_v13  ;;  %v3704_v51 = vpack.c.bf16 %v2347_v9, %v2343_v44  ;;  %v2073_v43 = vsel %vm1801_vm7, %v5035_v8, 0.0  ;;  %v2077_v23 = vsel %vm1805_vm8, %v5035_v8, 0.0  ;;  %vm1532_vm9 = vcmp.eq.s32.totalorder %v5014_v4, %v5050_v22 }
 0x2bc   : > { %v2345_v35 = vsel %vm1525_vm5, %v5047_v62, %v2073_v43  ;;  %v2349_v25 = vsel %vm1529_vm6, %v5047_v62, %v2077_v23  ;;  %vm1536_vm10 = vcmp.eq.s32.totalorder %v5017_v27, %v5050_v22  ;;  %vm1808_vm11 = vcmp.eq.s32.totalorder %v5014_v4, %v5065_v40 }
 0x2bd   : > { %3705 = vmatpush1.bf16.msra.mxu0 %v3704_v51  ;;  %v3832_v49 = vpack.c.bf16 %v2349_v25, %v2345_v35  ;;  %vm1812_vm12 = vcmp.eq.s32.totalorder %v5017_v27, %v5065_v40  ;;  %v2080_v63 = vsel %vm1808_vm11, %v5053_v30, 0.0  ;;  %vm1534_vm13 = vcmp.eq.s32.totalorder %v5014_v4, %v5080_v1 }
 0x2be   : > { %v2084_v12 = vsel %vm1812_vm12, %v5053_v30, 0.0  ;;  %v2352_v29 = vsel %vm1532_vm9, %v5056_v32, %v2080_v63  ;;  %vm1538_vm14 = vcmp.eq.s32.totalorder %v5017_v27, %v5080_v1  ;;  %vm1810_vm15 = vcmp.eq.s32.totalorder %v5014_v4, %v5101_v53 }
 0x2bf   : > { %3833 = vmatpush1.bf16.msra.mxu1 %v3832_v49  ;;  %v2356_v38 = vsel %vm1536_vm10, %v5056_v32, %v2084_v12  ;;  %vm1814_vm0 = vcmp.eq.s32.totalorder %v5017_v27, %v5101_v53  ;;  %v2082_v26 = vsel %vm1810_vm15, %v5068_v16, 0.0  ;;  %vm1531_vm1 = vcmp.eq.s32.totalorder %v5014_v4, %v5038_v24 }
 0x2c0   : > { %v3706_v59 = vpack.c.bf16 %v2356_v38, %v2352_v29  ;;  %v2086_v54 = vsel %vm1814_vm0, %v5068_v16, 0.0  ;;  %v2354_v45 = vsel %vm1534_vm13, %v5071_v57, %v2082_v26  ;;  %vm1535_vm2 = vcmp.eq.s32.totalorder %v5017_v27, %v5038_v24 }
 0x2c1   : > { %v2358_v42 = vsel %vm1538_vm14, %v5071_v57, %v2086_v54  ;;  %vm1807_vm3 = vcmp.eq.s32.totalorder %v5014_v4, %v5059_v0  ;;  %vm1811_vm4 = vcmp.eq.s32.totalorder %v5017_v27, %v5059_v0  ;;  %vm1533_vm5 = vcmp.eq.s32.totalorder %v5014_v4, %v5044_v55 }
 0x2c2   : > { %3707 = vmatprep.subr.bf16.mxu0 %v3706_v59  ;;  %v3834_v18 = vpack.c.bf16 %v2358_v42, %v2354_v45  ;;  %v2079_v10 = vsel %vm1807_vm3, %v5032_v41, 0.0  ;;  %v2083_v39 = vsel %vm1811_vm4, %v5032_v41, 0.0  ;;  %vm1537_vm6 = vcmp.eq.s32.totalorder %v5017_v27, %v5044_v55 }
 0x2c3   : > { %v2351_v56 = vsel %vm1531_vm1, %v5041_v31, %v2079_v10  ;;  %v2355_v47 = vsel %vm1535_vm2, %v5041_v31, %v2083_v39  ;;  %vm1809_vm7 = vcmp.eq.s32.totalorder %v5014_v4, %v5062_v60  ;;  %vm1813_vm8 = vcmp.eq.s32.totalorder %v5017_v27, %v5062_v60 }
 0x2c4   : > { %3835 = vmatprep.subr.bf16.mxu1 %v3834_v18  ;;  %v3708_v19 = vpack.c.bf16 %v2355_v47, %v2351_v56  ;;  %v2081_v7 = vsel %vm1809_vm7, %v5035_v8, 0.0  ;;  %v2085_v28 = vsel %vm1813_vm8, %v5035_v8, 0.0  ;;  %vm1540_vm9 = vcmp.eq.s32.totalorder %v5020_v58, %v5050_v22 }
 0x2c5   : > { %v2353_v5 = vsel %vm1533_vm5, %v5047_v62, %v2081_v7  ;;  %v2357_v36 = vsel %vm1537_vm6, %v5047_v62, %v2085_v28  ;;  %vm1544_vm10 = vcmp.eq.s32.totalorder %v5023_v17, %v5050_v22  ;;  %vm1816_vm11 = vcmp.eq.s32.totalorder %v5020_v58, %v5065_v40 }
 0x2c6   : > { %3709 = vmatpush1.bf16.msra.mxu0 %v3708_v19  ;;  %v3836_v4 = vpack.c.bf16 %v2357_v36, %v2353_v5  ;;  %vm1820_vm12 = vcmp.eq.s32.totalorder %v5023_v17, %v5065_v40  ;;  %v2088_v27 = vsel %vm1816_vm11, %v5053_v30, 0.0  ;;  %vm1542_vm13 = vcmp.eq.s32.totalorder %v5020_v58, %v5080_v1 }
 0x2c7   : > { %v2092_v48 = vsel %vm1820_vm12, %v5053_v30, 0.0  ;;  %v2360_v14 = vsel %vm1540_vm9, %v5056_v32, %v2088_v27  ;;  %vm1546_vm14 = vcmp.eq.s32.totalorder %v5023_v17, %v5080_v1  ;;  %vm1818_vm15 = vcmp.eq.s32.totalorder %v5020_v58, %v5101_v53 }
 0x2c8   : > { %3837 = vmatpush1.bf16.msra.mxu1 %v3836_v4  ;;  %v2364_v20 = vsel %vm1544_vm10, %v5056_v32, %v2092_v48  ;;  %vm1822_vm0 = vcmp.eq.s32.totalorder %v5023_v17, %v5101_v53  ;;  %v2090_v2 = vsel %vm1818_vm15, %v5068_v16, 0.0  ;;  %vm1539_vm1 = vcmp.eq.s32.totalorder %v5020_v58, %v5038_v24 }
 0x2c9   : > { %v3710_v52 = vpack.c.bf16 %v2364_v20, %v2360_v14  ;;  %v2094_v21 = vsel %vm1822_vm0, %v5068_v16, 0.0  ;;  %v2362_v3 = vsel %vm1542_vm13, %v5071_v57, %v2090_v2  ;;  %vm1543_vm2 = vcmp.eq.s32.totalorder %v5023_v17, %v5038_v24 }
 0x2ca   : > { %v2366_v6 = vsel %vm1546_vm14, %v5071_v57, %v2094_v21  ;;  %vm1815_vm3 = vcmp.eq.s32.totalorder %v5020_v58, %v5059_v0  ;;  %vm1819_vm4 = vcmp.eq.s32.totalorder %v5023_v17, %v5059_v0  ;;  %vm1541_vm5 = vcmp.eq.s32.totalorder %v5020_v58, %v5044_v55 }
 0x2cb   : > { %3711 = vmatprep.subr.bf16.mxu0 %v3710_v52  ;;  %v3838_v33 = vpack.c.bf16 %v2366_v6, %v2362_v3  ;;  %v2087_v13 = vsel %vm1815_vm3, %v5032_v41, 0.0  ;;  %v2091_v61 = vsel %vm1819_vm4, %v5032_v41, 0.0  ;;  %vm1545_vm6 = vcmp.eq.s32.totalorder %v5023_v17, %v5044_v55 }
 0x2cc   : > { %v2359_v15 = vsel %vm1539_vm1, %v5041_v31, %v2087_v13  ;;  %v2363_v44 = vsel %vm1543_vm2, %v5041_v31, %v2091_v61  ;;  %vm1817_vm7 = vcmp.eq.s32.totalorder %v5020_v58, %v5062_v60  ;;  %vm1821_vm8 = vcmp.eq.s32.totalorder %v5023_v17, %v5062_v60 }
 0x2cd   : > { %3839 = vmatprep.subr.bf16.mxu1 %v3838_v33  ;;  %v3712_v9 = vpack.c.bf16 %v2363_v44, %v2359_v15  ;;  %v2089_v51 = vsel %vm1817_vm7, %v5035_v8, 0.0  ;;  %v2093_v43 = vsel %vm1821_vm8, %v5035_v8, 0.0  ;;  %vm1548_vm9 = vcmp.eq.s32.totalorder %v5026_v11, %v5050_v22 }
 0x2ce   : > { %v2361_v23 = vsel %vm1541_vm5, %v5047_v62, %v2089_v51  ;;  %v2365_v35 = vsel %vm1545_vm6, %v5047_v62, %v2093_v43  ;;  %vm1552_vm10 = vcmp.eq.s32.totalorder %v5029_v50, %v5050_v22  ;;  %vm1824_vm11 = vcmp.eq.s32.totalorder %v5026_v11, %v5065_v40 }
 0x2cf   : > { %3713 = vmatpush1.bf16.msra.mxu0 %v3712_v9  ;;  %v3840_v58 = vpack.c.bf16 %v2365_v35, %v2361_v23  ;;  %vm1828_vm12 = vcmp.eq.s32.totalorder %v5029_v50, %v5065_v40  ;;  %v2096_v17 = vsel %vm1824_vm11, %v5053_v30, 0.0  ;;  %vm1550_vm13 = vcmp.eq.s32.totalorder %v5026_v11, %v5080_v1 }
 0x2d0   : > { %v2100_v25 = vsel %vm1828_vm12, %v5053_v30, 0.0  ;;  %v2368_v49 = vsel %vm1548_vm9, %v5056_v32, %v2096_v17  ;;  %vm1554_vm14 = vcmp.eq.s32.totalorder %v5029_v50, %v5080_v1  ;;  %vm1826_vm15 = vcmp.eq.s32.totalorder %v5026_v11, %v5101_v53 }
 0x2d1   : > { %3841 = vmatpush1.bf16.msra.mxu1 %v3840_v58  ;;  %v2372_v63 = vsel %vm1552_vm10, %v5056_v32, %v2100_v25  ;;  %vm1830_vm0 = vcmp.eq.s32.totalorder %v5029_v50, %v5101_v53  ;;  %v2098_v12 = vsel %vm1826_vm15, %v5068_v16, 0.0  ;;  %vm1547_vm1 = vcmp.eq.s32.totalorder %v5026_v11, %v5038_v24 }
 0x2d2   : > { %v3714_v29 = vpack.c.bf16 %v2372_v63, %v2368_v49  ;;  %v2102_v38 = vsel %vm1830_vm0, %v5068_v16, 0.0  ;;  %v2370_v26 = vsel %vm1550_vm13, %v5071_v57, %v2098_v12  ;;  %vm1551_vm2 = vcmp.eq.s32.totalorder %v5029_v50, %v5038_v24 }
 0x2d3   : > { %v2374_v59 = vsel %vm1554_vm14, %v5071_v57, %v2102_v38  ;;  %vm1823_vm3 = vcmp.eq.s32.totalorder %v5026_v11, %v5059_v0  ;;  %vm1827_vm4 = vcmp.eq.s32.totalorder %v5029_v50, %v5059_v0  ;;  %vm1549_vm5 = vcmp.eq.s32.totalorder %v5026_v11, %v5044_v55 }
 0x2d4   : > { %3715 = vmatprep.subr.bf16.mxu0 %v3714_v29  ;;  %v3842_v54 = vpack.c.bf16 %v2374_v59, %v2370_v26  ;;  %v2095_v45 = vsel %vm1823_vm3, %v5032_v41, 0.0  ;;  %v2099_v42 = vsel %vm1827_vm4, %v5032_v41, 0.0  ;;  %vm1553_vm6 = vcmp.eq.s32.totalorder %v5029_v50, %v5044_v55 }
 0x2d5   : > { %v2367_v18 = vsel %vm1547_vm1, %v5041_v31, %v2095_v45  ;;  %v2371_v10 = vsel %vm1551_vm2, %v5041_v31, %v2099_v42  ;;  %vm1825_vm7 = vcmp.eq.s32.totalorder %v5026_v11, %v5062_v60  ;;  %vm1829_vm8 = vcmp.eq.s32.totalorder %v5029_v50, %v5062_v60 }
 0x2d6   : > { %3843 = vmatprep.subr.bf16.mxu1 %v3842_v54  ;;  %v3716_v39 = vpack.c.bf16 %v2371_v10, %v2367_v18  ;;  %v2097_v56 = vsel %vm1825_vm7, %v5035_v8, 0.0  ;;  %v2101_v47 = vsel %vm1829_vm8, %v5035_v8, 0.0  ;;  %v1391_v19 = vadd.s32 224, %v6938_v37 }
 0x2d7   : > { %v2369_v7 = vsel %vm1549_vm5, %v5047_v62, %v2097_v56  ;;  %v2373_v28 = vsel %vm1553_vm6, %v5047_v62, %v2101_v47  ;;  %v1392_v5 = vadd.s32 232, %v6938_v37  ;;  %v5775_v36 = vadd.s32 240, %v6938_v37 }
 0x2d8   : > { %3717 = vmatpush1.bf16.msra.mxu0 %v3716_v39  ;;  %v3844_v11 = vpack.c.bf16 %v2373_v28, %v2369_v7  ;;  %vm1556_vm9 = vcmp.eq.s32.totalorder %v1391_v19, %v5050_v22  ;;  %vm1832_vm10 = vcmp.eq.s32.totalorder %v1391_v19, %v5065_v40  ;;  %vm1558_vm11 = vcmp.eq.s32.totalorder %v1391_v19, %v5080_v1 }
 0x2d9   : > { %vm1560_vm12 = vcmp.eq.s32.totalorder %v1392_v5, %v5050_v22  ;;  %vm1836_vm13 = vcmp.eq.s32.totalorder %v1392_v5, %v5065_v40  ;;  %v2104_v50 = vsel %vm1832_vm10, %v5053_v30, 0.0  ;;  %vm1562_vm14 = vcmp.eq.s32.totalorder %v1392_v5, %v5080_v1 }
 0x2da   : > { %3845 = vmatpush1.bf16.msra.mxu1 %v3844_v11  ;;  %v2108_v4 = vsel %vm1836_vm13, %v5053_v30, 0.0  ;;  %v2376_v27 = vsel %vm1556_vm9, %v5056_v32, %v2104_v50  ;;  %vm1834_vm15 = vcmp.eq.s32.totalorder %v1391_v19, %v5101_v53  ;;  %vm1838_vm0 = vcmp.eq.s32.totalorder %v1392_v5, %v5101_v53  ;;  %v2519_v11 = vld [vmem:[%s6649_s3] sm:$0xff] }
 0x2db   : > { %v2380_v48 = vsel %vm1560_vm12, %v5056_v32, %v2108_v4  ;;  %v2106_v14 = vsel %vm1834_vm15, %v5068_v16, 0.0  ;;  %v2110_v20 = vsel %vm1838_vm0, %v5068_v16, 0.0  ;;  %vm1555_vm1 = vcmp.eq.s32.totalorder %v1391_v19, %v5038_v24 }
 0x2dc   : > { %v3718_v2 = vpack.c.bf16 %v2380_v48, %v2376_v27  ;;  %v2378_v52 = vsel %vm1558_vm11, %v5071_v57, %v2106_v14  ;;  %v2382_v21 = vsel %vm1562_vm14, %v5071_v57, %v2110_v20  ;;  %vm1559_vm2 = vcmp.eq.s32.totalorder %v1392_v5, %v5038_v24 }
 0x2dd   : > { %v3846_v3 = vpack.c.bf16 %v2382_v21, %v2378_v52  ;;  %vm1831_vm3 = vcmp.eq.s32.totalorder %v1391_v19, %v5059_v0  ;;  %vm1835_vm4 = vcmp.eq.s32.totalorder %v1392_v5, %v5059_v0  ;;  %vm1557_vm5 = vcmp.eq.s32.totalorder %v1391_v19, %v5044_v55 }
 0x2de   : > { %3719 = vmatprep.subr.bf16.mxu0 %v3718_v2  ;;  %v2103_v6 = vsel %vm1831_vm3, %v5032_v41, 0.0  ;;  %v2107_v33 = vsel %vm1835_vm4, %v5032_v41, 0.0  ;;  %vm1561_vm6 = vcmp.eq.s32.totalorder %v1392_v5, %v5044_v55  ;;  %vm1833_vm7 = vcmp.eq.s32.totalorder %v1391_v19, %v5062_v60 }
 0x2df   : > { %3847 = vmatprep.subr.bf16.mxu1 %v3846_v3  ;;  %v2375_v13 = vsel %vm1555_vm1, %v5041_v31, %v2103_v6  ;;  %v2379_v61 = vsel %vm1559_vm2, %v5041_v31, %v2107_v33  ;;  %vm1837_vm8 = vcmp.eq.s32.totalorder %v1392_v5, %v5062_v60  ;;  %v2105_v15 = vsel %vm1833_vm7, %v5035_v8, 0.0 }
 0x2e0   : > { %v3720_v44 = vpack.c.bf16 %v2379_v61, %v2375_v13  ;;  %v2109_v9 = vsel %vm1837_vm8, %v5035_v8, 0.0  ;;  %v2377_v51 = vsel %vm1557_vm5, %v5047_v62, %v2105_v15  ;;  %v1394_v43 = vadd.s32 248, %v6938_v37 }
 0x2e1   : > { %v2381_v23 = vsel %vm1561_vm6, %v5047_v62, %v2109_v9  ;;  %vm1564_vm9 = vcmp.eq.s32.totalorder %v5775_v36, %v5050_v22  ;;  %vm1840_vm10 = vcmp.eq.s32.totalorder %v5775_v36, %v5065_v40  ;;  %vm1566_vm11 = vcmp.eq.s32.totalorder %v5775_v36, %v5080_v1 }
 0x2e2   : > { %3721 = vmatpush1.bf16.msra.mxu0 %v3720_v44  ;;  %v3848_v35 = vpack.c.bf16 %v2381_v23, %v2377_v51  ;;  %vm1568_vm12 = vcmp.eq.s32.totalorder %v1394_v43, %v5050_v22  ;;  %vm1844_vm13 = vcmp.eq.s32.totalorder %v1394_v43, %v5065_v40  ;;  %v2112_v58 = vsel %vm1840_vm10, %v5053_v30, 0.0 }
 0x2e3   : > { %v2116_v17 = vsel %vm1844_vm13, %v5053_v30, 0.0  ;;  %v2384_v25 = vsel %vm1564_vm9, %v5056_v32, %v2112_v58  ;;  %vm1570_vm14 = vcmp.eq.s32.totalorder %v1394_v43, %v5080_v1  ;;  %vm1842_vm15 = vcmp.eq.s32.totalorder %v5775_v36, %v5101_v53 }
 0x2e4   : > { %3849 = vmatpush1.bf16.msra.mxu1 %v3848_v35  ;;  %v2388_v49 = vsel %vm1568_vm12, %v5056_v32, %v2116_v17  ;;  %vm1846_vm0 = vcmp.eq.s32.totalorder %v1394_v43, %v5101_v53  ;;  %v2114_v63 = vsel %vm1842_vm15, %v5068_v16, 0.0  ;;  %vm1563_vm1 = vcmp.eq.s32.totalorder %v5775_v36, %v5038_v24 }
 0x2e5   : > { %v3722_v12 = vpack.c.bf16 %v2388_v49, %v2384_v25  ;;  %v2118_v29 = vsel %vm1846_vm0, %v5068_v16, 0.0  ;;  %v2386_v38 = vsel %vm1566_vm11, %v5071_v57, %v2114_v63  ;;  %vm1567_vm2 = vcmp.eq.s32.totalorder %v1394_v43, %v5038_v24 }
 0x2e6   : > { %v2390_v26 = vsel %vm1570_vm14, %v5071_v57, %v2118_v29  ;;  %vm1839_vm3 = vcmp.eq.s32.totalorder %v5775_v36, %v5059_v0  ;;  %vm1843_vm4 = vcmp.eq.s32.totalorder %v1394_v43, %v5059_v0  ;;  %vm1565_vm5 = vcmp.eq.s32.totalorder %v5775_v36, %v5044_v55  ;;  %v2523_v29 = vld [vmem:[%s6649_s3 + $0x20] sm:$0xff] }
 0x2e7   : > { %3723 = vmatprep.subr.bf16.mxu0 %v3722_v12  ;;  %v3850_v59 = vpack.c.bf16 %v2390_v26, %v2386_v38  ;;  %v2111_v54 = vsel %vm1839_vm3, %v5032_v41, 0.0  ;;  %v2115_v45 = vsel %vm1843_vm4, %v5032_v41, 0.0  ;;  %vm1569_vm6 = vcmp.eq.s32.totalorder %v1394_v43, %v5044_v55  ;;  %v2524_v12 = vld [vmem:[%s6649_s3 + $0x28] sm:$0xff] }
 0x2e8   : > { %v2383_v42 = vsel %vm1563_vm1, %v5041_v31, %v2111_v54  ;;  %v2387_v18 = vsel %vm1567_vm2, %v5041_v31, %v2115_v45  ;;  %vm1841_vm7 = vcmp.eq.s32.totalorder %v5775_v36, %v5062_v60  ;;  %vm1845_vm8 = vcmp.eq.s32.totalorder %v1394_v43, %v5062_v60 }
 0x2e9   : > { %3851 = vmatprep.subr.bf16.mxu1 %v3850_v59  ;;  %v3724_v10 = vpack.c.bf16 %v2387_v18, %v2383_v42  ;;  %v2113_v39 = vsel %vm1841_vm7, %v5035_v8, 0.0  ;;  %v2117_v56 = vsel %vm1845_vm8, %v5035_v8, 0.0  ;;  %v1395_v47 = vadd.s32 256, %v6938_v37 }
 0x2ea   : > { %v2385_v19 = vsel %vm1565_vm5, %v5047_v62, %v2113_v39  ;;  %v2389_v7 = vsel %vm1569_vm6, %v5047_v62, %v2117_v56  ;;  %v1396_v28 = vadd.s32 264, %v6938_v37  ;;  %v5856_v5 = vadd.s32 272, %v6938_v37 }
 0x2eb   : > { %3725 = vmatpush1.bf16.msra.mxu0 %v3724_v10  ;;  %v3852_v36 = vpack.c.bf16 %v2389_v7, %v2385_v19  ;;  %vm1572_vm9 = vcmp.eq.s32.totalorder %v1395_v47, %v5050_v22  ;;  %vm1848_vm10 = vcmp.eq.s32.totalorder %v1395_v47, %v5065_v40  ;;  %vm1574_vm11 = vcmp.eq.s32.totalorder %v1395_v47, %v5080_v1 }
 0x2ec   : > { %vm1576_vm12 = vcmp.eq.s32.totalorder %v1396_v28, %v5050_v22  ;;  %vm1852_vm13 = vcmp.eq.s32.totalorder %v1396_v28, %v5065_v40  ;;  %v2120_v50 = vsel %vm1848_vm10, %v5053_v30, 0.0  ;;  %vm1578_vm14 = vcmp.eq.s32.totalorder %v1396_v28, %v5080_v1 }
 0x2ed   : > { %3853 = vmatpush1.bf16.msra.mxu1 %v3852_v36  ;;  %v2124_v4 = vsel %vm1852_vm13, %v5053_v30, 0.0  ;;  %v2392_v27 = vsel %vm1572_vm9, %v5056_v32, %v2120_v50  ;;  %vm1850_vm15 = vcmp.eq.s32.totalorder %v1395_v47, %v5101_v53  ;;  %vm1854_vm0 = vcmp.eq.s32.totalorder %v1396_v28, %v5101_v53 }
 0x2ee   : > { %v2396_v48 = vsel %vm1576_vm12, %v5056_v32, %v2124_v4  ;;  %v2122_v14 = vsel %vm1850_vm15, %v5068_v16, 0.0  ;;  %v2126_v20 = vsel %vm1854_vm0, %v5068_v16, 0.0  ;;  %2596 = vmatmul.mubr.f32.vlgmr.msra.gmra.mrb[2].mxu0 %v2519_v11  ;;  %vm1571_vm1 = vcmp.eq.s32.totalorder %v1395_v47, %v5038_v24 }
 0x2ef   : > { %v3726_v2 = vpack.c.bf16 %v2396_v48, %v2392_v27  ;;  %v2394_v52 = vsel %vm1574_vm11, %v5071_v57, %v2122_v14  ;;  %v2398_v21 = vsel %vm1578_vm14, %v5071_v57, %v2126_v20  ;;  %vm1575_vm2 = vcmp.eq.s32.totalorder %v1396_v28, %v5038_v24  ;;  %2601 = vmatprep.mubr.f32.mxu0 %v2524_v12 }
 0x2f0   : > { %v3854_v3 = vpack.c.bf16 %v2398_v21, %v2394_v52  ;;  %vm1847_vm3 = vcmp.eq.s32.totalorder %v1395_v47, %v5059_v0  ;;  %vm1851_vm4 = vcmp.eq.s32.totalorder %v1396_v28, %v5059_v0  ;;  %2762 = vmatmul.mubr.f32.vlgmr.msra.gmra.mrb[2].mxu1 %v2519_v11  ;;  %vm1573_vm5 = vcmp.eq.s32.totalorder %v1395_v47, %v5044_v55  ;;  %v2528_v52 = vld [vmem:[%s6649_s3 + $0x48] sm:$0xf]  ;;  %v2527_v21 = vld [vmem:[%s6649_s3 + $0x40] sm:$0xf] }
 0x2f1   : > { %3727 = vmatprep.subr.bf16.mxu0 %v3726_v2  ;;  %v2119_v6 = vsel %vm1847_vm3, %v5032_v41, 0.0  ;;  %v2123_v33 = vsel %vm1851_vm4, %v5032_v41, 0.0  ;;  %vm1577_vm6 = vcmp.eq.s32.totalorder %v1396_v28, %v5044_v55  ;;  %vm1849_vm7 = vcmp.eq.s32.totalorder %v1395_v47, %v5062_v60  ;;  %2767 = vmatprep.mubr.f32.mxu1 %v2524_v12 }
 0x2f2   : > { %3855 = vmatprep.subr.bf16.mxu1 %v3854_v3  ;;  %v2391_v13 = vsel %vm1571_vm1, %v5041_v31, %v2119_v6  ;;  %v2395_v61 = vsel %vm1575_vm2, %v5041_v31, %v2123_v33  ;;  %vm1853_vm8 = vcmp.eq.s32.totalorder %v1396_v28, %v5062_v60  ;;  %v2121_v15 = vsel %vm1849_vm7, %v5035_v8, 0.0  ;;  %2602 = vmatmul.mubr.f32.gmra.mrb[4].mxu0 %v2523_v29 }
 0x2f3   : > { %v3728_v44 = vpack.c.bf16 %v2395_v61, %v2391_v13  ;;  %v2125_v9 = vsel %vm1853_vm8, %v5035_v8, 0.0  ;;  %v2393_v51 = vsel %vm1573_vm5, %v5047_v62, %v2121_v15  ;;  %v1398_v43 = vadd.s32 280, %v6938_v37  ;;  %2607 = vmatprep.mubr.f32.mxu0 %v2528_v52 }
 0x2f4   : > { %v2397_v23 = vsel %vm1577_vm6, %v5047_v62, %v2125_v9  ;;  %vm1580_vm9 = vcmp.eq.s32.totalorder %v5856_v5, %v5050_v22  ;;  %vm1856_vm10 = vcmp.eq.s32.totalorder %v5856_v5, %v5065_v40  ;;  %vm1582_vm11 = vcmp.eq.s32.totalorder %v5856_v5, %v5080_v1  ;;  %2768 = vmatmul.mubr.f32.gmra.mrb[4].mxu1 %v2523_v29 }
 0x2f5   : > { %3729 = vmatpush1.bf16.msra.mxu0 %v3728_v44  ;;  %v3856_v35 = vpack.c.bf16 %v2397_v23, %v2393_v51  ;;  %vm1584_vm12 = vcmp.eq.s32.totalorder %v1398_v43, %v5050_v22  ;;  %vm1860_vm13 = vcmp.eq.s32.totalorder %v1398_v43, %v5065_v40  ;;  %v2128_v58 = vsel %vm1856_vm10, %v5053_v30, 0.0  ;;  %2773 = vmatprep.mubr.f32.mxu1 %v2528_v52 }
 0x2f6   : > { %v2132_v17 = vsel %vm1860_vm13, %v5053_v30, 0.0  ;;  %v2400_v25 = vsel %vm1580_vm9, %v5056_v32, %v2128_v58  ;;  %vm1586_vm14 = vcmp.eq.s32.totalorder %v1398_v43, %v5080_v1  ;;  %vm1858_vm15 = vcmp.eq.s32.totalorder %v5856_v5, %v5101_v53  ;;  %2608 = vmatmul.mubr.f32.gmra.mrb[6].mxu0 %v2527_v21 }
 0x2f7   : > { %3857 = vmatpush1.bf16.msra.mxu1 %v3856_v35  ;;  %v2404_v49 = vsel %vm1584_vm12, %v5056_v32, %v2132_v17  ;;  %vm1862_vm0 = vcmp.eq.s32.totalorder %v1398_v43, %v5101_v53  ;;  %v2130_v63 = vsel %vm1858_vm15, %v5068_v16, 0.0  ;;  %vm1579_vm1 = vcmp.eq.s32.totalorder %v5856_v5, %v5038_v24 }
 0x2f8   : > { %v3730_v38 = vpack.c.bf16 %v2404_v49, %v2400_v25  ;;  %v2134_v26 = vsel %vm1862_vm0, %v5068_v16, 0.0  ;;  %v2402_v59 = vsel %vm1582_vm11, %v5071_v57, %v2130_v63  ;;  %vm1583_vm2 = vcmp.eq.s32.totalorder %v1398_v43, %v5038_v24  ;;  %2774 = vmatmul.mubr.f32.gmra.mrb[6].mxu1 %v2527_v21 }
 0x2f9   : > { %v2406_v54 = vsel %vm1586_vm14, %v5071_v57, %v2134_v26  ;;  %vm1855_vm3 = vcmp.eq.s32.totalorder %v5856_v5, %v5059_v0  ;;  %vm1859_vm4 = vcmp.eq.s32.totalorder %v1398_v43, %v5059_v0  ;;  %vm1581_vm5 = vcmp.eq.s32.totalorder %v5856_v5, %v5044_v55 }
 0x2fa   : > { %3731 = vmatprep.subr.bf16.mxu0 %v3730_v38  ;;  %v3858_v45 = vpack.c.bf16 %v2406_v54, %v2402_v59  ;;  %v2127_v42 = vsel %vm1855_vm3, %v5032_v41, 0.0  ;;  %v2131_v18 = vsel %vm1859_vm4, %v5032_v41, 0.0  ;;  %vm1585_vm6 = vcmp.eq.s32.totalorder %v1398_v43, %v5044_v55 }
 0x2fb   : > { %v2399_v10 = vsel %vm1579_vm1, %v5041_v31, %v2127_v42  ;;  %v2403_v39 = vsel %vm1583_vm2, %v5041_v31, %v2131_v18  ;;  %vm1857_vm7 = vcmp.eq.s32.totalorder %v5856_v5, %v5062_v60  ;;  %vm1861_vm8 = vcmp.eq.s32.totalorder %v1398_v43, %v5062_v60  ;;  %v2522_v43 = vld [vmem:[%s6649_s3 + $0x18] sm:$0xff] }
 0x2fc   : > { %3859 = vmatprep.subr.bf16.mxu1 %v3858_v45  ;;  %v3732_v56 = vpack.c.bf16 %v2403_v39, %v2399_v10  ;;  %v2129_v47 = vsel %vm1857_vm7, %v5035_v8, 0.0  ;;  %v2133_v19 = vsel %vm1861_vm8, %v5035_v8, 0.0  ;;  %v1399_v7 = vadd.s32 288, %v6938_v37  ;;  %2678 = vmatprep.mubr.f32.mxu0 %v2522_v43 }
 0x2fd   : > { %v2401_v28 = vsel %vm1581_vm5, %v5047_v62, %v2129_v47  ;;  %v2405_v36 = vsel %vm1585_vm6, %v5047_v62, %v2133_v19  ;;  %v1400_v11 = vadd.s32 296, %v6938_v37  ;;  %v5956_v50 = vadd.s32 304, %v6938_v37  ;;  %2844 = vmatprep.mubr.f32.mxu1 %v2522_v43 }
 0x2fe   : > { %3733 = vmatpush1.bf16.msra.mxu0 %v3732_v56  ;;  %v3860_v4 = vpack.c.bf16 %v2405_v36, %v2401_v28  ;;  %vm1588_vm9 = vcmp.eq.s32.totalorder %v1399_v7, %v5050_v22  ;;  %vm1864_vm10 = vcmp.eq.s32.totalorder %v1399_v7, %v5065_v40  ;;  %vm1590_vm11 = vcmp.eq.s32.totalorder %v1399_v7, %v5080_v1 }
 0x2ff   : > { %vm1592_vm12 = vcmp.eq.s32.totalorder %v1400_v11, %v5050_v22  ;;  %vm1868_vm13 = vcmp.eq.s32.totalorder %v1400_v11, %v5065_v40  ;;  %v2136_v5 = vsel %vm1864_vm10, %v5053_v30, 0.0  ;;  %vm1594_vm14 = vcmp.eq.s32.totalorder %v1400_v11, %v5080_v1 }
 0x300   : > { %3861 = vmatpush1.bf16.msra.mxu1 %v3860_v4  ;;  %v2140_v27 = vsel %vm1868_vm13, %v5053_v30, 0.0  ;;  %v2408_v48 = vsel %vm1588_vm9, %v5056_v32, %v2136_v5  ;;  %vm1866_vm15 = vcmp.eq.s32.totalorder %v1399_v7, %v5101_v53  ;;  %vm1870_vm0 = vcmp.eq.s32.totalorder %v1400_v11, %v5101_v53 }
 0x301   : > { %v2412_v14 = vsel %vm1592_vm12, %v5056_v32, %v2140_v27  ;;  %v2138_v20 = vsel %vm1866_vm15, %v5068_v16, 0.0  ;;  %v2142_v2 = vsel %vm1870_vm0, %v5068_v16, 0.0  ;;  %vm1587_vm1 = vcmp.eq.s32.totalorder %v1399_v7, %v5038_v24 }
 0x302   : > { %v3734_v3 = vpack.c.bf16 %v2412_v14, %v2408_v48  ;;  %v2410_v6 = vsel %vm1590_vm11, %v5071_v57, %v2138_v20  ;;  %v2414_v33 = vsel %vm1594_vm14, %v5071_v57, %v2142_v2  ;;  %vm1591_vm2 = vcmp.eq.s32.totalorder %v1400_v11, %v5038_v24 }
 0x303   : > { %v3862_v13 = vpack.c.bf16 %v2414_v33, %v2410_v6  ;;  %vm1863_vm3 = vcmp.eq.s32.totalorder %v1399_v7, %v5059_v0  ;;  %vm1867_vm4 = vcmp.eq.s32.totalorder %v1400_v11, %v5059_v0  ;;  %vm1589_vm5 = vcmp.eq.s32.totalorder %v1399_v7, %v5044_v55 }
 0x304   : > { %3735 = vmatprep.subr.bf16.mxu0 %v3734_v3  ;;  %v2135_v61 = vsel %vm1863_vm3, %v5032_v41, 0.0  ;;  %v2139_v15 = vsel %vm1867_vm4, %v5032_v41, 0.0  ;;  %vm1593_vm6 = vcmp.eq.s32.totalorder %v1400_v11, %v5044_v55  ;;  %vm1865_vm7 = vcmp.eq.s32.totalorder %v1399_v7, %v5062_v60 }
 0x305   : > { %3863 = vmatprep.subr.bf16.mxu1 %v3862_v13  ;;  %v2407_v44 = vsel %vm1587_vm1, %v5041_v31, %v2135_v61  ;;  %v2411_v9 = vsel %vm1591_vm2, %v5041_v31, %v2139_v15  ;;  %vm1869_vm8 = vcmp.eq.s32.totalorder %v1400_v11, %v5062_v60  ;;  %v2137_v51 = vsel %vm1865_vm7, %v5035_v8, 0.0 }
 0x306   : > { %v3736_v23 = vpack.c.bf16 %v2411_v9, %v2407_v44  ;;  %v2141_v35 = vsel %vm1869_vm8, %v5035_v8, 0.0  ;;  %v2409_v58 = vsel %vm1589_vm5, %v5047_v62, %v2137_v51  ;;  %v1402_v17 = vadd.s32 312, %v6938_v37 }
 0x307   : > { %v2413_v25 = vsel %vm1593_vm6, %v5047_v62, %v2141_v35  ;;  %vm1596_vm9 = vcmp.eq.s32.totalorder %v5956_v50, %v5050_v22  ;;  %vm1872_vm10 = vcmp.eq.s32.totalorder %v5956_v50, %v5065_v40  ;;  %vm1598_vm11 = vcmp.eq.s32.totalorder %v5956_v50, %v5080_v1 }
 0x308   : > { %3737 = vmatpush1.bf16.msra.mxu0 %v3736_v23  ;;  %v3864_v49 = vpack.c.bf16 %v2413_v25, %v2409_v58  ;;  %vm1600_vm12 = vcmp.eq.s32.totalorder %v1402_v17, %v5050_v22  ;;  %vm1876_vm13 = vcmp.eq.s32.totalorder %v1402_v17, %v5065_v40  ;;  %v2144_v63 = vsel %vm1872_vm10, %v5053_v30, 0.0 }
 0x309   : > { %v2148_v12 = vsel %vm1876_vm13, %v5053_v30, 0.0  ;;  %v2416_v29 = vsel %vm1596_vm9, %v5056_v32, %v2144_v63  ;;  %vm1602_vm14 = vcmp.eq.s32.totalorder %v1402_v17, %v5080_v1  ;;  %vm1874_vm15 = vcmp.eq.s32.totalorder %v5956_v50, %v5101_v53 }
 0x30a   : > { %3865 = vmatpush1.bf16.msra.mxu1 %v3864_v49  ;;  %v2420_v38 = vsel %vm1600_vm12, %v5056_v32, %v2148_v12  ;;  %vm1878_vm0 = vcmp.eq.s32.totalorder %v1402_v17, %v5101_v53  ;;  %v2146_v26 = vsel %vm1874_vm15, %v5068_v16, 0.0  ;;  %vm1595_vm1 = vcmp.eq.s32.totalorder %v5956_v50, %v5038_v24 }
 0x30b   : > { %v3738_v59 = vpack.c.bf16 %v2420_v38, %v2416_v29  ;;  %v2150_v54 = vsel %vm1878_vm0, %v5068_v16, 0.0  ;;  %v2418_v45 = vsel %vm1598_vm11, %v5071_v57, %v2146_v26  ;;  %vm1599_vm2 = vcmp.eq.s32.totalorder %v1402_v17, %v5038_v24 }
 0x30c   : > { %v2422_v42 = vsel %vm1602_vm14, %v5071_v57, %v2150_v54  ;;  %vm1871_vm3 = vcmp.eq.s32.totalorder %v5956_v50, %v5059_v0  ;;  %vm1875_vm4 = vcmp.eq.s32.totalorder %v1402_v17, %v5059_v0  ;;  %vm1597_vm5 = vcmp.eq.s32.totalorder %v5956_v50, %v5044_v55 }
 0x30d   : > { %3739 = vmatprep.subr.bf16.mxu0 %v3738_v59  ;;  %v3866_v18 = vpack.c.bf16 %v2422_v42, %v2418_v45  ;;  %v2143_v10 = vsel %vm1871_vm3, %v5032_v41, 0.0  ;;  %v2147_v39 = vsel %vm1875_vm4, %v5032_v41, 0.0  ;;  %vm1601_vm6 = vcmp.eq.s32.totalorder %v1402_v17, %v5044_v55 }
 0x30e   : > { %v2415_v56 = vsel %vm1595_vm1, %v5041_v31, %v2143_v10  ;;  %v2419_v47 = vsel %vm1599_vm2, %v5041_v31, %v2147_v39  ;;  %vm1873_vm7 = vcmp.eq.s32.totalorder %v5956_v50, %v5062_v60  ;;  %vm1877_vm8 = vcmp.eq.s32.totalorder %v1402_v17, %v5062_v60 }
 0x30f   : > { %3867 = vmatprep.subr.bf16.mxu1 %v3866_v18  ;;  %v3740_v19 = vpack.c.bf16 %v2419_v47, %v2415_v56  ;;  %v2145_v7 = vsel %vm1873_vm7, %v5035_v8, 0.0  ;;  %v2149_v28 = vsel %vm1877_vm8, %v5035_v8, 0.0  ;;  %v1403_v36 = vadd.s32 320, %v6938_v37 }
 0x310   : > { %v2417_v11 = vsel %vm1597_vm5, %v5047_v62, %v2145_v7  ;;  %v2421_v4 = vsel %vm1601_vm6, %v5047_v62, %v2149_v28  ;;  %v1404_v5 = vadd.s32 328, %v6938_v37  ;;  %v6054_v27 = vadd.s32 336, %v6938_v37 }
 0x311   : > { %3741 = vmatpush1.bf16.msra.mxu0 %v3740_v19  ;;  %v3868_v50 = vpack.c.bf16 %v2421_v4, %v2417_v11  ;;  %vm1604_vm9 = vcmp.eq.s32.totalorder %v1403_v36, %v5050_v22  ;;  %vm1880_vm10 = vcmp.eq.s32.totalorder %v1403_v36, %v5065_v40  ;;  %vm1606_vm11 = vcmp.eq.s32.totalorder %v1403_v36, %v5080_v1 }
 0x312   : > { %vm1608_vm12 = vcmp.eq.s32.totalorder %v1404_v5, %v5050_v22  ;;  %vm1884_vm13 = vcmp.eq.s32.totalorder %v1404_v5, %v5065_v40  ;;  %v2152_v48 = vsel %vm1880_vm10, %v5053_v30, 0.0  ;;  %vm1610_vm14 = vcmp.eq.s32.totalorder %v1404_v5, %v5080_v1 }
 0x313   : > { %3869 = vmatpush1.bf16.msra.mxu1 %v3868_v50  ;;  %v2156_v14 = vsel %vm1884_vm13, %v5053_v30, 0.0  ;;  %v2424_v20 = vsel %vm1604_vm9, %v5056_v32, %v2152_v48  ;;  %vm1882_vm15 = vcmp.eq.s32.totalorder %v1403_v36, %v5101_v53  ;;  %vm1886_vm0 = vcmp.eq.s32.totalorder %v1404_v5, %v5101_v53 }
 0x314   : > { %v2428_v2 = vsel %vm1608_vm12, %v5056_v32, %v2156_v14  ;;  %v2154_v52 = vsel %vm1882_vm15, %v5068_v16, 0.0  ;;  %v2158_v21 = vsel %vm1886_vm0, %v5068_v16, 0.0  ;;  %vm1603_vm1 = vcmp.eq.s32.totalorder %v1403_v36, %v5038_v24 }
 0x315   : > { %v3742_v3 = vpack.c.bf16 %v2428_v2, %v2424_v20  ;;  %v2426_v6 = vsel %vm1606_vm11, %v5071_v57, %v2154_v52  ;;  %v2430_v33 = vsel %vm1610_vm14, %v5071_v57, %v2158_v21  ;;  %vm1607_vm2 = vcmp.eq.s32.totalorder %v1404_v5, %v5038_v24 }
 0x316   : > { %v3870_v13 = vpack.c.bf16 %v2430_v33, %v2426_v6  ;;  %vm1879_vm3 = vcmp.eq.s32.totalorder %v1403_v36, %v5059_v0  ;;  %vm1883_vm4 = vcmp.eq.s32.totalorder %v1404_v5, %v5059_v0  ;;  %vm1605_vm5 = vcmp.eq.s32.totalorder %v1403_v36, %v5044_v55 }
 0x317   : > { %3743 = vmatprep.subr.bf16.mxu0 %v3742_v3  ;;  %v2151_v61 = vsel %vm1879_vm3, %v5032_v41, 0.0  ;;  %v2155_v15 = vsel %vm1883_vm4, %v5032_v41, 0.0  ;;  %vm1609_vm6 = vcmp.eq.s32.totalorder %v1404_v5, %v5044_v55  ;;  %vm1881_vm7 = vcmp.eq.s32.totalorder %v1403_v36, %v5062_v60 }
 0x318   : > { %3871 = vmatprep.subr.bf16.mxu1 %v3870_v13  ;;  %v2423_v44 = vsel %vm1603_vm1, %v5041_v31, %v2151_v61  ;;  %v2427_v9 = vsel %vm1607_vm2, %v5041_v31, %v2155_v15  ;;  %vm1885_vm8 = vcmp.eq.s32.totalorder %v1404_v5, %v5062_v60  ;;  %v2153_v51 = vsel %vm1881_vm7, %v5035_v8, 0.0 }
 0x319   : > { %v3744_v43 = vpack.c.bf16 %v2427_v9, %v2423_v44  ;;  %v2157_v23 = vsel %vm1885_vm8, %v5035_v8, 0.0  ;;  %v2425_v35 = vsel %vm1605_vm5, %v5047_v62, %v2153_v51  ;;  %v1406_v58 = vadd.s32 344, %v6938_v37 }
 0x31a   : > { %v2429_v17 = vsel %vm1609_vm6, %v5047_v62, %v2157_v23  ;;  %vm1612_vm9 = vcmp.eq.s32.totalorder %v6054_v27, %v5050_v22  ;;  %vm1888_vm10 = vcmp.eq.s32.totalorder %v6054_v27, %v5065_v40  ;;  %vm1614_vm11 = vcmp.eq.s32.totalorder %v6054_v27, %v5080_v1 }
 0x31b   : > { %3745 = vmatpush1.bf16.msra.mxu0 %v3744_v43  ;;  %v3872_v25 = vpack.c.bf16 %v2429_v17, %v2425_v35  ;;  %vm1616_vm12 = vcmp.eq.s32.totalorder %v1406_v58, %v5050_v22  ;;  %vm1892_vm13 = vcmp.eq.s32.totalorder %v1406_v58, %v5065_v40  ;;  %v2160_v49 = vsel %vm1888_vm10, %v5053_v30, 0.0 }
 0x31c   : > { %v2164_v63 = vsel %vm1892_vm13, %v5053_v30, 0.0  ;;  %v2432_v12 = vsel %vm1612_vm9, %v5056_v32, %v2160_v49  ;;  %vm1618_vm14 = vcmp.eq.s32.totalorder %v1406_v58, %v5080_v1  ;;  %vm1890_vm15 = vcmp.eq.s32.totalorder %v6054_v27, %v5101_v53 }
 0x31d   : > { %3873 = vmatpush1.bf16.msra.mxu1 %v3872_v25  ;;  %v2436_v29 = vsel %vm1616_vm12, %v5056_v32, %v2164_v63  ;;  %vm1894_vm0 = vcmp.eq.s32.totalorder %v1406_v58, %v5101_v53  ;;  %v2162_v38 = vsel %vm1890_vm15, %v5068_v16, 0.0  ;;  %vm1611_vm1 = vcmp.eq.s32.totalorder %v6054_v27, %v5038_v24 }
 0x31e   : > { %v3746_v26 = vpack.c.bf16 %v2436_v29, %v2432_v12  ;;  %v2166_v59 = vsel %vm1894_vm0, %v5068_v16, 0.0  ;;  %v2434_v54 = vsel %vm1614_vm11, %v5071_v57, %v2162_v38  ;;  %vm1615_vm2 = vcmp.eq.s32.totalorder %v1406_v58, %v5038_v24 }
 0x31f   : > { %v2438_v45 = vsel %vm1618_vm14, %v5071_v57, %v2166_v59  ;;  %vm1887_vm3 = vcmp.eq.s32.totalorder %v6054_v27, %v5059_v0  ;;  %vm1891_vm4 = vcmp.eq.s32.totalorder %v1406_v58, %v5059_v0  ;;  %vm1613_vm5 = vcmp.eq.s32.totalorder %v6054_v27, %v5044_v55 }
 0x320   : > { %3747 = vmatprep.subr.bf16.mxu0 %v3746_v26  ;;  %v3874_v42 = vpack.c.bf16 %v2438_v45, %v2434_v54  ;;  %v2159_v18 = vsel %vm1887_vm3, %v5032_v41, 0.0  ;;  %v2163_v10 = vsel %vm1891_vm4, %v5032_v41, 0.0  ;;  %vm1617_vm6 = vcmp.eq.s32.totalorder %v1406_v58, %v5044_v55 }
 0x321   : > { %v2431_v39 = vsel %vm1611_vm1, %v5041_v31, %v2159_v18  ;;  %v2435_v56 = vsel %vm1615_vm2, %v5041_v31, %v2163_v10  ;;  %vm1889_vm7 = vcmp.eq.s32.totalorder %v6054_v27, %v5062_v60  ;;  %vm1893_vm8 = vcmp.eq.s32.totalorder %v1406_v58, %v5062_v60 }
 0x322   : > { %3875 = vmatprep.subr.bf16.mxu1 %v3874_v42  ;;  %v3748_v47 = vpack.c.bf16 %v2435_v56, %v2431_v39  ;;  %v2161_v19 = vsel %vm1889_vm7, %v5035_v8, 0.0  ;;  %v2165_v7 = vsel %vm1893_vm8, %v5035_v8, 0.0  ;;  %v1407_v28 = vadd.s32 352, %v6938_v37 }
 0x323   : > { %v2433_v36 = vsel %vm1613_vm5, %v5047_v62, %v2161_v19  ;;  %v2437_v11 = vsel %vm1617_vm6, %v5047_v62, %v2165_v7  ;;  %v1408_v4 = vadd.s32 360, %v6938_v37  ;;  %v6135_v5 = vadd.s32 368, %v6938_v37 }
 0x324   : > { %3749 = vmatpush1.bf16.msra.mxu0 %v3748_v47  ;;  %v3876_v27 = vpack.c.bf16 %v2437_v11, %v2433_v36  ;;  %vm1620_vm9 = vcmp.eq.s32.totalorder %v1407_v28, %v5050_v22  ;;  %vm1896_vm10 = vcmp.eq.s32.totalorder %v1407_v28, %v5065_v40  ;;  %vm1622_vm11 = vcmp.eq.s32.totalorder %v1407_v28, %v5080_v1 }
 0x325   : > { %vm1624_vm12 = vcmp.eq.s32.totalorder %v1408_v4, %v5050_v22  ;;  %vm1900_vm13 = vcmp.eq.s32.totalorder %v1408_v4, %v5065_v40  ;;  %v2168_v50 = vsel %vm1896_vm10, %v5053_v30, 0.0  ;;  %vm1626_vm14 = vcmp.eq.s32.totalorder %v1408_v4, %v5080_v1 }
 0x326   : > { %3877 = vmatpush1.bf16.msra.mxu1 %v3876_v27  ;;  %v2172_v48 = vsel %vm1900_vm13, %v5053_v30, 0.0  ;;  %v2440_v14 = vsel %vm1620_vm9, %v5056_v32, %v2168_v50  ;;  %vm1898_vm15 = vcmp.eq.s32.totalorder %v1407_v28, %v5101_v53  ;;  %vm1902_vm0 = vcmp.eq.s32.totalorder %v1408_v4, %v5101_v53 }
 0x327   : > { %v2444_v20 = vsel %vm1624_vm12, %v5056_v32, %v2172_v48  ;;  %v2170_v2 = vsel %vm1898_vm15, %v5068_v16, 0.0  ;;  %v2174_v52 = vsel %vm1902_vm0, %v5068_v16, 0.0  ;;  %vm1619_vm1 = vcmp.eq.s32.totalorder %v1407_v28, %v5038_v24 }
 0x328   : > { %v3750_v21 = vpack.c.bf16 %v2444_v20, %v2440_v14  ;;  %v2442_v3 = vsel %vm1622_vm11, %v5071_v57, %v2170_v2  ;;  %v2446_v6 = vsel %vm1626_vm14, %v5071_v57, %v2174_v52  ;;  %vm1623_vm2 = vcmp.eq.s32.totalorder %v1408_v4, %v5038_v24 }
 0x329   : > { %v3878_v33 = vpack.c.bf16 %v2446_v6, %v2442_v3  ;;  %vm1895_vm3 = vcmp.eq.s32.totalorder %v1407_v28, %v5059_v0  ;;  %vm1899_vm4 = vcmp.eq.s32.totalorder %v1408_v4, %v5059_v0  ;;  %vm1621_vm5 = vcmp.eq.s32.totalorder %v1407_v28, %v5044_v55 }
 0x32a   : > { %3751 = vmatprep.subr.bf16.mxu0 %v3750_v21  ;;  %v2167_v13 = vsel %vm1895_vm3, %v5032_v41, 0.0  ;;  %v2171_v61 = vsel %vm1899_vm4, %v5032_v41, 0.0  ;;  %vm1625_vm6 = vcmp.eq.s32.totalorder %v1408_v4, %v5044_v55  ;;  %vm1897_vm7 = vcmp.eq.s32.totalorder %v1407_v28, %v5062_v60 }
 0x32b   : > { %3879 = vmatprep.subr.bf16.mxu1 %v3878_v33  ;;  %v2439_v15 = vsel %vm1619_vm1, %v5041_v31, %v2167_v13  ;;  %v2443_v44 = vsel %vm1623_vm2, %v5041_v31, %v2171_v61  ;;  %vm1901_vm8 = vcmp.eq.s32.totalorder %v1408_v4, %v5062_v60  ;;  %v2169_v9 = vsel %vm1897_vm7, %v5035_v8, 0.0 }
 0x32c   : > { %v3752_v51 = vpack.c.bf16 %v2443_v44, %v2439_v15  ;;  %v2173_v43 = vsel %vm1901_vm8, %v5035_v8, 0.0  ;;  %v2441_v23 = vsel %vm1621_vm5, %v5047_v62, %v2169_v9  ;;  %v1410_v35 = vadd.s32 376, %v6938_v37 }
 0x32d   : > { %v2445_v58 = vsel %vm1625_vm6, %v5047_v62, %v2173_v43  ;;  %vm1628_vm9 = vcmp.eq.s32.totalorder %v6135_v5, %v5050_v22  ;;  %vm1904_vm10 = vcmp.eq.s32.totalorder %v6135_v5, %v5065_v40  ;;  %vm1630_vm11 = vcmp.eq.s32.totalorder %v6135_v5, %v5080_v1 }
 0x32e   : > { %3753 = vmatpush1.bf16.msra.mxu0 %v3752_v51  ;;  %v3880_v17 = vpack.c.bf16 %v2445_v58, %v2441_v23  ;;  %vm1632_vm12 = vcmp.eq.s32.totalorder %v1410_v35, %v5050_v22  ;;  %vm1908_vm13 = vcmp.eq.s32.totalorder %v1410_v35, %v5065_v40  ;;  %v2176_v25 = vsel %vm1904_vm10, %v5053_v30, 0.0 }
 0x32f   : > { %v2180_v49 = vsel %vm1908_vm13, %v5053_v30, 0.0  ;;  %v2448_v63 = vsel %vm1628_vm9, %v5056_v32, %v2176_v25  ;;  %vm1634_vm14 = vcmp.eq.s32.totalorder %v1410_v35, %v5080_v1  ;;  %vm1906_vm15 = vcmp.eq.s32.totalorder %v6135_v5, %v5101_v53 }
 0x330   : > { %3881 = vmatpush1.bf16.msra.mxu1 %v3880_v17  ;;  %v2452_v12 = vsel %vm1632_vm12, %v5056_v32, %v2180_v49  ;;  %vm1910_vm0 = vcmp.eq.s32.totalorder %v1410_v35, %v5101_v53  ;;  %v2178_v29 = vsel %vm1906_vm15, %v5068_v16, 0.0  ;;  %vm1627_vm1 = vcmp.eq.s32.totalorder %v6135_v5, %v5038_v24 }
 0x331   : > { %v3754_v38 = vpack.c.bf16 %v2452_v12, %v2448_v63  ;;  %v2182_v26 = vsel %vm1910_vm0, %v5068_v16, 0.0  ;;  %v2450_v59 = vsel %vm1630_vm11, %v5071_v57, %v2178_v29  ;;  %vm1631_vm2 = vcmp.eq.s32.totalorder %v1410_v35, %v5038_v24 }
 0x332   : > { %v2454_v54 = vsel %vm1634_vm14, %v5071_v57, %v2182_v26  ;;  %vm1903_vm3 = vcmp.eq.s32.totalorder %v6135_v5, %v5059_v0  ;;  %vm1907_vm4 = vcmp.eq.s32.totalorder %v1410_v35, %v5059_v0  ;;  %vm1629_vm5 = vcmp.eq.s32.totalorder %v6135_v5, %v5044_v55 }
 0x333   : > { %3755 = vmatprep.subr.bf16.mxu0 %v3754_v38  ;;  %v3882_v45 = vpack.c.bf16 %v2454_v54, %v2450_v59  ;;  %v2175_v42 = vsel %vm1903_vm3, %v5032_v41, 0.0  ;;  %v2179_v18 = vsel %vm1907_vm4, %v5032_v41, 0.0  ;;  %vm1633_vm6 = vcmp.eq.s32.totalorder %v1410_v35, %v5044_v55 }
 0x334   : > { %v2447_v10 = vsel %vm1627_vm1, %v5041_v31, %v2175_v42  ;;  %v2451_v39 = vsel %vm1631_vm2, %v5041_v31, %v2179_v18  ;;  %vm1905_vm7 = vcmp.eq.s32.totalorder %v6135_v5, %v5062_v60  ;;  %vm1909_vm8 = vcmp.eq.s32.totalorder %v1410_v35, %v5062_v60 }
 0x335   : > { %3883 = vmatprep.subr.bf16.mxu1 %v3882_v45  ;;  %v3756_v56 = vpack.c.bf16 %v2451_v39, %v2447_v10  ;;  %v2177_v47 = vsel %vm1905_vm7, %v5035_v8, 0.0  ;;  %v2181_v19 = vsel %vm1909_vm8, %v5035_v8, 0.0  ;;  %v1411_v7 = vadd.s32 384, %v6938_v37 }
 0x336   : > { %v2449_v28 = vsel %vm1629_vm5, %v5047_v62, %v2177_v47  ;;  %v2453_v36 = vsel %vm1633_vm6, %v5047_v62, %v2181_v19  ;;  %v1412_v11 = vadd.s32 392, %v6938_v37  ;;  %v6216_v4 = vadd.s32 400, %v6938_v37 }
 0x337   : > { %3757 = vmatpush1.bf16.msra.mxu0 %v3756_v56  ;;  %v3884_v5 = vpack.c.bf16 %v2453_v36, %v2449_v28  ;;  %vm1636_vm9 = vcmp.eq.s32.totalorder %v1411_v7, %v5050_v22  ;;  %vm1912_vm10 = vcmp.eq.s32.totalorder %v1411_v7, %v5065_v40  ;;  %vm1638_vm11 = vcmp.eq.s32.totalorder %v1411_v7, %v5080_v1 }
 0x338   : > { %vm1640_vm12 = vcmp.eq.s32.totalorder %v1412_v11, %v5050_v22  ;;  %vm1916_vm13 = vcmp.eq.s32.totalorder %v1412_v11, %v5065_v40  ;;  %v2184_v27 = vsel %vm1912_vm10, %v5053_v30, 0.0  ;;  %vm1642_vm14 = vcmp.eq.s32.totalorder %v1412_v11, %v5080_v1 }
 0x339   : > { %3885 = vmatpush1.bf16.msra.mxu1 %v3884_v5  ;;  %v2188_v50 = vsel %vm1916_vm13, %v5053_v30, 0.0  ;;  %v2456_v48 = vsel %vm1636_vm9, %v5056_v32, %v2184_v27  ;;  %vm1914_vm15 = vcmp.eq.s32.totalorder %v1411_v7, %v5101_v53  ;;  %vm1918_vm0 = vcmp.eq.s32.totalorder %v1412_v11, %v5101_v53 }
 0x33a   : > { %v2460_v14 = vsel %vm1640_vm12, %v5056_v32, %v2188_v50  ;;  %v2186_v20 = vsel %vm1914_vm15, %v5068_v16, 0.0  ;;  %v2190_v2 = vsel %vm1918_vm0, %v5068_v16, 0.0  ;;  %vm1635_vm1 = vcmp.eq.s32.totalorder %v1411_v7, %v5038_v24 }
 0x33b   : > { %v3758_v52 = vpack.c.bf16 %v2460_v14, %v2456_v48  ;;  %v2458_v21 = vsel %vm1638_vm11, %v5071_v57, %v2186_v20  ;;  %v2462_v3 = vsel %vm1642_vm14, %v5071_v57, %v2190_v2  ;;  %vm1639_vm2 = vcmp.eq.s32.totalorder %v1412_v11, %v5038_v24 }
 0x33c   : > { %v3886_v6 = vpack.c.bf16 %v2462_v3, %v2458_v21  ;;  %vm1911_vm3 = vcmp.eq.s32.totalorder %v1411_v7, %v5059_v0  ;;  %vm1915_vm4 = vcmp.eq.s32.totalorder %v1412_v11, %v5059_v0  ;;  %vm1637_vm5 = vcmp.eq.s32.totalorder %v1411_v7, %v5044_v55 }
 0x33d   : > { %3759 = vmatprep.subr.bf16.mxu0 %v3758_v52  ;;  %v2183_v33 = vsel %vm1911_vm3, %v5032_v41, 0.0  ;;  %v2187_v13 = vsel %vm1915_vm4, %v5032_v41, 0.0  ;;  %vm1641_vm6 = vcmp.eq.s32.totalorder %v1412_v11, %v5044_v55  ;;  %vm1913_vm7 = vcmp.eq.s32.totalorder %v1411_v7, %v5062_v60 }
 0x33e   : > { %3887 = vmatprep.subr.bf16.mxu1 %v3886_v6  ;;  %v2455_v61 = vsel %vm1635_vm1, %v5041_v31, %v2183_v33  ;;  %v2459_v15 = vsel %vm1639_vm2, %v5041_v31, %v2187_v13  ;;  %vm1917_vm8 = vcmp.eq.s32.totalorder %v1412_v11, %v5062_v60  ;;  %v2185_v44 = vsel %vm1913_vm7, %v5035_v8, 0.0 }
 0x33f   : > { %v3760_v9 = vpack.c.bf16 %v2459_v15, %v2455_v61  ;;  %v2189_v51 = vsel %vm1917_vm8, %v5035_v8, 0.0  ;;  %v2457_v43 = vsel %vm1637_vm5, %v5047_v62, %v2185_v44  ;;  %v1414_v23 = vadd.s32 408, %v6938_v37 }
 0x340   : > { %v2461_v35 = vsel %vm1641_vm6, %v5047_v62, %v2189_v51  ;;  %vm1644_vm9 = vcmp.eq.s32.totalorder %v6216_v4, %v5050_v22  ;;  %vm1920_vm10 = vcmp.eq.s32.totalorder %v6216_v4, %v5065_v40  ;;  %vm1646_vm11 = vcmp.eq.s32.totalorder %v6216_v4, %v5080_v1 }
 0x341   : > { %3761 = vmatpush1.bf16.msra.mxu0 %v3760_v9  ;;  %v3888_v58 = vpack.c.bf16 %v2461_v35, %v2457_v43  ;;  %vm1648_vm12 = vcmp.eq.s32.totalorder %v1414_v23, %v5050_v22  ;;  %vm1924_vm13 = vcmp.eq.s32.totalorder %v1414_v23, %v5065_v40  ;;  %v2192_v17 = vsel %vm1920_vm10, %v5053_v30, 0.0 }
 0x342   : > { %v2196_v25 = vsel %vm1924_vm13, %v5053_v30, 0.0  ;;  %v2464_v49 = vsel %vm1644_vm9, %v5056_v32, %v2192_v17  ;;  %vm1650_vm14 = vcmp.eq.s32.totalorder %v1414_v23, %v5080_v1  ;;  %vm1922_vm15 = vcmp.eq.s32.totalorder %v6216_v4, %v5101_v53 }
 0x343   : > { %3889 = vmatpush1.bf16.msra.mxu1 %v3888_v58  ;;  %v2468_v63 = vsel %vm1648_vm12, %v5056_v32, %v2196_v25  ;;  %vm1926_vm0 = vcmp.eq.s32.totalorder %v1414_v23, %v5101_v53  ;;  %v2194_v12 = vsel %vm1922_vm15, %v5068_v16, 0.0  ;;  %vm1643_vm1 = vcmp.eq.s32.totalorder %v6216_v4, %v5038_v24 }
 0x344   : > { %v3762_v29 = vpack.c.bf16 %v2468_v63, %v2464_v49  ;;  %v2198_v38 = vsel %vm1926_vm0, %v5068_v16, 0.0  ;;  %v2466_v26 = vsel %vm1646_vm11, %v5071_v57, %v2194_v12  ;;  %vm1647_vm2 = vcmp.eq.s32.totalorder %v1414_v23, %v5038_v24 }
 0x345   : > { %v2470_v59 = vsel %vm1650_vm14, %v5071_v57, %v2198_v38  ;;  %vm1919_vm3 = vcmp.eq.s32.totalorder %v6216_v4, %v5059_v0  ;;  %vm1923_vm4 = vcmp.eq.s32.totalorder %v1414_v23, %v5059_v0  ;;  %vm1645_vm5 = vcmp.eq.s32.totalorder %v6216_v4, %v5044_v55 }
 0x346   : > { %3763 = vmatprep.subr.bf16.mxu0 %v3762_v29  ;;  %v3890_v54 = vpack.c.bf16 %v2470_v59, %v2466_v26  ;;  %v2191_v45 = vsel %vm1919_vm3, %v5032_v41, 0.0  ;;  %v2195_v42 = vsel %vm1923_vm4, %v5032_v41, 0.0  ;;  %vm1649_vm6 = vcmp.eq.s32.totalorder %v1414_v23, %v5044_v55 }
 0x347   : > { %v2463_v18 = vsel %vm1643_vm1, %v5041_v31, %v2191_v45  ;;  %v2467_v10 = vsel %vm1647_vm2, %v5041_v31, %v2195_v42  ;;  %vm1921_vm7 = vcmp.eq.s32.totalorder %v6216_v4, %v5062_v60  ;;  %vm1925_vm8 = vcmp.eq.s32.totalorder %v1414_v23, %v5062_v60 }
 0x348   : > { %3891 = vmatprep.subr.bf16.mxu1 %v3890_v54  ;;  %v3764_v39 = vpack.c.bf16 %v2467_v10, %v2463_v18  ;;  %v2193_v56 = vsel %vm1921_vm7, %v5035_v8, 0.0  ;;  %v2197_v47 = vsel %vm1925_vm8, %v5035_v8, 0.0  ;;  %v1415_v19 = vadd.s32 416, %v6938_v37 }
 0x349   : > { %v2465_v7 = vsel %vm1645_vm5, %v5047_v62, %v2193_v56  ;;  %v2469_v28 = vsel %vm1649_vm6, %v5047_v62, %v2197_v47  ;;  %v1416_v36 = vadd.s32 424, %v6938_v37  ;;  %v6297_v11 = vadd.s32 432, %v6938_v37 }
 0x34a   : > { %3765 = vmatpush1.bf16.msra.mxu0 %v3764_v39  ;;  %v3892_v4 = vpack.c.bf16 %v2469_v28, %v2465_v7  ;;  %vm1652_vm9 = vcmp.eq.s32.totalorder %v1415_v19, %v5050_v22  ;;  %vm1928_vm10 = vcmp.eq.s32.totalorder %v1415_v19, %v5065_v40  ;;  %vm1654_vm11 = vcmp.eq.s32.totalorder %v1415_v19, %v5080_v1 }
 0x34b   : > { %vm1656_vm12 = vcmp.eq.s32.totalorder %v1416_v36, %v5050_v22  ;;  %vm1932_vm13 = vcmp.eq.s32.totalorder %v1416_v36, %v5065_v40  ;;  %v2200_v5 = vsel %vm1928_vm10, %v5053_v30, 0.0  ;;  %vm1658_vm14 = vcmp.eq.s32.totalorder %v1416_v36, %v5080_v1 }
 0x34c   : > { %3893 = vmatpush1.bf16.msra.mxu1 %v3892_v4  ;;  %v2204_v27 = vsel %vm1932_vm13, %v5053_v30, 0.0  ;;  %v2472_v50 = vsel %vm1652_vm9, %v5056_v32, %v2200_v5  ;;  %vm1930_vm15 = vcmp.eq.s32.totalorder %v1415_v19, %v5101_v53  ;;  %vm1934_vm0 = vcmp.eq.s32.totalorder %v1416_v36, %v5101_v53 }
 0x34d   : > { %v2476_v48 = vsel %vm1656_vm12, %v5056_v32, %v2204_v27  ;;  %v2202_v14 = vsel %vm1930_vm15, %v5068_v16, 0.0  ;;  %v2206_v20 = vsel %vm1934_vm0, %v5068_v16, 0.0  ;;  %vm1651_vm1 = vcmp.eq.s32.totalorder %v1415_v19, %v5038_v24 }
 0x34e   : > { %v3766_v2 = vpack.c.bf16 %v2476_v48, %v2472_v50  ;;  %v2474_v52 = vsel %vm1654_vm11, %v5071_v57, %v2202_v14  ;;  %v2478_v21 = vsel %vm1658_vm14, %v5071_v57, %v2206_v20  ;;  %vm1655_vm2 = vcmp.eq.s32.totalorder %v1416_v36, %v5038_v24 }
 0x34f   : > { %v3894_v3 = vpack.c.bf16 %v2478_v21, %v2474_v52  ;;  %vm1927_vm3 = vcmp.eq.s32.totalorder %v1415_v19, %v5059_v0  ;;  %vm1931_vm4 = vcmp.eq.s32.totalorder %v1416_v36, %v5059_v0  ;;  %vm1653_vm5 = vcmp.eq.s32.totalorder %v1415_v19, %v5044_v55 }
 0x350   : > { %3767 = vmatprep.subr.bf16.mxu0 %v3766_v2  ;;  %v2199_v6 = vsel %vm1927_vm3, %v5032_v41, 0.0  ;;  %v2203_v33 = vsel %vm1931_vm4, %v5032_v41, 0.0  ;;  %vm1657_vm6 = vcmp.eq.s32.totalorder %v1416_v36, %v5044_v55  ;;  %vm1929_vm7 = vcmp.eq.s32.totalorder %v1415_v19, %v5062_v60 }
 0x351   : > { %3895 = vmatprep.subr.bf16.mxu1 %v3894_v3  ;;  %v2471_v13 = vsel %vm1651_vm1, %v5041_v31, %v2199_v6  ;;  %v2475_v61 = vsel %vm1655_vm2, %v5041_v31, %v2203_v33  ;;  %vm1933_vm8 = vcmp.eq.s32.totalorder %v1416_v36, %v5062_v60  ;;  %v2201_v15 = vsel %vm1929_vm7, %v5035_v8, 0.0 }
 0x352   : > { %v3768_v44 = vpack.c.bf16 %v2475_v61, %v2471_v13  ;;  %v2205_v9 = vsel %vm1933_vm8, %v5035_v8, 0.0  ;;  %v2473_v51 = vsel %vm1653_vm5, %v5047_v62, %v2201_v15  ;;  %v1418_v43 = vadd.s32 440, %v6938_v37 }
 0x353   : > { %v2477_v23 = vsel %vm1657_vm6, %v5047_v62, %v2205_v9  ;;  %vm1660_vm9 = vcmp.eq.s32.totalorder %v6297_v11, %v5050_v22  ;;  %vm1936_vm10 = vcmp.eq.s32.totalorder %v6297_v11, %v5065_v40  ;;  %vm1662_vm11 = vcmp.eq.s32.totalorder %v6297_v11, %v5080_v1 }
 0x354   : > { %3769 = vmatpush1.bf16.msra.mxu0 %v3768_v44  ;;  %v3896_v35 = vpack.c.bf16 %v2477_v23, %v2473_v51  ;;  %vm1664_vm12 = vcmp.eq.s32.totalorder %v1418_v43, %v5050_v22  ;;  %vm1940_vm13 = vcmp.eq.s32.totalorder %v1418_v43, %v5065_v40  ;;  %v2208_v58 = vsel %vm1936_vm10, %v5053_v30, 0.0 }
 0x355   : > { %v2212_v17 = vsel %vm1940_vm13, %v5053_v30, 0.0  ;;  %v2480_v25 = vsel %vm1660_vm9, %v5056_v32, %v2208_v58  ;;  %vm1666_vm14 = vcmp.eq.s32.totalorder %v1418_v43, %v5080_v1  ;;  %vm1938_vm15 = vcmp.eq.s32.totalorder %v6297_v11, %v5101_v53 }
 0x356   : > { %3897 = vmatpush1.bf16.msra.mxu1 %v3896_v35  ;;  %v2484_v49 = vsel %vm1664_vm12, %v5056_v32, %v2212_v17  ;;  %vm1942_vm0 = vcmp.eq.s32.totalorder %v1418_v43, %v5101_v53  ;;  %v2210_v63 = vsel %vm1938_vm15, %v5068_v16, 0.0  ;;  %vm1659_vm1 = vcmp.eq.s32.totalorder %v6297_v11, %v5038_v24 }
 0x357   : > { %v3770_v12 = vpack.c.bf16 %v2484_v49, %v2480_v25  ;;  %v2214_v29 = vsel %vm1942_vm0, %v5068_v16, 0.0  ;;  %v2482_v38 = vsel %vm1662_vm11, %v5071_v57, %v2210_v63  ;;  %vm1663_vm2 = vcmp.eq.s32.totalorder %v1418_v43, %v5038_v24 }
 0x358   : > { %v2486_v26 = vsel %vm1666_vm14, %v5071_v57, %v2214_v29  ;;  %vm1935_vm3 = vcmp.eq.s32.totalorder %v6297_v11, %v5059_v0  ;;  %vm1939_vm4 = vcmp.eq.s32.totalorder %v1418_v43, %v5059_v0  ;;  %vm1661_vm5 = vcmp.eq.s32.totalorder %v6297_v11, %v5044_v55 }
 0x359   : > { %3771 = vmatprep.subr.bf16.mxu0 %v3770_v12  ;;  %v3898_v59 = vpack.c.bf16 %v2486_v26, %v2482_v38  ;;  %v2207_v54 = vsel %vm1935_vm3, %v5032_v41, 0.0  ;;  %v2211_v45 = vsel %vm1939_vm4, %v5032_v41, 0.0  ;;  %vm1665_vm6 = vcmp.eq.s32.totalorder %v1418_v43, %v5044_v55 }
 0x35a   : > { %v2479_v42 = vsel %vm1659_vm1, %v5041_v31, %v2207_v54  ;;  %v2483_v18 = vsel %vm1663_vm2, %v5041_v31, %v2211_v45  ;;  %vm1937_vm7 = vcmp.eq.s32.totalorder %v6297_v11, %v5062_v60  ;;  %vm1941_vm8 = vcmp.eq.s32.totalorder %v1418_v43, %v5062_v60 }
 0x35b   : > { %3899 = vmatprep.subr.bf16.mxu1 %v3898_v59  ;;  %v3772_v10 = vpack.c.bf16 %v2483_v18, %v2479_v42  ;;  %v2209_v39 = vsel %vm1937_vm7, %v5035_v8, 0.0  ;;  %v2213_v56 = vsel %vm1941_vm8, %v5035_v8, 0.0  ;;  %v1419_v47 = vadd.s32 448, %v6938_v37 }
 0x35c   : > { %v2481_v19 = vsel %vm1661_vm5, %v5047_v62, %v2209_v39  ;;  %v2485_v7 = vsel %vm1665_vm6, %v5047_v62, %v2213_v56  ;;  %v1420_v28 = vadd.s32 456, %v6938_v37  ;;  %v6378_v36 = vadd.s32 464, %v6938_v37 }
 0x35d   : > { %3773 = vmatpush1.bf16.msra.mxu0 %v3772_v10  ;;  %v3900_v11 = vpack.c.bf16 %v2485_v7, %v2481_v19  ;;  %vm1668_vm9 = vcmp.eq.s32.totalorder %v1419_v47, %v5050_v22  ;;  %vm1944_vm10 = vcmp.eq.s32.totalorder %v1419_v47, %v5065_v40  ;;  %vm1670_vm11 = vcmp.eq.s32.totalorder %v1419_v47, %v5080_v1 }
 0x35e   : > { %vm1672_vm12 = vcmp.eq.s32.totalorder %v1420_v28, %v5050_v22  ;;  %vm1948_vm13 = vcmp.eq.s32.totalorder %v1420_v28, %v5065_v40  ;;  %v2216_v4 = vsel %vm1944_vm10, %v5053_v30, 0.0  ;;  %vm1674_vm14 = vcmp.eq.s32.totalorder %v1420_v28, %v5080_v1 }
 0x35f   : > { %3901 = vmatpush1.bf16.msra.mxu1 %v3900_v11  ;;  %v2220_v5 = vsel %vm1948_vm13, %v5053_v30, 0.0  ;;  %v2488_v27 = vsel %vm1668_vm9, %v5056_v32, %v2216_v4  ;;  %vm1946_vm15 = vcmp.eq.s32.totalorder %v1419_v47, %v5101_v53  ;;  %vm1950_vm0 = vcmp.eq.s32.totalorder %v1420_v28, %v5101_v53 }
 0x360   : > { %v2492_v50 = vsel %vm1672_vm12, %v5056_v32, %v2220_v5  ;;  %v2218_v48 = vsel %vm1946_vm15, %v5068_v16, 0.0  ;;  %v2222_v14 = vsel %vm1950_vm0, %v5068_v16, 0.0  ;;  %vm1667_vm1 = vcmp.eq.s32.totalorder %v1419_v47, %v5038_v24 }
 0x361   : > { %v3774_v20 = vpack.c.bf16 %v2492_v50, %v2488_v27  ;;  %v2490_v2 = vsel %vm1670_vm11, %v5071_v57, %v2218_v48  ;;  %v2494_v52 = vsel %vm1674_vm14, %v5071_v57, %v2222_v14  ;;  %vm1671_vm2 = vcmp.eq.s32.totalorder %v1420_v28, %v5038_v24 }
 0x362   : > { %v3902_v21 = vpack.c.bf16 %v2494_v52, %v2490_v2  ;;  %vm1943_vm3 = vcmp.eq.s32.totalorder %v1419_v47, %v5059_v0  ;;  %vm1947_vm4 = vcmp.eq.s32.totalorder %v1420_v28, %v5059_v0  ;;  %vm1669_vm5 = vcmp.eq.s32.totalorder %v1419_v47, %v5044_v55 }
 0x363   : > { %3775 = vmatprep.subr.bf16.mxu0 %v3774_v20  ;;  %v2215_v3 = vsel %vm1943_vm3, %v5032_v41, 0.0  ;;  %v2219_v6 = vsel %vm1947_vm4, %v5032_v41, 0.0  ;;  %vm1673_vm6 = vcmp.eq.s32.totalorder %v1420_v28, %v5044_v55  ;;  %vm1945_vm7 = vcmp.eq.s32.totalorder %v1419_v47, %v5062_v60 }
 0x364   : > { %3903 = vmatprep.subr.bf16.mxu1 %v3902_v21  ;;  %v2487_v33 = vsel %vm1667_vm1, %v5041_v31, %v2215_v3  ;;  %v2491_v13 = vsel %vm1671_vm2, %v5041_v31, %v2219_v6  ;;  %vm1949_vm8 = vcmp.eq.s32.totalorder %v1420_v28, %v5062_v60  ;;  %v2217_v61 = vsel %vm1945_vm7, %v5035_v8, 0.0 }
 0x365   : > { %v3776_v15 = vpack.c.bf16 %v2491_v13, %v2487_v33  ;;  %v2221_v44 = vsel %vm1949_vm8, %v5035_v8, 0.0  ;;  %v2489_v9 = vsel %vm1669_vm5, %v5047_v62, %v2217_v61  ;;  %v1422_v51 = vadd.s32 472, %v6938_v37 }
 0x366   : > { %v2493_v43 = vsel %vm1673_vm6, %v5047_v62, %v2221_v44  ;;  %vm1676_vm9 = vcmp.eq.s32.totalorder %v6378_v36, %v5050_v22  ;;  %vm1952_vm10 = vcmp.eq.s32.totalorder %v6378_v36, %v5065_v40  ;;  %vm1678_vm11 = vcmp.eq.s32.totalorder %v6378_v36, %v5080_v1 }
 0x367   : > { %3777 = vmatpush1.bf16.msra.mxu0 %v3776_v15  ;;  %v3904_v23 = vpack.c.bf16 %v2493_v43, %v2489_v9  ;;  %vm1680_vm12 = vcmp.eq.s32.totalorder %v1422_v51, %v5050_v22  ;;  %vm1956_vm13 = vcmp.eq.s32.totalorder %v1422_v51, %v5065_v40  ;;  %v2224_v35 = vsel %vm1952_vm10, %v5053_v30, 0.0 }
 0x368   : > { %v2228_v58 = vsel %vm1956_vm13, %v5053_v30, 0.0  ;;  %v2496_v17 = vsel %vm1676_vm9, %v5056_v32, %v2224_v35  ;;  %vm1682_vm14 = vcmp.eq.s32.totalorder %v1422_v51, %v5080_v1  ;;  %vm1954_vm15 = vcmp.eq.s32.totalorder %v6378_v36, %v5101_v53 }
 0x369   : > { %3905 = vmatpush1.bf16.msra.mxu1 %v3904_v23  ;;  %v2500_v25 = vsel %vm1680_vm12, %v5056_v32, %v2228_v58  ;;  %vm1958_vm0 = vcmp.eq.s32.totalorder %v1422_v51, %v5101_v53  ;;  %v2226_v49 = vsel %vm1954_vm15, %v5068_v16, 0.0  ;;  %vm1675_vm1 = vcmp.eq.s32.totalorder %v6378_v36, %v5038_v24 }
 0x36a   : > { %v3778_v63 = vpack.c.bf16 %v2500_v25, %v2496_v17  ;;  %v2230_v12 = vsel %vm1958_vm0, %v5068_v16, 0.0  ;;  %v2498_v29 = vsel %vm1678_vm11, %v5071_v57, %v2226_v49  ;;  %vm1679_vm2 = vcmp.eq.s32.totalorder %v1422_v51, %v5038_v24 }
 0x36b   : > { %v2502_v38 = vsel %vm1682_vm14, %v5071_v57, %v2230_v12  ;;  %vm1951_vm3 = vcmp.eq.s32.totalorder %v6378_v36, %v5059_v0  ;;  %vm1955_vm4 = vcmp.eq.s32.totalorder %v1422_v51, %v5059_v0  ;;  %vm1677_vm5 = vcmp.eq.s32.totalorder %v6378_v36, %v5044_v55 }
 0x36c   : > { %3779 = vmatprep.subr.bf16.mxu0 %v3778_v63  ;;  %v3906_v26 = vpack.c.bf16 %v2502_v38, %v2498_v29  ;;  %v2223_v59 = vsel %vm1951_vm3, %v5032_v41, 0.0  ;;  %v2227_v54 = vsel %vm1955_vm4, %v5032_v41, 0.0  ;;  %vm1681_vm6 = vcmp.eq.s32.totalorder %v1422_v51, %v5044_v55  ;;  %v6939_v63 = vld [vmem:[#allocation18_spill] sm:$0xff]  ;;  %v6940_v29 = vld [vmem:[#allocation19_spill] sm:$0xff] }
 0x36d   : > { %v2495_v45 = vsel %vm1675_vm1, %v5041_v31, %v2223_v59  ;;  %v2499_v42 = vsel %vm1679_vm2, %v5041_v31, %v2227_v54  ;;  %vm1953_vm7 = vcmp.eq.s32.totalorder %v6378_v36, %v5062_v60  ;;  %vm1957_vm8 = vcmp.eq.s32.totalorder %v1422_v51, %v5062_v60  ;;  %v6941_v59 = vld [vmem:[#allocation20_spill] sm:$0xff] }
 0x36e   : > { %3907 = vmatprep.subr.bf16.mxu1 %v3906_v26  ;;  %v3780_v18 = vpack.c.bf16 %v2499_v42, %v2495_v45  ;;  %v2225_v10 = vsel %vm1953_vm7, %v5035_v8, 0.0  ;;  %v2229_v39 = vsel %vm1957_vm8, %v5035_v8, 0.0  ;;  %v1423_v56 = vadd.s32 480, %v6938_v37  ;;  %v6942_v45 = vld [vmem:[#allocation21_spill] sm:$0xff] }
 0x36f   : > { %v2497_v47 = vsel %vm1677_vm5, %v5047_v62, %v2225_v10  ;;  %v2501_v19 = vsel %vm1681_vm6, %v5047_v62, %v2229_v39  ;;  %v1424_v7 = vadd.s32 488, %v6938_v37  ;;  %v6459_v28 = vadd.s32 496, %v6938_v37  ;;  %v2530_v39 = vld [vmem:[%s6649_s3 + $0x58] sm:$0xf] }
 0x370   : > { %3781 = vmatpush1.bf16.msra.mxu0 %v3780_v18  ;;  %v3908_v36 = vpack.c.bf16 %v2501_v19, %v2497_v47  ;;  %vm1684_vm9 = vcmp.eq.s32.totalorder %v1423_v56, %v5050_v22  ;;  %vm1960_vm10 = vcmp.eq.s32.totalorder %v1423_v56, %v5065_v40  ;;  %vm1686_vm11 = vcmp.eq.s32.totalorder %v1423_v56, %v5080_v1  ;;  %v2525_v18 = vld [vmem:[%s6649_s3 + $0x30] sm:$0xff]  ;;  %v4040_v19 = vld [vmem:[#allocation2] sm:$0x1] }
 0x371   : > { %vm1688_vm12 = vcmp.eq.s32.totalorder %v1424_v7, %v5050_v22  ;;  %vm1964_vm13 = vcmp.eq.s32.totalorder %v1424_v7, %v5065_v40  ;;  %v2232_v11 = vsel %vm1960_vm10, %v5053_v30, 0.0  ;;  %vm1690_vm14 = vcmp.eq.s32.totalorder %v1424_v7, %v5080_v1 }
 0x372   : > { %3909 = vmatpush1.bf16.msra.mxu1 %v3908_v36  ;;  %v2236_v4 = vsel %vm1964_vm13, %v5053_v30, 0.0  ;;  %v2504_v5 = vsel %vm1684_vm9, %v5056_v32, %v2232_v11  ;;  %vm1962_vm15 = vcmp.eq.s32.totalorder %v1423_v56, %v5101_v53  ;;  %vm1966_vm0 = vcmp.eq.s32.totalorder %v1424_v7, %v5101_v53 }
 0x373   : > { %v2508_v27 = vsel %vm1688_vm12, %v5056_v32, %v2236_v4  ;;  %v2234_v50 = vsel %vm1962_vm15, %v5068_v16, 0.0  ;;  %v2238_v48 = vsel %vm1966_vm0, %v5068_v16, 0.0  ;;  %vm1683_vm1 = vcmp.eq.s32.totalorder %v1423_v56, %v5038_v24 }
 0x374   : > { %v3782_v14 = vpack.c.bf16 %v2508_v27, %v2504_v5  ;;  %v2506_v20 = vsel %vm1686_vm11, %v5071_v57, %v2234_v50  ;;  %v2510_v2 = vsel %vm1690_vm14, %v5071_v57, %v2238_v48  ;;  %vm1687_vm2 = vcmp.eq.s32.totalorder %v1424_v7, %v5038_v24  ;;  %v2863_v50 = vld [vmem:[%s4328_s9] sm:$0xff] }
 0x375   : > { %v3910_v52 = vpack.c.bf16 %v2510_v2, %v2506_v20  ;;  %vm1959_vm3 = vcmp.eq.s32.totalorder %v1423_v56, %v5059_v0  ;;  %vm1963_vm4 = vcmp.eq.s32.totalorder %v1424_v7, %v5059_v0  ;;  %vm1685_vm5 = vcmp.eq.s32.totalorder %v1423_v56, %v5044_v55  ;;  %v2864_v20 = vld [vmem:[%s4328_s9 + $0x8] sm:$0xff] }
 0x376   : > { %3783 = vmatprep.subr.bf16.mxu0 %v3782_v14  ;;  %v2231_v21 = vsel %vm1959_vm3, %v5032_v41, 0.0  ;;  %v2235_v3 = vsel %vm1963_vm4, %v5032_v41, 0.0  ;;  %vm1689_vm6 = vcmp.eq.s32.totalorder %v1424_v7, %v5044_v55  ;;  %vm1961_vm7 = vcmp.eq.s32.totalorder %v1423_v56, %v5062_v60  ;;  %v2529_v56 = vld [vmem:[%s6649_s3 + $0x50] sm:$0xf]  ;;  %v2867_v14 = vld [vmem:[%s4328_s9 + $0x20] sm:$0xff] }
 0x377   : > { %3911 = vmatprep.subr.bf16.mxu1 %v3910_v52  ;;  %v2503_v6 = vsel %vm1683_vm1, %v5041_v31, %v2231_v21  ;;  %v2507_v33 = vsel %vm1687_vm2, %v5041_v31, %v2235_v3  ;;  %vm1965_vm8 = vcmp.eq.s32.totalorder %v1424_v7, %v5062_v60  ;;  %v2233_v13 = vsel %vm1961_vm7, %v5035_v8, 0.0  ;;  %v2868_v52 = vld [vmem:[%s4328_s9 + $0x28] sm:$0xff]  ;;  %v2865_v21 = vld [vmem:[%s4328_s9 + $0x10] sm:$0xff] }
 0x378   : > { %v3784_v61 = vpack.c.bf16 %v2507_v33, %v2503_v6  ;;  %v2237_v15 = vsel %vm1965_vm8, %v5035_v8, 0.0  ;;  %v2505_v44 = vsel %vm1685_vm5, %v5047_v62, %v2233_v13  ;;  %v1426_v9 = vadd.s32 504, %v6938_v37  ;;  %v2869_v6 = vld [vmem:[%s4328_s9 + $0x30] sm:$0xff]  ;;  %v2866_v13 = vld [vmem:[%s4328_s9 + $0x18] sm:$0xff] }
 0x379   : > { %v2509_v51 = vsel %vm1689_vm6, %v5047_v62, %v2237_v15  ;;  %vm1692_vm9 = vcmp.eq.s32.totalorder %v6459_v28, %v5050_v22  ;;  %vm1968_vm10 = vcmp.eq.s32.totalorder %v6459_v28, %v5065_v40  ;;  %vm1694_vm11 = vcmp.eq.s32.totalorder %v6459_v28, %v5080_v1 }
 0x37a   : > { %3785 = vmatpush1.bf16.msra.mxu0 %v3784_v61  ;;  %v3912_v43 = vpack.c.bf16 %v2509_v51, %v2505_v44  ;;  %vm1696_vm12 = vcmp.eq.s32.totalorder %v1426_v9, %v5050_v22  ;;  %vm1972_vm13 = vcmp.eq.s32.totalorder %v1426_v9, %v5065_v40  ;;  %v2240_v23 = vsel %vm1968_vm10, %v5053_v30, 0.0  ;;  %v2870_v44 = vld [vmem:[%s4328_s9 + $0x38] sm:$0xff] }
 0x37b   : > { %v2244_v37 = vsel %vm1972_vm13, %v5053_v30, 0.0  ;;  %v2512_v35 = vsel %vm1692_vm9, %v5056_v32, %v2240_v23  ;;  %vm1698_vm14 = vcmp.eq.s32.totalorder %v1426_v9, %v5080_v1  ;;  %vm1970_vm15 = vcmp.eq.s32.totalorder %v6459_v28, %v5101_v53  ;;  %v2871_v23 = vld [vmem:[%s4328_s9 + $0x40] sm:$0xf] }
 0x37c   : > { %3913 = vmatpush1.bf16.msra.mxu1 %v3912_v43  ;;  %v2516_v58 = vsel %vm1696_vm12, %v5056_v32, %v2244_v37  ;;  %vm1974_vm0 = vcmp.eq.s32.totalorder %v1426_v9, %v5101_v53  ;;  %v2242_v22 = vsel %vm1970_vm15, %v5068_v16, 0.0  ;;  %vm1691_vm1 = vcmp.eq.s32.totalorder %v6459_v28, %v5038_v24 }
 0x37d   : > { %v3786_v40 = vpack.c.bf16 %v2516_v58, %v2512_v35  ;;  %v2246_v30 = vsel %vm1974_vm0, %v5068_v16, 0.0  ;;  %v2514_v17 = vsel %vm1694_vm11, %v5071_v57, %v2242_v22  ;;  %vm1695_vm2 = vcmp.eq.s32.totalorder %v1426_v9, %v5038_v24 }
 0x37e   : > { %v2518_v25 = vsel %vm1698_vm14, %v5071_v57, %v2246_v30  ;;  %vm1967_vm3 = vcmp.eq.s32.totalorder %v6459_v28, %v5059_v0  ;;  %vm1971_vm4 = vcmp.eq.s32.totalorder %v1426_v9, %v5059_v0  ;;  %vm1693_vm5 = vcmp.eq.s32.totalorder %v6459_v28, %v5044_v55 }
 0x37f   : > { %3787 = vmatprep.subr.bf16.mxu0 %v3786_v40  ;;  %v3914_v32 = vpack.c.bf16 %v2518_v25, %v2514_v17  ;;  %v2239_v16 = vsel %vm1967_vm3, %v5032_v41, 0.0  ;;  %v2243_v53 = vsel %vm1971_vm4, %v5032_v41, 0.0  ;;  %vm1697_vm6 = vcmp.eq.s32.totalorder %v1426_v9, %v5044_v55  ;;  %v2872_v40 = vld [vmem:[%s4328_s9 + $0x48] sm:$0xf] }
 0x380   : > { %v2511_v24 = vsel %vm1691_vm1, %v5041_v31, %v2239_v16  ;;  %v2515_v57 = vsel %vm1695_vm2, %v5041_v31, %v2243_v53  ;;  %vm1969_vm7 = vcmp.eq.s32.totalorder %v6459_v28, %v5062_v60  ;;  %vm1973_vm8 = vcmp.eq.s32.totalorder %v1426_v9, %v5062_v60  ;;  %v2521_v60 = vld [vmem:[%s6649_s3 + $0x10] sm:$0xff] }
 0x381   : > { %3915 = vmatprep.subr.bf16.mxu1 %v3914_v32  ;;  %v3788_v0 = vpack.c.bf16 %v2515_v57, %v2511_v24  ;;  %v2241_v1 = vsel %vm1969_vm7, %v5035_v8, 0.0  ;;  %v2245_v49 = vsel %vm1973_vm8, %v5035_v8, 0.0  ;;  %vm1293_vm9 = vcmask 1040384   ;;  %v2526_v8 = vld [vmem:[%s6649_s3 + $0x38] sm:$0xff]  ;;  %v2873_v16 = vld [vmem:[%s4328_s9 + $0x50] sm:$0xf] }
 0x382   : > { %v2513_v41 = vsel %vm1693_vm5, %v5047_v62, %v2241_v1  ;;  %v2517_v55 = vsel %vm1697_vm6, %v5047_v62, %v2245_v49  ;;  %v1294_v12 = vsel %vm1293_vm9, %v6939_v63, 0.0  ;;  %v1295_v31 = vsel %vm1293_vm9, %v6940_v29, 0.0 }
 0x383   : > { %3789 = vmatpush1.bf16.msra.mxu0 %v3788_v0  ;;  %v3916_v38 = vpack.c.bf16 %v2517_v55, %v2513_v41  ;;  %v1296_v26 = vadd.f32 %v1295_v31, %v1294_v12  ;;  %v1297_v54 = vsel %vm1293_vm9, %v6941_v59, 0.0  ;;  %v1299_v42 = vsel %vm1293_vm9, %v6942_v45, 0.0  ;;  %v2874_v0 = vld [vmem:[%s4328_s9 + $0x58] sm:$0xf] }
 0x384   : > { %vm1308_vm10 = vcmask 0   ;;  %vm2888_vm11 = vcmask 1043456  }
 0x385   : > { %3917 = vmatpush1.bf16.msra.mxu1 %v3916_v38  ;;  %v1298_v62 = vadd.f32 %v1297_v54, %v1296_v26 }
 0x386   : > { %2679 = vmatmul.mubr.f32.vlgmr.msra.gmra.mrb[2].mxu0 %v2521_v60 }
 0x387   : > { %2684 = vmatprep.mubr.f32.mxu0 %v2526_v8  ;;  %v1300_v10 = vadd.f32 %v1299_v42, %v1298_v62 }
 0x388   : > { %2845 = vmatmul.mubr.f32.vlgmr.msra.gmra.mrb[2].mxu1 %v2521_v60 }
 0x389   : > { %2850 = vmatprep.mubr.f32.mxu1 %v2526_v8  ;;  %1301 = vadd.xlane.f32.xlu0 %v1300_v10 }
 0x38a   : > { %2685 = vmatmul.mubr.f32.gmra.mrb[4].mxu0 %v2525_v18 }
 0x38b   : > { %2690 = vmatprep.mubr.f32.mxu0 %v2530_v39 }
 0x38c   : > { %2851 = vmatmul.mubr.f32.gmra.mrb[4].mxu1 %v2525_v18 }
 0x38d   : > { %2856 = vmatprep.mubr.f32.mxu1 %v2530_v39 }
 0x38e   : > { %2691 = vmatmul.mubr.f32.gmra.mrb[6].mxu0 %v2529_v56 }
 0x390   : > { %2857 = vmatmul.mubr.f32.gmra.mrb[6].mxu1 %v2529_v56 }
 0x416   : > { %v1302_v47 = vpop.xlane.xlu0 %1301 }
 0x417   : > { %v1303_v7 = vadd.f32 %v4040_v19, %v1302_v47  ;;  %v2924_v19 = vld [vmem:[%s362_s10] sm:$0xf]  ;;  %s2997_s10 = sadd.s32 %s3146_s29, %s4335_s14  ;;  %s2985_s14 = scalar_lea.sflag [#allocation6], %s4325_s28 }
 0x418   : > { %s3147_s27 = sshll.u32 %s2997_s10, 4 }
 0x419   : > { %v1304_v28 = vmul.f32 0.001953125, %v1303_v7  ;;  %s6591_s22 = scalar_lea.hbm %s6651_s5, %s3147_s27 }
 0x41b   : > { %v1305_v36 = vfloor.f32 %v1304_v28 }
 0x41d   : > { %v1306_v11 = vmul.f32 512.0, %v1305_v36 }
 0x41f   : > { %v1307_v4 = vsub.f32 %v1303_v7, %v1306_v11 }
 0x421   : > { %1309 = vst.msk [vmem:[#allocation2] sm:$0x1] %vm1308_vm10, %v1307_v4 }
 0x459   : > { %v2680_v5 = vpop.f32.mrb[2].mxu0 }
 0x45a   : > { %v2682_v27 = vpop.f32.mrb[3].mxu0  ;;  %v2875_v33 = vmul.f32 %v2863_v50, %v2680_v5  ;;  %v2929_v50 = vrot.slane %v2924_v19, %v6937_v34 }
 0x45b   : > { %v2846_v48 = vpop.f32.mrb[2].mxu1  ;;  %v2876_v9 = vmul.f32 %v2864_v20, %v2682_v27 }
 0x45c   : > { %v2848_v2 = vpop.f32.mrb[3].mxu1  ;;  %v2877_v37 = vmul.f32 %v2865_v21, %v2846_v48 }
 0x45d   : > { %v2686_v3 = vpop.f32.mrb[4].mxu0  ;;  %v2878_v30 = vmul.f32 %v2866_v13, %v2848_v2 }
 0x45e   : > { %v2879_v61 = vmul.f32 %v2867_v14, %v2686_v3  ;;  %v2688_v15 = vpop.f32.mrb[5].mxu0  ;;  %v6943_v14 = vld [vmem:[#allocation16_spill] sm:$0xff] }
 0x45f   : > { %v2852_v51 = vpop.f32.mrb[4].mxu1  ;;  %v2880_v43 = vmul.f32 %v2868_v52, %v2688_v15  ;;  %v2933_v20 = vrot.slane %v2924_v19, %v6943_v14 }
 0x460   : > { %v2887_v35 = vadd.f32 %v2879_v61, %v2875_v33  ;;  %v2881_v58 = vmul.f32 %v2869_v6, %v2852_v51  ;;  %v2854_v22 = vpop.f32.mrb[5].mxu1  ;;  %v2937_v6 = vrot.slane %v2924_v19, %v4388_v46  ;;  %v6944_v61 = vld [vmem:[#allocation17_spill] sm:$0xff] }
 0x461   : > { %v2897_v17 = vadd.f32 %v2880_v43, %v2876_v9  ;;  %v2882_v25 = vmul.f32 %v2870_v44, %v2854_v22  ;;  %v2692_v32 = vpop.f32.mrb[6].mxu0  ;;  %v2941_v15 = vrot.slane %v2924_v19, %v6944_v61 }
 0x462   : > { %v2906_v53 = vadd.f32 %v2881_v58, %v2877_v37  ;;  %v2883_v24 = vmul.f32 %v2871_v23, %v2692_v32  ;;  %v2694_v57 = vpop.f32.mrb[7].mxu0  ;;  %v6945_v58 = vld [vmem:[#allocation24_spill] sm:$0xff] }
 0x463   : > { %v2915_v1 = vadd.f32 %v2882_v25, %v2878_v30  ;;  %v2858_v49 = vpop.f32.mrb[6].mxu1  ;;  %v2884_v41 = vmul.f32 %v2872_v40, %v2694_v57  ;;  %v6946_v30 = vlaneseq }
 0x464   : > { %v2889_v55 = vsel %vm2888_vm11, %v2883_v24, 0.0  ;;  %v2885_v63 = vmul.f32 %v2873_v16, %v2858_v49  ;;  %v2860_v12 = vpop.f32.mrb[7].mxu1 }
 0x465   : > { %v2890_v29 = vadd.f32 %v2889_v55, %v2887_v35  ;;  %v2898_v31 = vsel %vm2888_vm11, %v2884_v41, 0.0  ;;  %v2886_v38 = vmul.f32 %v2874_v0, %v2860_v12  ;;  %vm2981_vm12 = vcmp.lt.s32.totalorder %v6946_v30, 512 }
 0x466   : > { %v2907_v60 = vsel %vm2888_vm11, %v2885_v63, 0.0  ;;  %v2899_v26 = vadd.f32 %v2898_v31, %v2897_v17 }
 0x467   : > { %v2891_v59 = vrot.slane %v2890_v29, 4  ;;  %v2908_v54 = vadd.f32 %v2907_v60, %v2906_v53  ;;  %v2916_v8 = vsel %vm2888_vm11, %v2886_v38, 0.0 }
 0x468   : > { %v2900_v45 = vrot.slane %v2899_v26, 4  ;;  %v2917_v42 = vadd.f32 %v2916_v8, %v2915_v1 }
 0x469   : > { %v2892_v62 = vadd.f32 %v2891_v59, %v2890_v29  ;;  %v2909_v18 = vrot.slane %v2908_v54, 4 }
 0x46a   : > { %v2901_v10 = vadd.f32 %v2900_v45, %v2899_v26  ;;  %v2918_v39 = vrot.slane %v2917_v42, 4 }
 0x46b   : > { %v2893_v56 = vrot.slane %v2892_v62, 2  ;;  %v2910_v47 = vadd.f32 %v2909_v18, %v2908_v54 }
 0x46c   : > { %v2902_v7 = vrot.slane %v2901_v10, 2  ;;  %v2919_v28 = vadd.f32 %v2918_v39, %v2917_v42 }
 0x46d   : > { %v2894_v36 = vadd.f32 %v2893_v56, %v2892_v62  ;;  %v2911_v11 = vrot.slane %v2910_v47, 2 }
 0x46e   : > { %v2903_v4 = vadd.f32 %v2902_v7, %v2901_v10  ;;  %v2920_v5 = vrot.slane %v2919_v28, 2 }
 0x46f   : > { %v2895_v27 = vrot.slane %v2894_v36, 1  ;;  %v2912_v48 = vadd.f32 %v2911_v11, %v2910_v47 }
 0x470   : > { %v2904_v2 = vrot.slane %v2903_v4, 1  ;;  %v2921_v52 = vadd.f32 %v2920_v5, %v2919_v28 }
 0x471   : > { %v2896_v21 = vadd.f32 %v2895_v27, %v2894_v36  ;;  %v2913_v3 = vrot.slane %v2912_v48, 1 }
 0x472   : > { %v2905_v33 = vadd.f32 %v2904_v2, %v2903_v4  ;;  %v2922_v13 = vrot.slane %v2921_v52, 1 }
 0x473   : > { %v2946_v44 = vmul.f32 %v2929_v50, %v2896_v21  ;;  %v2914_v9 = vadd.f32 %v2913_v3, %v2912_v48 }
 0x474   : > { %v2947_v51 = vmul.f32 %v2933_v20, %v2905_v33  ;;  %v2923_v34 = vadd.f32 %v2922_v13, %v2921_v52 }
 0x475   : > { %v2948_v43 = vmul.f32 %v2937_v6, %v2914_v9 }
 0x476   : > { %v2949_v23 = vmul.f32 %v2941_v15, %v2923_v34  ;;  %v2954_v37 = vcombine.low %v2946_v44, %v2947_v51 }
 0x478   : > { %v2955_v35 = vcombine.low %v2948_v43, %v2949_v23  ;;  %v2962_v22 = vrot.slane %v2954_v37, %v6945_v58 }
 0x47a   : > { %v2969_v46 = vrot.slane %v2955_v35, %v6945_v58 }
 0x47c   : > { %v2970_v40 = vcombine.low %v2962_v22, %v2969_v46 }
 0x47e   : > { %v2977_v17 = vrot.slane %v2970_v40, %v6945_v58 }
 0x480   : > { %2983 = vst.msk [vmem:[%s4354_s16] sm:$0xf] %vm2981_vm12, %v2977_v17 }
 0x481   : > { %4082 = shalt.err (!%p4079_p4)
}
 0x482   : > { %s4083_s28 = scalar_lea.hbm %s6591_s22, 64  ;;  %s4087_s7 = scalar_lea.hbm %s6651_s5, 256 }
 0x483   : > { %p4084_p6 = scmp.ne.s32.totalorder %s6591_s22, %s4083_s28  ;;  %p4088_p9 = scmp.lt.u32.totalorder %s6591_s22, %s6651_s5 }
 0x484   : > { %p4089_p13 = scmp.lt.u32.totalorder %s4087_s7, %s4083_s28  ;;  %p4091_p2 = scmp.lt.u32.totalorder %s4083_s28, %s6591_s22 }
 0x485   : > { %p4085_p3 = pnand %p4084_p6, %p6947_p5 }
 0x486   : > { %p4090_p0 = por %p4089_p13, %p4088_p9 }
 0x487   : > { %p4086_p8 = pneg %p4085_p3 }
 0x488   : > { %p4092_p7 = por %p4091_p2, %p4090_p0 }
 0x48a   : > { %p4093_p10 = pnand %p4092_p7, %p4086_p8 }
 0x48c   : > { %4096 = shalt.err (!%p4093_p10)
}
 0x48d   : > { %3957 = dma.vmem_to_hbm [thread:$0]  (%p6947_p5), %s6593_s6, 64, %s6591_s22, %s2985_s14  }
 0x48e PF: > { %s6948_s29 = sld [smem:[#allocation12_spill]]  ;;  %p3969_p11 = scmp.ge.s32.totalorder %s4167_s25, 2 }
 0x48f   : > { %s3013_s10 = sand.u32 1, %s4139_s18  }
 0x490   : > { %s3014_s27 = scalar_lea.sflag [#allocation6], %s3013_s10 }
 0x494   : > { %p6949_p12 = scmp.ne.s32.totalorder %s6948_s29, 0 }
 0x496   : > { %p3964_p1 = pnand %p3969_p11, %p6949_p12 }
 0x498   : > { %4134 = dma.done.wait (!%p3964_p1), %s3014_s27, 64  }
 0x499   : > { %4136 = vsyncadd (!%p3964_p1), %s3014_s27, 4294967232  ;;  %s19_s25 = sadd.s32 1, %s4167_s25   ;;  %s6950_s8 = sld [smem:[#allocation13_spill]] }
 0x49a   : > { %p16_p4 = scmp.ge.s32.totalorder %s19_s25, 6   ;;  %s6951_s6 = sld [smem:[#allocation10_spill]] }
 0x49b   : > { %s6952_s11 = sld [smem:[#allocation11_spill]]  ;;  %s6953_s18 = smov %s4143_s19 }
 0x49c   : > { %s6954_s19 = smov %s4147_s20  ;;  %s6956_s21 = smov %s4159_s23 }
 0x49d   : > { %s6957_s22 = smov %s4163_s24  ;;  %18 = sbr.rel (!%p16_p4) target bundleno = 6 (0x6), region = 118 }
 0x49f   : > { %s6955_s20 = smov %s6950_s8 }
 0x4a0   : > { %s6958_s23 = smov %s6951_s6 }
 0x4a1   : > { %s6959_s24 = smov %s6952_s11 }
 0x4a4   :  { %3019 = vsyncpa [#allocation5], 1 }
 0x4a5   :  { %3021 = vsyncpa [#allocation5 + $0x1], 1 }
 0x4a6   :  { %3022 = vsyncpa [#allocation6], 1 }
 0x4a7   :  { %3024 = vsyncpa [#allocation6 + $0x1], 1 }

</bundles_post_ra>
